<compile_context>
chip_gen: v7x
topology: tpu7x:2x2x1
jax: 0.10.0
libtpu: 0.0.40
codegen_flags: <defaults>
</compile_context>

<pallas_src>
import functools
import math

import jax
import jax.numpy as jnp
from jax import lax
from jax.experimental import pallas as pl
from jax.experimental.pallas import tpu as pltpu


# ----------------------------- in-kernel helpers ----------------------------

def _gelu(x):
    return 0.5 * x * (1.0 + lax.erf(x / jnp.sqrt(2.0).astype(x.dtype)))


def _ln(x, g, b, eps):
    mu = jnp.mean(x, axis=-1, keepdims=True)
    var = jnp.mean(jnp.square(x - mu), axis=-1, keepdims=True)
    return (x - mu) * lax.rsqrt(var + eps) * g + b


def _softmax_lastdim(s, approx=True):
    s = s - jnp.max(s, axis=-1, keepdims=True)
    p = jnp.exp(s)
    denom = jnp.sum(p, axis=-1, keepdims=True)
    if approx:
        return p * pl.reciprocal(denom, approx=True)
    return p / denom


def _mha(h, wqkv, bqkv, n_heads, B, S):
    """Multi-head self-attention over (B*S, H) rows, all in registers/VMEM.

    Fused QKV matmul for every row; attention restricted to each batch
    element via static, sublane-aligned row slices; per-head contexts are
    concatenated along lanes once (no VMEM scratch round trip).
    """
    _, H = h.shape
    d = H // n_heads
    scale = 1.0 / math.sqrt(d)
    qkv = jnp.dot(h, wqkv, preferred_element_type=jnp.float32) + bqkv    # (B*S, 3H)
    out_rows = []
    for b in range(B):                                      # static; B is tiny
        blk = qkv[b * S:(b + 1) * S, :]                     # sublane-aligned
        q = blk[:, :H] * scale                              # fold 1/sqrt(d)
        k = blk[:, H:2 * H]
        v = blk[:, 2 * H:]
        heads_out = []
        for hh in range(n_heads):                           # static unroll
            lo, hi = hh * d, (hh + 1) * d
            s = lax.dot_general(q[:, lo:hi], k[:, lo:hi],
                                (((1,), (1,)), ((), ())),
                                preferred_element_type=jnp.float32)      # (S, S)
            p = _softmax_lastdim(s, approx=True)
            heads_out.append(jnp.dot(p, v[:, lo:hi],
                                     preferred_element_type=jnp.float32))
        out_rows.append(jnp.concatenate(heads_out, axis=-1))             # (S, H)
    return jnp.concatenate(out_rows, axis=0)                             # (B*S, H)


# ----------------------------- fused forward kernel -------------------------

def _fused_forward_kernel(
        # inputs ---------------------------------------------------------
        x_ref,                                  # (B*S, F) raw concatenated features
        rp_w_ref,                               # (F, H) proj_w + res_w (folded)
        sa_wqkv_ref,                            # (H, 3H) custom SelfAttention QKV
        sa_dw_ref,                              # (H, H)  custom SelfAttention dense
        pos_tok_ref,                            # (B*S, H) BERT pos + token-type emb
        lw_qkv_ref,                             # (L, H, 3H)
        l_aow_ref,                              # (L, H, H)
        l_iw_ref,                               # (L, H, I)
        l_ow_ref,                               # (L, I, H)
        moe_we_ref,                             # (H, E*H) stacked expert weights
        moe_wg_ref,                             # (H, E)   gate
        moe_bcast_ref,                          # (E, E*H) gate -> stacked broadcast
        opw_stk_ref,                            # (E*H, Vp) op_w tiled E times (padded)
        slab_ref,                               # (R, 128) all biases / LN params
        # output ---------------------------------------------------------
        o_ref,                                  # (B*Sf, Vp) lane-dense logits
        *, B, S, Sf, heads, bert_heads, n_layers, rows):
    f32 = jnp.float32

    def vec(name):                              # (1, n) static slice of the slab
        r, n = rows[name]
        return slab_ref[r:r + 1, 0:n]

    # Input LayerNorm over the raw feature dim (eps=1e-5).
    h = _ln(x_ref[...], vec("in_ln_g"), vec("in_ln_b"), 1e-5)

    # residual_fc + input_projection folded into one matmul (dropout = id).
    h = jnp.dot(h, rp_w_ref[...], preferred_element_type=f32) + vec("rp_b")

    # Custom SelfAttention block: MHA -> dense -> residual + LN (eps=1e-5).
    ctx = _mha(h, sa_wqkv_ref[...], vec("sa_bqkv"), heads, B, S)
    attn = jnp.dot(ctx, sa_dw_ref[...], preferred_element_type=f32) + vec("sa_db")
    h = _ln(attn + h, vec("sa_lg"), vec("sa_lb"), 1e-5)

    # BERT embeddings: inputs_embeds + position + token-type, LN eps=1e-12.
    h = _ln(h + pos_tok_ref[...], vec("be_lg"), vec("be_lb"), 1e-12)

    # BERT encoder layers (static unroll; fine at L=2 — use fori_loop / a grid
    # axis when scaling to the full-size L=24 config).
    for l in range(n_layers):
        ctx = _mha(h, lw_qkv_ref[l], vec(f"l{l}_bqkv"), bert_heads, B, S)
        ao = jnp.dot(ctx, l_aow_ref[l], preferred_element_type=f32) + vec(f"l{l}_aob")
        h = _ln(ao + h, vec(f"l{l}_aolg"), vec(f"l{l}_aolb"), 1e-12)
        inter = _gelu(jnp.dot(h, l_iw_ref[l], preferred_element_type=f32)
                      + vec(f"l{l}_ib"))
        out = jnp.dot(inter, l_ow_ref[l], preferred_element_type=f32) + vec(f"l{l}_ob")
        h = _ln(out + h, vec(f"l{l}_olg"), vec(f"l{l}_olb"), 1e-12)

    # Mixture of Experts on the future (last Sf) rows of each batch element.
    xm = jnp.concatenate([h[b * S + (S - Sf):(b + 1) * S, :] for b in range(B)],
                         axis=0)                                          # (B*Sf, H)
    gate = _softmax_lastdim(
        jnp.dot(xm, moe_wg_ref[...], preferred_element_type=f32) + vec("moe_bg"),
        approx=False)                                                     # (B*Sf, E)
    gate_b = jnp.dot(gate, moe_bcast_ref[...],
                     preferred_element_type=f32)                          # (B*Sf, E*H)
    he = _gelu(jnp.dot(xm, moe_we_ref[...], preferred_element_type=f32)
               + vec("moe_be"))                                           # (B*Sf, E*H)

    # Expert-weighted sum fused with the output projection: a single
    # (B*Sf, E*H) x (E*H, Vp) matmul; lane-dense 128-wide unmasked store.
    o_ref[...] = (jnp.dot(gate_b * he, opw_stk_ref[...],
                          preferred_element_type=f32) + vec("op_b"))


# ----------------------------- model wrapper --------------------------------

def mobility_bert_moe_forward(params, cfg, input_seq_feature,
                              historical_locations, predict_seq_feature):
    B, Sh, _ = input_seq_feature.shape
    Sf = predict_seq_feature.shape[1]
    S = Sh + Sf
    H = cfg["hidden_size"]
    V = cfg["num_location_ids"]
    E = cfg["num_experts"]
    L = cfg["bert_layers"]
    Vp = ((V + 127) // 128) * 128                      # lane-dense padded logits

    # TODO(synk): embedding-table lookups (day/time/dow/weekday/location) are
    # plain XLA gathers outside the kernel — no clean Pallas-TPU equivalent
    # at this size.
    def embed(feat, loc_emb):
        days, times = feat[:, :, 0], feat[:, :, 1]
        dow, wd = feat[:, :, 3], feat[:, :, 4]
        delta = feat[:, :, 5].astype(jnp.float32)[..., None]
        return jnp.concatenate(
            [params["day_emb"][days], params["time_emb"][times],
             params["dow_emb"][dow], params["weekday_emb"][wd],
             delta, loc_emb], axis=-1)

    hist_loc = params["loc_emb"][historical_locations]              # (B, Sh, Le)
    hist_raw = embed(input_seq_feature, hist_loc)
    fut_raw = embed(predict_seq_feature,
                    jnp.zeros((B, Sf, hist_loc.shape[-1]), jnp.float32))
    x_raw = jnp.concatenate([hist_raw, fut_raw], axis=1)            # (B, S, F)
    F = x_raw.shape[-1]
    x2 = x_raw.reshape(B * S, F)                                    # batch folded

    # --- weight fusion / stacking (tiny one-time host-side reshapes) --------
    sa = params["selfattn"]
    sa_wqkv = jnp.concatenate([sa["wq"], sa["wk"], sa["wv"]], axis=1)

    rp_w = params["proj_w"] + params["res_w"]                       # folded matmul
    rp_b = params["proj_b"] + params["res_b"]

    layers = params["bert_layers"]
    lw_qkv = jnp.stack([jnp.concatenate([lp["wq"], lp["wk"], lp["wv"]], axis=1)
                        for lp in layers])
    l_aow = jnp.stack([lp["ao_w"] for lp in layers])
    l_iw = jnp.stack([lp["inter_w"] for lp in layers])
    l_ow = jnp.stack([lp["out_w"] for lp in layers])

    moe = params["moe"]
    moe_we = jnp.transpose(moe["we"], (1, 0, 2)).reshape(H, E * H)  # lane-dense
    moe_wg = moe["wg"]
    moe_bcast = jnp.repeat(jnp.eye(E, dtype=jnp.float32), H, axis=1)  # (E, E*H)

    opw_pad = jnp.zeros((H, Vp), jnp.float32).at[:, :V].set(params["out_proj_w"])
    opw_stk = jnp.tile(opw_pad, (E, 1))                             # (E*H, Vp)
    opb_pad = jnp.zeros((Vp,), jnp.float32).at[:V].set(params["out_proj_b"])

    pos_tok = params["bert_pos_emb"][:S] + params["bert_tok_emb"][0][None, :]
    pos_tok_tiled = jnp.tile(pos_tok, (B, 1))                       # (B*S, H)

    # --- coalesce all 1-row bias / LN params into one lane-dense slab -------
    row_list, rows = [], {}

    def add_row(name, v):
        v = v.reshape(-1).astype(jnp.float32)
        rows[name] = (len(row_list), int(v.shape[0]))
        row_list.append(v)

    add_row("in_ln_g", params["in_ln_g"]); add_row("in_ln_b", params["in_ln_b"])
    add_row("rp_b", rp_b)
    add_row("sa_bqkv", jnp.concatenate([sa["bq"], sa["bk"], sa["bv"]]))
    add_row("sa_db", sa["dense_b"])
    add_row("sa_lg", sa["ln_g"]); add_row("sa_lb", sa["ln_b"])
    add_row("be_lg", params["bert_emb_ln_g"]); add_row("be_lb", params["bert_emb_ln_b"])
    for l, lp in enumerate(layers):
        add_row(f"l{l}_bqkv", jnp.concatenate([lp["bq"], lp["bk"], lp["bv"]]))
        add_row(f"l{l}_aob", lp["ao_b"])
        add_row(f"l{l}_aolg", lp["ao_ln_g"]); add_row(f"l{l}_aolb", lp["ao_ln_b"])
        add_row(f"l{l}_ib", lp["inter_b"]); add_row(f"l{l}_ob", lp["out_b"])
        add_row(f"l{l}_olg", lp["out_ln_g"]); add_row(f"l{l}_olb", lp["out_ln_b"])
    add_row("moe_be", moe["be"])
    add_row("moe_bg", moe["bg"])
    add_row("op_b", opb_pad)

    max_len = max(n for _, n in rows.values())
    slab_w = ((max(max_len, 128) + 127) // 128) * 128
    slab = jnp.zeros((len(row_list), slab_w), jnp.float32)
    for i, v in enumerate(row_list):
        slab = slab.at[i, :v.shape[0]].set(v)

    operands = [x2, rp_w, sa_wqkv, sa["dense_w"], pos_tok_tiled,
                lw_qkv, l_aow, l_iw, l_ow,
                moe_we, moe_wg, moe_bcast, opw_stk, slab]

    def full_spec(a):
        nd = a.ndim
        return pl.BlockSpec(a.shape, lambda i, _nd=nd: (0,) * _nd)

    kernel = functools.partial(
        _fused_forward_kernel, B=B, S=S, Sf=Sf,
        heads=cfg["attention_heads"], bert_heads=cfg["bert_heads"],
        n_layers=L, rows=rows)

    out = pl.pallas_call(
        kernel,
        out_shape=jax.ShapeDtypeStruct((B * Sf, Vp), jnp.float32),
        grid=(1,),                               # batch folded; one fused step
        in_specs=[full_spec(a) for a in operands],
        out_specs=pl.BlockSpec((B * Sf, Vp), lambda i: (0, 0)),
        compiler_params=pltpu.CompilerParams(
            dimension_semantics=("arbitrary",)),
    )(*operands)

    return out.reshape(B, Sf, Vp)[:, :, :V]       # slice padded lanes back to V


# ----------------------------- parameter init -------------------------------

def _dense(key, fan_in, fan_out):
    kw, kb = jax.random.split(key)
    w = jax.random.normal(kw, (fan_in, fan_out), jnp.float32) * 0.02
    b = jax.random.normal(kb, (fan_out,), jnp.float32) * 0.02
    return w, b


def init_params(key, cfg):
    H = cfg["hidden_size"]
    F = cfg["input_size"]
    keys = iter(jax.random.split(key, 64))
    p = {}
    p["day_emb"] = jax.random.normal(next(keys), (75, cfg["day_emb"]), jnp.float32) * 0.02
    p["time_emb"] = jax.random.normal(next(keys), (48, cfg["time_emb"]), jnp.float32) * 0.02
    p["dow_emb"] = jax.random.normal(next(keys), (7, cfg["dow_emb"]), jnp.float32) * 0.02
    p["weekday_emb"] = jax.random.normal(next(keys), (2, cfg["weekday_emb"]), jnp.float32) * 0.02
    p["loc_emb"] = jax.random.normal(next(keys), (cfg["num_location_ids"], cfg["loc_emb"]), jnp.float32) * 0.02

    p["in_ln_g"] = jnp.ones((F,), jnp.float32)
    p["in_ln_b"] = jnp.zeros((F,), jnp.float32)

    p["res_w"], p["res_b"] = _dense(next(keys), F, H)
    p["proj_w"], p["proj_b"] = _dense(next(keys), F, H)

    sa = {}
    sa["wq"], sa["bq"] = _dense(next(keys), H, H)
    sa["wk"], sa["bk"] = _dense(next(keys), H, H)
    sa["wv"], sa["bv"] = _dense(next(keys), H, H)
    sa["dense_w"], sa["dense_b"] = _dense(next(keys), H, H)
    sa["ln_g"] = jnp.ones((H,), jnp.float32)
    sa["ln_b"] = jnp.zeros((H,), jnp.float32)
    p["selfattn"] = sa

    p["bert_pos_emb"] = jax.random.normal(next(keys), (cfg["max_seq_length"], H), jnp.float32) * 0.02
    p["bert_tok_emb"] = jax.random.normal(next(keys), (2, H), jnp.float32) * 0.02
    p["bert_emb_ln_g"] = jnp.ones((H,), jnp.float32)
    p["bert_emb_ln_b"] = jnp.zeros((H,), jnp.float32)

    layers = []
    for _ in range(cfg["bert_layers"]):
        lp = {}
        lp["wq"], lp["bq"] = _dense(next(keys), H, H)
        lp["wk"], lp["bk"] = _dense(next(keys), H, H)
        lp["wv"], lp["bv"] = _dense(next(keys), H, H)
        lp["ao_w"], lp["ao_b"] = _dense(next(keys), H, H)
        lp["ao_ln_g"] = jnp.ones((H,), jnp.float32)
        lp["ao_ln_b"] = jnp.zeros((H,), jnp.float32)
        lp["inter_w"], lp["inter_b"] = _dense(next(keys), H, cfg["intermediate_size"])
        lp["out_w"], lp["out_b"] = _dense(next(keys), cfg["intermediate_size"], H)
        lp["out_ln_g"] = jnp.ones((H,), jnp.float32)
        lp["out_ln_b"] = jnp.zeros((H,), jnp.float32)
        layers.append(lp)
    p["bert_layers"] = layers

    E = cfg["num_experts"]
    kwe, kbe, kwg, kbg = jax.random.split(next(keys), 4)
    p["moe"] = {
        "we": jax.random.normal(kwe, (E, H, H), jnp.float32) * 0.02,
        "be": jax.random.normal(kbe, (E, 1, H), jnp.float32) * 0.02,
        "wg": jax.random.normal(kwg, (H, E), jnp.float32) * 0.02,
        "bg": jax.random.normal(kbg, (1, E), jnp.float32) * 0.02,
    }

    p["out_proj_w"], p["out_proj_b"] = _dense(next(keys), H, cfg["num_location_ids"])
    return p


# ----------------------------- main ------------------------------------------

if __name__ == "__main__":
    cfg = dict(
        num_location_ids=64,
        hidden_size=32,
        attention_heads=4,       # custom SelfAttention heads
        bert_heads=4,            # BERT encoder heads (small, divisible config)
        bert_layers=2,           # reduced from 24 for the synthetic run
        intermediate_size=64,
        day_emb=8, time_emb=8, dow_emb=8, weekday_emb=4, loc_emb=16,
        num_experts=4,           # E*H = 128 -> lane-dense stacked expert matmul
        max_seq_length=16,
    )
    cfg["input_size"] = (cfg["day_emb"] + cfg["time_emb"] + cfg["dow_emb"]
                         + cfg["weekday_emb"] + cfg["loc_emb"] + 1)

    B, Sh, Sf = 2, 8, 8          # S = 16 keeps per-batch rows sublane-aligned
    key = jax.random.PRNGKey(0)
    kp, k1, k2, k3 = jax.random.split(key, 4)
    params = init_params(kp, cfg)

    def make_feat(k, seq_len):
        ks = jax.random.split(k, 6)
        days = jax.random.randint(ks[0], (B, seq_len, 1), 0, 75)
        times = jax.random.randint(ks[1], (B, seq_len, 1), 0, 48)
        unused = jnp.zeros((B, seq_len, 1), jnp.int32)
        dow = jax.random.randint(ks[2], (B, seq_len, 1), 0, 7)
        wd = jax.random.randint(ks[3], (B, seq_len, 1), 0, 2)
        delta = jax.random.randint(ks[4], (B, seq_len, 1), 0, 10)
        return jnp.concatenate([days, times, unused, dow, wd, delta],
                               axis=-1).astype(jnp.int32)

    input_seq_feature = make_feat(k1, Sh)
    predict_seq_feature = make_feat(k2, Sf)
    historical_locations = jax.random.randint(
        k3, (B, Sh), 0, cfg["num_location_ids"]).astype(jnp.int32)

    fwd = jax.jit(lambda p, a, b, c: mobility_bert_moe_forward(p, cfg, a, b, c))
    logits = fwd(params, input_seq_feature, historical_locations, predict_seq_feature)
    logits = jax.block_until_ready(logits)

    assert logits.shape == (B, Sf, cfg["num_location_ids"])
    assert bool(jnp.all(jnp.isfinite(logits)))
    print("KERNEL_OK")
</pallas_src>

<mosaic_0001>
module attributes {stable_mosaic.version = 11 : i64} {
  func.func @_fused_forward_kernel(%arg0: i32, %arg1: memref<32x45xf32, #tpu.memory_space<vmem>>, %arg2: memref<45x32xf32, #tpu.memory_space<vmem>>, %arg3: memref<32x96xf32, #tpu.memory_space<vmem>>, %arg4: memref<32x32xf32, #tpu.memory_space<vmem>>, %arg5: memref<32x32xf32, #tpu.memory_space<vmem>>, %arg6: memref<2x32x96xf32, #tpu.memory_space<vmem>>, %arg7: memref<2x32x32xf32, #tpu.memory_space<vmem>>, %arg8: memref<2x32x64xf32, #tpu.memory_space<vmem>>, %arg9: memref<2x64x32xf32, #tpu.memory_space<vmem>>, %arg10: memref<32x128xf32, #tpu.memory_space<vmem>>, %arg11: memref<32x4xf32, #tpu.memory_space<vmem>>, %arg12: memref<4x128xf32, #tpu.memory_space<vmem>>, %arg13: memref<128x128xf32, #tpu.memory_space<vmem>>, %arg14: memref<28x128xf32, #tpu.memory_space<vmem>>, %arg15: memref<16x128xf32, #tpu.memory_space<vmem>>) attributes {dimension_semantics = [#tpu.dimension_semantics<arbitrary>], iteration_bounds = array<i64: 1>, scalar_prefetch = 0 : i64, scratch_operands = 0 : i64, tpu.core_type = #tpu.core_type<tc>, window_params = [{pipeline_mode = #tpu.pipeline_mode<synchronous>, transform_indices = @transform_0, window_bounds = array<i64: 32, 45>}, {pipeline_mode = #tpu.pipeline_mode<synchronous>, transform_indices = @transform_1, window_bounds = array<i64: 45, 32>}, {pipeline_mode = #tpu.pipeline_mode<synchronous>, transform_indices = @transform_2, window_bounds = array<i64: 32, 96>}, {pipeline_mode = #tpu.pipeline_mode<synchronous>, transform_indices = @transform_3, window_bounds = array<i64: 32, 32>}, {pipeline_mode = #tpu.pipeline_mode<synchronous>, transform_indices = @transform_4, window_bounds = array<i64: 32, 32>}, {pipeline_mode = #tpu.pipeline_mode<synchronous>, transform_indices = @transform_5, window_bounds = array<i64: 2, 32, 96>}, {pipeline_mode = #tpu.pipeline_mode<synchronous>, transform_indices = @transform_6, window_bounds = array<i64: 2, 32, 32>}, {pipeline_mode = #tpu.pipeline_mode<synchronous>, transform_indices = @transform_7, window_bounds = array<i64: 2, 32, 64>}, {pipeline_mode = #tpu.pipeline_mode<synchronous>, transform_indices = @transform_8, window_bounds = array<i64: 2, 64, 32>}, {pipeline_mode = #tpu.pipeline_mode<synchronous>, transform_indices = @transform_9, window_bounds = array<i64: 32, 128>}, {pipeline_mode = #tpu.pipeline_mode<synchronous>, transform_indices = @transform_10, window_bounds = array<i64: 32, 4>}, {pipeline_mode = #tpu.pipeline_mode<synchronous>, transform_indices = @transform_11, window_bounds = array<i64: 4, 128>}, {pipeline_mode = #tpu.pipeline_mode<synchronous>, transform_indices = @transform_12, window_bounds = array<i64: 128, 128>}, {pipeline_mode = #tpu.pipeline_mode<synchronous>, transform_indices = @transform_13, window_bounds = array<i64: 28, 128>}, {pipeline_mode = #tpu.pipeline_mode<synchronous>, transform_indices = @transform_14, window_bounds = array<i64: 16, 128>}]} {
    %c0 = arith.constant 0 : index
    %c0_0 = arith.constant 0 : index
    %0 = vector.load %arg1[%c0, %c0_0] : memref<32x45xf32, #tpu.memory_space<vmem>>, vector<32x45xf32>
    %c0_1 = arith.constant 0 : index
    %c0_2 = arith.constant 0 : index
    %1 = vector.load %arg14[%c0_1, %c0_2] : memref<28x128xf32, #tpu.memory_space<vmem>>, vector<1x45xf32>
    %c1 = arith.constant 1 : index
    %c0_3 = arith.constant 0 : index
    %2 = vector.load %arg14[%c1, %c0_3] : memref<28x128xf32, #tpu.memory_space<vmem>>, vector<1x45xf32>
    %cst = arith.constant dense<0.000000e+00> : vector<32xf32>
    %3 = vector.multi_reduction <add>, %0, %cst [1] : vector<32x45xf32> to vector<32xf32>
    %4 = vector.shape_cast %3 : vector<32xf32> to vector<32x1xf32>
    %cst_4 = arith.constant 4.500000e+01 : f32
    %5 = vector.broadcast %cst_4 : f32 to vector<32x1xf32>
    %6 = arith.divf %4, %5 : vector<32x1xf32>
    %7 = vector.broadcast %6 : vector<32x1xf32> to vector<32x45xf32>
    %8 = arith.subf %0, %7 : vector<32x45xf32>
    %9 = arith.mulf %8, %8 : vector<32x45xf32>
    %cst_5 = arith.constant dense<0.000000e+00> : vector<32xf32>
    %10 = vector.multi_reduction <add>, %9, %cst_5 [1] : vector<32x45xf32> to vector<32xf32>
    %11 = vector.shape_cast %10 : vector<32xf32> to vector<32x1xf32>
    %cst_6 = arith.constant 4.500000e+01 : f32
    %12 = vector.broadcast %cst_6 : f32 to vector<32x1xf32>
    %13 = arith.divf %11, %12 : vector<32x1xf32>
    %14 = vector.broadcast %6 : vector<32x1xf32> to vector<32x45xf32>
    %15 = arith.subf %0, %14 : vector<32x45xf32>
    %cst_7 = arith.constant 9.99999974E-6 : f32
    %16 = vector.broadcast %cst_7 : f32 to vector<32x1xf32>
    %17 = arith.addf %13, %16 : vector<32x1xf32>
    %18 = math.rsqrt %17 : vector<32x1xf32>
    %19 = vector.broadcast %18 : vector<32x1xf32> to vector<32x45xf32>
    %20 = arith.mulf %15, %19 : vector<32x45xf32>
    %21 = vector.broadcast %1 : vector<1x45xf32> to vector<32x45xf32>
    %22 = arith.mulf %20, %21 : vector<32x45xf32>
    %23 = vector.broadcast %2 : vector<1x45xf32> to vector<32x45xf32>
    %24 = arith.addf %22, %23 : vector<32x45xf32>
    %c0_8 = arith.constant 0 : index
    %c0_9 = arith.constant 0 : index
    %25 = vector.load %arg2[%c0_8, %c0_9] : memref<45x32xf32, #tpu.memory_space<vmem>>, vector<45x32xf32>
    %cst_10 = arith.constant dense<0.000000e+00> : vector<32x32xf32>
    %26 = tpu.matmul %24, %25, %cst_10 {dimension_numbers = #tpu.dot_dimension_numbers<[1], [0], [0], [1], [0, 0, 1, 1], [], []>} : vector<32x45xf32>, vector<45x32xf32>, vector<32x32xf32> -> vector<32x32xf32>
    %c2 = arith.constant 2 : index
    %c0_11 = arith.constant 0 : index
    %27 = vector.load %arg14[%c2, %c0_11] : memref<28x128xf32, #tpu.memory_space<vmem>>, vector<1x32xf32>
    %28 = vector.broadcast %27 : vector<1x32xf32> to vector<32x32xf32>
    %29 = arith.addf %26, %28 : vector<32x32xf32>
    %c0_12 = arith.constant 0 : index
    %c0_13 = arith.constant 0 : index
    %30 = vector.load %arg3[%c0_12, %c0_13] : memref<32x96xf32, #tpu.memory_space<vmem>>, vector<32x96xf32>
    %c3 = arith.constant 3 : index
    %c0_14 = arith.constant 0 : index
    %31 = vector.load %arg14[%c3, %c0_14] : memref<28x128xf32, #tpu.memory_space<vmem>>, vector<1x96xf32>
    %cst_15 = arith.constant dense<0.000000e+00> : vector<32x96xf32>
    %32 = tpu.matmul %29, %30, %cst_15 {dimension_numbers = #tpu.dot_dimension_numbers<[1], [0], [0], [1], [0, 0, 1, 1], [], []>} : vector<32x32xf32>, vector<32x96xf32>, vector<32x96xf32> -> vector<32x96xf32>
    %33 = vector.broadcast %31 : vector<1x96xf32> to vector<32x96xf32>
    %34 = arith.addf %32, %33 : vector<32x96xf32>
    %35 = vector.extract_strided_slice %34 {offsets = [0, 0], sizes = [16, 96], strides = [1, 1]} : vector<32x96xf32> to vector<16x96xf32>
    %36 = vector.extract_strided_slice %35 {offsets = [0, 0], sizes = [16, 32], strides = [1, 1]} : vector<16x96xf32> to vector<16x32xf32>
    %cst_16 = arith.constant 0.353553385 : f32
    %37 = vector.broadcast %cst_16 : f32 to vector<16x32xf32>
    %38 = arith.mulf %36, %37 : vector<16x32xf32>
    %39 = vector.extract_strided_slice %35 {offsets = [0, 32], sizes = [16, 32], strides = [1, 1]} : vector<16x96xf32> to vector<16x32xf32>
    %40 = vector.extract_strided_slice %35 {offsets = [0, 64], sizes = [16, 32], strides = [1, 1]} : vector<16x96xf32> to vector<16x32xf32>
    %41 = vector.extract_strided_slice %38 {offsets = [0, 0], sizes = [16, 8], strides = [1, 1]} : vector<16x32xf32> to vector<16x8xf32>
    %42 = vector.extract_strided_slice %39 {offsets = [0, 0], sizes = [16, 8], strides = [1, 1]} : vector<16x32xf32> to vector<16x8xf32>
    %cst_17 = arith.constant dense<0.000000e+00> : vector<16x16xf32>
    %43 = tpu.matmul %41, %42, %cst_17 {dimension_numbers = #tpu.dot_dimension_numbers<[1], [1], [0], [0], [0, 0, 1, 0], [], []>} : vector<16x8xf32>, vector<16x8xf32>, vector<16x16xf32> -> vector<16x16xf32>
    %cst_18 = arith.constant dense<0xFF800000> : vector<16xf32>
    %44 = vector.multi_reduction <maximumf>, %43, %cst_18 [1] : vector<16x16xf32> to vector<16xf32>
    %45 = vector.shape_cast %44 : vector<16xf32> to vector<16x1xf32>
    %46 = vector.broadcast %45 : vector<16x1xf32> to vector<16x16xf32>
    %47 = arith.subf %43, %46 : vector<16x16xf32>
    %48 = math.exp %47 : vector<16x16xf32>
    %cst_19 = arith.constant dense<0.000000e+00> : vector<16xf32>
    %49 = vector.multi_reduction <add>, %48, %cst_19 [1] : vector<16x16xf32> to vector<16xf32>
    %50 = vector.shape_cast %49 : vector<16xf32> to vector<16x1xf32>
    %51 = tpu.reciprocal %50 {approx = true} : vector<16x1xf32> -> vector<16x1xf32>
    %52 = vector.broadcast %51 : vector<16x1xf32> to vector<16x16xf32>
    %53 = arith.mulf %48, %52 : vector<16x16xf32>
    %54 = vector.extract_strided_slice %40 {offsets = [0, 0], sizes = [16, 8], strides = [1, 1]} : vector<16x32xf32> to vector<16x8xf32>
    %cst_20 = arith.constant dense<0.000000e+00> : vector<16x8xf32>
    %55 = tpu.matmul %53, %54, %cst_20 {dimension_numbers = #tpu.dot_dimension_numbers<[1], [0], [0], [1], [0, 0, 1, 1], [], []>} : vector<16x16xf32>, vector<16x8xf32>, vector<16x8xf32> -> vector<16x8xf32>
    %56 = vector.extract_strided_slice %38 {offsets = [0, 8], sizes = [16, 8], strides = [1, 1]} : vector<16x32xf32> to vector<16x8xf32>
    %57 = vector.extract_strided_slice %39 {offsets = [0, 8], sizes = [16, 8], strides = [1, 1]} : vector<16x32xf32> to vector<16x8xf32>
    %cst_21 = arith.constant dense<0.000000e+00> : vector<16x16xf32>
    %58 = tpu.matmul %56, %57, %cst_21 {dimension_numbers = #tpu.dot_dimension_numbers<[1], [1], [0], [0], [0, 0, 1, 0], [], []>} : vector<16x8xf32>, vector<16x8xf32>, vector<16x16xf32> -> vector<16x16xf32>
    %cst_22 = arith.constant dense<0xFF800000> : vector<16xf32>
    %59 = vector.multi_reduction <maximumf>, %58, %cst_22 [1] : vector<16x16xf32> to vector<16xf32>
    %60 = vector.shape_cast %59 : vector<16xf32> to vector<16x1xf32>
    %61 = vector.broadcast %60 : vector<16x1xf32> to vector<16x16xf32>
    %62 = arith.subf %58, %61 : vector<16x16xf32>
    %63 = math.exp %62 : vector<16x16xf32>
    %cst_23 = arith.constant dense<0.000000e+00> : vector<16xf32>
    %64 = vector.multi_reduction <add>, %63, %cst_23 [1] : vector<16x16xf32> to vector<16xf32>
    %65 = vector.shape_cast %64 : vector<16xf32> to vector<16x1xf32>
    %66 = tpu.reciprocal %65 {approx = true} : vector<16x1xf32> -> vector<16x1xf32>
    %67 = vector.broadcast %66 : vector<16x1xf32> to vector<16x16xf32>
    %68 = arith.mulf %63, %67 : vector<16x16xf32>
    %69 = vector.extract_strided_slice %40 {offsets = [0, 8], sizes = [16, 8], strides = [1, 1]} : vector<16x32xf32> to vector<16x8xf32>
    %cst_24 = arith.constant dense<0.000000e+00> : vector<16x8xf32>
    %70 = tpu.matmul %68, %69, %cst_24 {dimension_numbers = #tpu.dot_dimension_numbers<[1], [0], [0], [1], [0, 0, 1, 1], [], []>} : vector<16x16xf32>, vector<16x8xf32>, vector<16x8xf32> -> vector<16x8xf32>
    %71 = vector.extract_strided_slice %38 {offsets = [0, 16], sizes = [16, 8], strides = [1, 1]} : vector<16x32xf32> to vector<16x8xf32>
    %72 = vector.extract_strided_slice %39 {offsets = [0, 16], sizes = [16, 8], strides = [1, 1]} : vector<16x32xf32> to vector<16x8xf32>
    %cst_25 = arith.constant dense<0.000000e+00> : vector<16x16xf32>
    %73 = tpu.matmul %71, %72, %cst_25 {dimension_numbers = #tpu.dot_dimension_numbers<[1], [1], [0], [0], [0, 0, 1, 0], [], []>} : vector<16x8xf32>, vector<16x8xf32>, vector<16x16xf32> -> vector<16x16xf32>
    %cst_26 = arith.constant dense<0xFF800000> : vector<16xf32>
    %74 = vector.multi_reduction <maximumf>, %73, %cst_26 [1] : vector<16x16xf32> to vector<16xf32>
    %75 = vector.shape_cast %74 : vector<16xf32> to vector<16x1xf32>
    %76 = vector.broadcast %75 : vector<16x1xf32> to vector<16x16xf32>
    %77 = arith.subf %73, %76 : vector<16x16xf32>
    %78 = math.exp %77 : vector<16x16xf32>
    %cst_27 = arith.constant dense<0.000000e+00> : vector<16xf32>
    %79 = vector.multi_reduction <add>, %78, %cst_27 [1] : vector<16x16xf32> to vector<16xf32>
    %80 = vector.shape_cast %79 : vector<16xf32> to vector<16x1xf32>
    %81 = tpu.reciprocal %80 {approx = true} : vector<16x1xf32> -> vector<16x1xf32>
    %82 = vector.broadcast %81 : vector<16x1xf32> to vector<16x16xf32>
    %83 = arith.mulf %78, %82 : vector<16x16xf32>
    %84 = vector.extract_strided_slice %40 {offsets = [0, 16], sizes = [16, 8], strides = [1, 1]} : vector<16x32xf32> to vector<16x8xf32>
    %cst_28 = arith.constant dense<0.000000e+00> : vector<16x8xf32>
    %85 = tpu.matmul %83, %84, %cst_28 {dimension_numbers = #tpu.dot_dimension_numbers<[1], [0], [0], [1], [0, 0, 1, 1], [], []>} : vector<16x16xf32>, vector<16x8xf32>, vector<16x8xf32> -> vector<16x8xf32>
    %86 = vector.extract_strided_slice %38 {offsets = [0, 24], sizes = [16, 8], strides = [1, 1]} : vector<16x32xf32> to vector<16x8xf32>
    %87 = vector.extract_strided_slice %39 {offsets = [0, 24], sizes = [16, 8], strides = [1, 1]} : vector<16x32xf32> to vector<16x8xf32>
    %cst_29 = arith.constant dense<0.000000e+00> : vector<16x16xf32>
    %88 = tpu.matmul %86, %87, %cst_29 {dimension_numbers = #tpu.dot_dimension_numbers<[1], [1], [0], [0], [0, 0, 1, 0], [], []>} : vector<16x8xf32>, vector<16x8xf32>, vector<16x16xf32> -> vector<16x16xf32>
    %cst_30 = arith.constant dense<0xFF800000> : vector<16xf32>
    %89 = vector.multi_reduction <maximumf>, %88, %cst_30 [1] : vector<16x16xf32> to vector<16xf32>
    %90 = vector.shape_cast %89 : vector<16xf32> to vector<16x1xf32>
    %91 = vector.broadcast %90 : vector<16x1xf32> to vector<16x16xf32>
    %92 = arith.subf %88, %91 : vector<16x16xf32>
    %93 = math.exp %92 : vector<16x16xf32>
    %cst_31 = arith.constant dense<0.000000e+00> : vector<16xf32>
    %94 = vector.multi_reduction <add>, %93, %cst_31 [1] : vector<16x16xf32> to vector<16xf32>
    %95 = vector.shape_cast %94 : vector<16xf32> to vector<16x1xf32>
    %96 = tpu.reciprocal %95 {approx = true} : vector<16x1xf32> -> vector<16x1xf32>
    %97 = vector.broadcast %96 : vector<16x1xf32> to vector<16x16xf32>
    %98 = arith.mulf %93, %97 : vector<16x16xf32>
    %99 = vector.extract_strided_slice %40 {offsets = [0, 24], sizes = [16, 8], strides = [1, 1]} : vector<16x32xf32> to vector<16x8xf32>
    %cst_32 = arith.constant dense<0.000000e+00> : vector<16x8xf32>
    %100 = tpu.matmul %98, %99, %cst_32 {dimension_numbers = #tpu.dot_dimension_numbers<[1], [0], [0], [1], [0, 0, 1, 1], [], []>} : vector<16x16xf32>, vector<16x8xf32>, vector<16x8xf32> -> vector<16x8xf32>
    %101 = tpu.concatenate %55, %70, %85, %100 in 1 : vector<16x8xf32>, vector<16x8xf32>, vector<16x8xf32>, vector<16x8xf32> -> vector<16x32xf32>
    %102 = vector.extract_strided_slice %34 {offsets = [16, 0], sizes = [16, 96], strides = [1, 1]} : vector<32x96xf32> to vector<16x96xf32>
    %103 = vector.extract_strided_slice %102 {offsets = [0, 0], sizes = [16, 32], strides = [1, 1]} : vector<16x96xf32> to vector<16x32xf32>
    %cst_33 = arith.constant 0.353553385 : f32
    %104 = vector.broadcast %cst_33 : f32 to vector<16x32xf32>
    %105 = arith.mulf %103, %104 : vector<16x32xf32>
    %106 = vector.extract_strided_slice %102 {offsets = [0, 32], sizes = [16, 32], strides = [1, 1]} : vector<16x96xf32> to vector<16x32xf32>
    %107 = vector.extract_strided_slice %102 {offsets = [0, 64], sizes = [16, 32], strides = [1, 1]} : vector<16x96xf32> to vector<16x32xf32>
    %108 = vector.extract_strided_slice %105 {offsets = [0, 0], sizes = [16, 8], strides = [1, 1]} : vector<16x32xf32> to vector<16x8xf32>
    %109 = vector.extract_strided_slice %106 {offsets = [0, 0], sizes = [16, 8], strides = [1, 1]} : vector<16x32xf32> to vector<16x8xf32>
    %cst_34 = arith.constant dense<0.000000e+00> : vector<16x16xf32>
    %110 = tpu.matmul %108, %109, %cst_34 {dimension_numbers = #tpu.dot_dimension_numbers<[1], [1], [0], [0], [0, 0, 1, 0], [], []>} : vector<16x8xf32>, vector<16x8xf32>, vector<16x16xf32> -> vector<16x16xf32>
    %cst_35 = arith.constant dense<0xFF800000> : vector<16xf32>
    %111 = vector.multi_reduction <maximumf>, %110, %cst_35 [1] : vector<16x16xf32> to vector<16xf32>
    %112 = vector.shape_cast %111 : vector<16xf32> to vector<16x1xf32>
    %113 = vector.broadcast %112 : vector<16x1xf32> to vector<16x16xf32>
    %114 = arith.subf %110, %113 : vector<16x16xf32>
    %115 = math.exp %114 : vector<16x16xf32>
    %cst_36 = arith.constant dense<0.000000e+00> : vector<16xf32>
    %116 = vector.multi_reduction <add>, %115, %cst_36 [1] : vector<16x16xf32> to vector<16xf32>
    %117 = vector.shape_cast %116 : vector<16xf32> to vector<16x1xf32>
    %118 = tpu.reciprocal %117 {approx = true} : vector<16x1xf32> -> vector<16x1xf32>
    %119 = vector.broadcast %118 : vector<16x1xf32> to vector<16x16xf32>
    %120 = arith.mulf %115, %119 : vector<16x16xf32>
    %121 = vector.extract_strided_slice %107 {offsets = [0, 0], sizes = [16, 8], strides = [1, 1]} : vector<16x32xf32> to vector<16x8xf32>
    %cst_37 = arith.constant dense<0.000000e+00> : vector<16x8xf32>
    %122 = tpu.matmul %120, %121, %cst_37 {dimension_numbers = #tpu.dot_dimension_numbers<[1], [0], [0], [1], [0, 0, 1, 1], [], []>} : vector<16x16xf32>, vector<16x8xf32>, vector<16x8xf32> -> vector<16x8xf32>
    %123 = vector.extract_strided_slice %105 {offsets = [0, 8], sizes = [16, 8], strides = [1, 1]} : vector<16x32xf32> to vector<16x8xf32>
    %124 = vector.extract_strided_slice %106 {offsets = [0, 8], sizes = [16, 8], strides = [1, 1]} : vector<16x32xf32> to vector<16x8xf32>
    %cst_38 = arith.constant dense<0.000000e+00> : vector<16x16xf32>
    %125 = tpu.matmul %123, %124, %cst_38 {dimension_numbers = #tpu.dot_dimension_numbers<[1], [1], [0], [0], [0, 0, 1, 0], [], []>} : vector<16x8xf32>, vector<16x8xf32>, vector<16x16xf32> -> vector<16x16xf32>
    %cst_39 = arith.constant dense<0xFF800000> : vector<16xf32>
    %126 = vector.multi_reduction <maximumf>, %125, %cst_39 [1] : vector<16x16xf32> to vector<16xf32>
    %127 = vector.shape_cast %126 : vector<16xf32> to vector<16x1xf32>
    %128 = vector.broadcast %127 : vector<16x1xf32> to vector<16x16xf32>
    %129 = arith.subf %125, %128 : vector<16x16xf32>
    %130 = math.exp %129 : vector<16x16xf32>
    %cst_40 = arith.constant dense<0.000000e+00> : vector<16xf32>
    %131 = vector.multi_reduction <add>, %130, %cst_40 [1] : vector<16x16xf32> to vector<16xf32>
    %132 = vector.shape_cast %131 : vector<16xf32> to vector<16x1xf32>
    %133 = tpu.reciprocal %132 {approx = true} : vector<16x1xf32> -> vector<16x1xf32>
    %134 = vector.broadcast %133 : vector<16x1xf32> to vector<16x16xf32>
    %135 = arith.mulf %130, %134 : vector<16x16xf32>
    %136 = vector.extract_strided_slice %107 {offsets = [0, 8], sizes = [16, 8], strides = [1, 1]} : vector<16x32xf32> to vector<16x8xf32>
    %cst_41 = arith.constant dense<0.000000e+00> : vector<16x8xf32>
    %137 = tpu.matmul %135, %136, %cst_41 {dimension_numbers = #tpu.dot_dimension_numbers<[1], [0], [0], [1], [0, 0, 1, 1], [], []>} : vector<16x16xf32>, vector<16x8xf32>, vector<16x8xf32> -> vector<16x8xf32>
    %138 = vector.extract_strided_slice %105 {offsets = [0, 16], sizes = [16, 8], strides = [1, 1]} : vector<16x32xf32> to vector<16x8xf32>
    %139 = vector.extract_strided_slice %106 {offsets = [0, 16], sizes = [16, 8], strides = [1, 1]} : vector<16x32xf32> to vector<16x8xf32>
    %cst_42 = arith.constant dense<0.000000e+00> : vector<16x16xf32>
    %140 = tpu.matmul %138, %139, %cst_42 {dimension_numbers = #tpu.dot_dimension_numbers<[1], [1], [0], [0], [0, 0, 1, 0], [], []>} : vector<16x8xf32>, vector<16x8xf32>, vector<16x16xf32> -> vector<16x16xf32>
    %cst_43 = arith.constant dense<0xFF800000> : vector<16xf32>
    %141 = vector.multi_reduction <maximumf>, %140, %cst_43 [1] : vector<16x16xf32> to vector<16xf32>
    %142 = vector.shape_cast %141 : vector<16xf32> to vector<16x1xf32>
    %143 = vector.broadcast %142 : vector<16x1xf32> to vector<16x16xf32>
    %144 = arith.subf %140, %143 : vector<16x16xf32>
    %145 = math.exp %144 : vector<16x16xf32>
    %cst_44 = arith.constant dense<0.000000e+00> : vector<16xf32>
    %146 = vector.multi_reduction <add>, %145, %cst_44 [1] : vector<16x16xf32> to vector<16xf32>
    %147 = vector.shape_cast %146 : vector<16xf32> to vector<16x1xf32>
    %148 = tpu.reciprocal %147 {approx = true} : vector<16x1xf32> -> vector<16x1xf32>
    %149 = vector.broadcast %148 : vector<16x1xf32> to vector<16x16xf32>
    %150 = arith.mulf %145, %149 : vector<16x16xf32>
    %151 = vector.extract_strided_slice %107 {offsets = [0, 16], sizes = [16, 8], strides = [1, 1]} : vector<16x32xf32> to vector<16x8xf32>
    %cst_45 = arith.constant dense<0.000000e+00> : vector<16x8xf32>
    %152 = tpu.matmul %150, %151, %cst_45 {dimension_numbers = #tpu.dot_dimension_numbers<[1], [0], [0], [1], [0, 0, 1, 1], [], []>} : vector<16x16xf32>, vector<16x8xf32>, vector<16x8xf32> -> vector<16x8xf32>
    %153 = vector.extract_strided_slice %105 {offsets = [0, 24], sizes = [16, 8], strides = [1, 1]} : vector<16x32xf32> to vector<16x8xf32>
    %154 = vector.extract_strided_slice %106 {offsets = [0, 24], sizes = [16, 8], strides = [1, 1]} : vector<16x32xf32> to vector<16x8xf32>
    %cst_46 = arith.constant dense<0.000000e+00> : vector<16x16xf32>
    %155 = tpu.matmul %153, %154, %cst_46 {dimension_numbers = #tpu.dot_dimension_numbers<[1], [1], [0], [0], [0, 0, 1, 0], [], []>} : vector<16x8xf32>, vector<16x8xf32>, vector<16x16xf32> -> vector<16x16xf32>
    %cst_47 = arith.constant dense<0xFF800000> : vector<16xf32>
    %156 = vector.multi_reduction <maximumf>, %155, %cst_47 [1] : vector<16x16xf32> to vector<16xf32>
    %157 = vector.shape_cast %156 : vector<16xf32> to vector<16x1xf32>
    %158 = vector.broadcast %157 : vector<16x1xf32> to vector<16x16xf32>
    %159 = arith.subf %155, %158 : vector<16x16xf32>
    %160 = math.exp %159 : vector<16x16xf32>
    %cst_48 = arith.constant dense<0.000000e+00> : vector<16xf32>
    %161 = vector.multi_reduction <add>, %160, %cst_48 [1] : vector<16x16xf32> to vector<16xf32>
    %162 = vector.shape_cast %161 : vector<16xf32> to vector<16x1xf32>
    %163 = tpu.reciprocal %162 {approx = true} : vector<16x1xf32> -> vector<16x1xf32>
    %164 = vector.broadcast %163 : vector<16x1xf32> to vector<16x16xf32>
    %165 = arith.mulf %160, %164 : vector<16x16xf32>
    %166 = vector.extract_strided_slice %107 {offsets = [0, 24], sizes = [16, 8], strides = [1, 1]} : vector<16x32xf32> to vector<16x8xf32>
    %cst_49 = arith.constant dense<0.000000e+00> : vector<16x8xf32>
    %167 = tpu.matmul %165, %166, %cst_49 {dimension_numbers = #tpu.dot_dimension_numbers<[1], [0], [0], [1], [0, 0, 1, 1], [], []>} : vector<16x16xf32>, vector<16x8xf32>, vector<16x8xf32> -> vector<16x8xf32>
    %168 = tpu.concatenate %122, %137, %152, %167 in 1 : vector<16x8xf32>, vector<16x8xf32>, vector<16x8xf32>, vector<16x8xf32> -> vector<16x32xf32>
    %169 = tpu.concatenate %101, %168 in 0 : vector<16x32xf32>, vector<16x32xf32> -> vector<32x32xf32>
    %c0_50 = arith.constant 0 : index
    %c0_51 = arith.constant 0 : index
    %170 = vector.load %arg4[%c0_50, %c0_51] : memref<32x32xf32, #tpu.memory_space<vmem>>, vector<32x32xf32>
    %cst_52 = arith.constant dense<0.000000e+00> : vector<32x32xf32>
    %171 = tpu.matmul %169, %170, %cst_52 {dimension_numbers = #tpu.dot_dimension_numbers<[1], [0], [0], [1], [0, 0, 1, 1], [], []>} : vector<32x32xf32>, vector<32x32xf32>, vector<32x32xf32> -> vector<32x32xf32>
    %c4 = arith.constant 4 : index
    %c0_53 = arith.constant 0 : index
    %172 = vector.load %arg14[%c4, %c0_53] : memref<28x128xf32, #tpu.memory_space<vmem>>, vector<1x32xf32>
    %173 = vector.broadcast %172 : vector<1x32xf32> to vector<32x32xf32>
    %174 = arith.addf %171, %173 : vector<32x32xf32>
    %175 = arith.addf %174, %29 : vector<32x32xf32>
    %c5 = arith.constant 5 : index
    %c0_54 = arith.constant 0 : index
    %176 = vector.load %arg14[%c5, %c0_54] : memref<28x128xf32, #tpu.memory_space<vmem>>, vector<1x32xf32>
    %c6 = arith.constant 6 : index
    %c0_55 = arith.constant 0 : index
    %177 = vector.load %arg14[%c6, %c0_55] : memref<28x128xf32, #tpu.memory_space<vmem>>, vector<1x32xf32>
    %cst_56 = arith.constant dense<0.000000e+00> : vector<32xf32>
    %178 = vector.multi_reduction <add>, %175, %cst_56 [1] : vector<32x32xf32> to vector<32xf32>
    %179 = vector.shape_cast %178 : vector<32xf32> to vector<32x1xf32>
    %cst_57 = arith.constant 3.200000e+01 : f32
    %180 = vector.broadcast %cst_57 : f32 to vector<32x1xf32>
    %181 = arith.divf %179, %180 : vector<32x1xf32>
    %182 = vector.broadcast %181 : vector<32x1xf32> to vector<32x32xf32>
    %183 = arith.subf %175, %182 : vector<32x32xf32>
    %184 = arith.mulf %183, %183 : vector<32x32xf32>
    %cst_58 = arith.constant dense<0.000000e+00> : vector<32xf32>
    %185 = vector.multi_reduction <add>, %184, %cst_58 [1] : vector<32x32xf32> to vector<32xf32>
    %186 = vector.shape_cast %185 : vector<32xf32> to vector<32x1xf32>
    %cst_59 = arith.constant 3.200000e+01 : f32
    %187 = vector.broadcast %cst_59 : f32 to vector<32x1xf32>
    %188 = arith.divf %186, %187 : vector<32x1xf32>
    %189 = vector.broadcast %181 : vector<32x1xf32> to vector<32x32xf32>
    %190 = arith.subf %175, %189 : vector<32x32xf32>
    %cst_60 = arith.constant 9.99999974E-6 : f32
    %191 = vector.broadcast %cst_60 : f32 to vector<32x1xf32>
    %192 = arith.addf %188, %191 : vector<32x1xf32>
    %193 = math.rsqrt %192 : vector<32x1xf32>
    %194 = vector.broadcast %193 : vector<32x1xf32> to vector<32x32xf32>
    %195 = arith.mulf %190, %194 : vector<32x32xf32>
    %196 = vector.broadcast %176 : vector<1x32xf32> to vector<32x32xf32>
    %197 = arith.mulf %195, %196 : vector<32x32xf32>
    %198 = vector.broadcast %177 : vector<1x32xf32> to vector<32x32xf32>
    %199 = arith.addf %197, %198 : vector<32x32xf32>
    %c0_61 = arith.constant 0 : index
    %c0_62 = arith.constant 0 : index
    %200 = vector.load %arg5[%c0_61, %c0_62] : memref<32x32xf32, #tpu.memory_space<vmem>>, vector<32x32xf32>
    %201 = arith.addf %199, %200 : vector<32x32xf32>
    %c7 = arith.constant 7 : index
    %c0_63 = arith.constant 0 : index
    %202 = vector.load %arg14[%c7, %c0_63] : memref<28x128xf32, #tpu.memory_space<vmem>>, vector<1x32xf32>
    %c8 = arith.constant 8 : index
    %c0_64 = arith.constant 0 : index
    %203 = vector.load %arg14[%c8, %c0_64] : memref<28x128xf32, #tpu.memory_space<vmem>>, vector<1x32xf32>
    %cst_65 = arith.constant dense<0.000000e+00> : vector<32xf32>
    %204 = vector.multi_reduction <add>, %201, %cst_65 [1] : vector<32x32xf32> to vector<32xf32>
    %205 = vector.shape_cast %204 : vector<32xf32> to vector<32x1xf32>
    %cst_66 = arith.constant 3.200000e+01 : f32
    %206 = vector.broadcast %cst_66 : f32 to vector<32x1xf32>
    %207 = arith.divf %205, %206 : vector<32x1xf32>
    %208 = vector.broadcast %207 : vector<32x1xf32> to vector<32x32xf32>
    %209 = arith.subf %201, %208 : vector<32x32xf32>
    %210 = arith.mulf %209, %209 : vector<32x32xf32>
    %cst_67 = arith.constant dense<0.000000e+00> : vector<32xf32>
    %211 = vector.multi_reduction <add>, %210, %cst_67 [1] : vector<32x32xf32> to vector<32xf32>
    %212 = vector.shape_cast %211 : vector<32xf32> to vector<32x1xf32>
    %cst_68 = arith.constant 3.200000e+01 : f32
    %213 = vector.broadcast %cst_68 : f32 to vector<32x1xf32>
    %214 = arith.divf %212, %213 : vector<32x1xf32>
    %215 = vector.broadcast %207 : vector<32x1xf32> to vector<32x32xf32>
    %216 = arith.subf %201, %215 : vector<32x32xf32>
    %cst_69 = arith.constant 9.99999996E-13 : f32
    %217 = vector.broadcast %cst_69 : f32 to vector<32x1xf32>
    %218 = arith.addf %214, %217 : vector<32x1xf32>
    %219 = math.rsqrt %218 : vector<32x1xf32>
    %220 = vector.broadcast %219 : vector<32x1xf32> to vector<32x32xf32>
    %221 = arith.mulf %216, %220 : vector<32x32xf32>
    %222 = vector.broadcast %202 : vector<1x32xf32> to vector<32x32xf32>
    %223 = arith.mulf %221, %222 : vector<32x32xf32>
    %224 = vector.broadcast %203 : vector<1x32xf32> to vector<32x32xf32>
    %225 = arith.addf %223, %224 : vector<32x32xf32>
    %c0_70 = arith.constant 0 : index
    %c0_71 = arith.constant 0 : index
    %c0_72 = arith.constant 0 : index
    %226 = vector.load %arg6[%c0_70, %c0_71, %c0_72] : memref<2x32x96xf32, #tpu.memory_space<vmem>>, vector<1x32x96xf32>
    %227 = vector.shape_cast %226 : vector<1x32x96xf32> to vector<32x96xf32>
    %c9 = arith.constant 9 : index
    %c0_73 = arith.constant 0 : index
    %228 = vector.load %arg14[%c9, %c0_73] : memref<28x128xf32, #tpu.memory_space<vmem>>, vector<1x96xf32>
    %cst_74 = arith.constant dense<0.000000e+00> : vector<32x96xf32>
    %229 = tpu.matmul %225, %227, %cst_74 {dimension_numbers = #tpu.dot_dimension_numbers<[1], [0], [0], [1], [0, 0, 1, 1], [], []>} : vector<32x32xf32>, vector<32x96xf32>, vector<32x96xf32> -> vector<32x96xf32>
    %230 = vector.broadcast %228 : vector<1x96xf32> to vector<32x96xf32>
    %231 = arith.addf %229, %230 : vector<32x96xf32>
    %232 = vector.extract_strided_slice %231 {offsets = [0, 0], sizes = [16, 96], strides = [1, 1]} : vector<32x96xf32> to vector<16x96xf32>
    %233 = vector.extract_strided_slice %232 {offsets = [0, 0], sizes = [16, 32], strides = [1, 1]} : vector<16x96xf32> to vector<16x32xf32>
    %cst_75 = arith.constant 0.353553385 : f32
    %234 = vector.broadcast %cst_75 : f32 to vector<16x32xf32>
    %235 = arith.mulf %233, %234 : vector<16x32xf32>
    %236 = vector.extract_strided_slice %232 {offsets = [0, 32], sizes = [16, 32], strides = [1, 1]} : vector<16x96xf32> to vector<16x32xf32>
    %237 = vector.extract_strided_slice %232 {offsets = [0, 64], sizes = [16, 32], strides = [1, 1]} : vector<16x96xf32> to vector<16x32xf32>
    %238 = vector.extract_strided_slice %235 {offsets = [0, 0], sizes = [16, 8], strides = [1, 1]} : vector<16x32xf32> to vector<16x8xf32>
    %239 = vector.extract_strided_slice %236 {offsets = [0, 0], sizes = [16, 8], strides = [1, 1]} : vector<16x32xf32> to vector<16x8xf32>
    %cst_76 = arith.constant dense<0.000000e+00> : vector<16x16xf32>
    %240 = tpu.matmul %238, %239, %cst_76 {dimension_numbers = #tpu.dot_dimension_numbers<[1], [1], [0], [0], [0, 0, 1, 0], [], []>} : vector<16x8xf32>, vector<16x8xf32>, vector<16x16xf32> -> vector<16x16xf32>
    %cst_77 = arith.constant dense<0xFF800000> : vector<16xf32>
    %241 = vector.multi_reduction <maximumf>, %240, %cst_77 [1] : vector<16x16xf32> to vector<16xf32>
    %242 = vector.shape_cast %241 : vector<16xf32> to vector<16x1xf32>
    %243 = vector.broadcast %242 : vector<16x1xf32> to vector<16x16xf32>
    %244 = arith.subf %240, %243 : vector<16x16xf32>
    %245 = math.exp %244 : vector<16x16xf32>
    %cst_78 = arith.constant dense<0.000000e+00> : vector<16xf32>
    %246 = vector.multi_reduction <add>, %245, %cst_78 [1] : vector<16x16xf32> to vector<16xf32>
    %247 = vector.shape_cast %246 : vector<16xf32> to vector<16x1xf32>
    %248 = tpu.reciprocal %247 {approx = true} : vector<16x1xf32> -> vector<16x1xf32>
    %249 = vector.broadcast %248 : vector<16x1xf32> to vector<16x16xf32>
    %250 = arith.mulf %245, %249 : vector<16x16xf32>
    %251 = vector.extract_strided_slice %237 {offsets = [0, 0], sizes = [16, 8], strides = [1, 1]} : vector<16x32xf32> to vector<16x8xf32>
    %cst_79 = arith.constant dense<0.000000e+00> : vector<16x8xf32>
    %252 = tpu.matmul %250, %251, %cst_79 {dimension_numbers = #tpu.dot_dimension_numbers<[1], [0], [0], [1], [0, 0, 1, 1], [], []>} : vector<16x16xf32>, vector<16x8xf32>, vector<16x8xf32> -> vector<16x8xf32>
    %253 = vector.extract_strided_slice %235 {offsets = [0, 8], sizes = [16, 8], strides = [1, 1]} : vector<16x32xf32> to vector<16x8xf32>
    %254 = vector.extract_strided_slice %236 {offsets = [0, 8], sizes = [16, 8], strides = [1, 1]} : vector<16x32xf32> to vector<16x8xf32>
    %cst_80 = arith.constant dense<0.000000e+00> : vector<16x16xf32>
    %255 = tpu.matmul %253, %254, %cst_80 {dimension_numbers = #tpu.dot_dimension_numbers<[1], [1], [0], [0], [0, 0, 1, 0], [], []>} : vector<16x8xf32>, vector<16x8xf32>, vector<16x16xf32> -> vector<16x16xf32>
    %cst_81 = arith.constant dense<0xFF800000> : vector<16xf32>
    %256 = vector.multi_reduction <maximumf>, %255, %cst_81 [1] : vector<16x16xf32> to vector<16xf32>
    %257 = vector.shape_cast %256 : vector<16xf32> to vector<16x1xf32>
    %258 = vector.broadcast %257 : vector<16x1xf32> to vector<16x16xf32>
    %259 = arith.subf %255, %258 : vector<16x16xf32>
    %260 = math.exp %259 : vector<16x16xf32>
    %cst_82 = arith.constant dense<0.000000e+00> : vector<16xf32>
    %261 = vector.multi_reduction <add>, %260, %cst_82 [1] : vector<16x16xf32> to vector<16xf32>
    %262 = vector.shape_cast %261 : vector<16xf32> to vector<16x1xf32>
    %263 = tpu.reciprocal %262 {approx = true} : vector<16x1xf32> -> vector<16x1xf32>
    %264 = vector.broadcast %263 : vector<16x1xf32> to vector<16x16xf32>
    %265 = arith.mulf %260, %264 : vector<16x16xf32>
    %266 = vector.extract_strided_slice %237 {offsets = [0, 8], sizes = [16, 8], strides = [1, 1]} : vector<16x32xf32> to vector<16x8xf32>
    %cst_83 = arith.constant dense<0.000000e+00> : vector<16x8xf32>
    %267 = tpu.matmul %265, %266, %cst_83 {dimension_numbers = #tpu.dot_dimension_numbers<[1], [0], [0], [1], [0, 0, 1, 1], [], []>} : vector<16x16xf32>, vector<16x8xf32>, vector<16x8xf32> -> vector<16x8xf32>
    %268 = vector.extract_strided_slice %235 {offsets = [0, 16], sizes = [16, 8], strides = [1, 1]} : vector<16x32xf32> to vector<16x8xf32>
    %269 = vector.extract_strided_slice %236 {offsets = [0, 16], sizes = [16, 8], strides = [1, 1]} : vector<16x32xf32> to vector<16x8xf32>
    %cst_84 = arith.constant dense<0.000000e+00> : vector<16x16xf32>
    %270 = tpu.matmul %268, %269, %cst_84 {dimension_numbers = #tpu.dot_dimension_numbers<[1], [1], [0], [0], [0, 0, 1, 0], [], []>} : vector<16x8xf32>, vector<16x8xf32>, vector<16x16xf32> -> vector<16x16xf32>
    %cst_85 = arith.constant dense<0xFF800000> : vector<16xf32>
    %271 = vector.multi_reduction <maximumf>, %270, %cst_85 [1] : vector<16x16xf32> to vector<16xf32>
    %272 = vector.shape_cast %271 : vector<16xf32> to vector<16x1xf32>
    %273 = vector.broadcast %272 : vector<16x1xf32> to vector<16x16xf32>
    %274 = arith.subf %270, %273 : vector<16x16xf32>
    %275 = math.exp %274 : vector<16x16xf32>
    %cst_86 = arith.constant dense<0.000000e+00> : vector<16xf32>
    %276 = vector.multi_reduction <add>, %275, %cst_86 [1] : vector<16x16xf32> to vector<16xf32>
    %277 = vector.shape_cast %276 : vector<16xf32> to vector<16x1xf32>
    %278 = tpu.reciprocal %277 {approx = true} : vector<16x1xf32> -> vector<16x1xf32>
    %279 = vector.broadcast %278 : vector<16x1xf32> to vector<16x16xf32>
    %280 = arith.mulf %275, %279 : vector<16x16xf32>
    %281 = vector.extract_strided_slice %237 {offsets = [0, 16], sizes = [16, 8], strides = [1, 1]} : vector<16x32xf32> to vector<16x8xf32>
    %cst_87 = arith.constant dense<0.000000e+00> : vector<16x8xf32>
    %282 = tpu.matmul %280, %281, %cst_87 {dimension_numbers = #tpu.dot_dimension_numbers<[1], [0], [0], [1], [0, 0, 1, 1], [], []>} : vector<16x16xf32>, vector<16x8xf32>, vector<16x8xf32> -> vector<16x8xf32>
    %283 = vector.extract_strided_slice %235 {offsets = [0, 24], sizes = [16, 8], strides = [1, 1]} : vector<16x32xf32> to vector<16x8xf32>
    %284 = vector.extract_strided_slice %236 {offsets = [0, 24], sizes = [16, 8], strides = [1, 1]} : vector<16x32xf32> to vector<16x8xf32>
    %cst_88 = arith.constant dense<0.000000e+00> : vector<16x16xf32>
    %285 = tpu.matmul %283, %284, %cst_88 {dimension_numbers = #tpu.dot_dimension_numbers<[1], [1], [0], [0], [0, 0, 1, 0], [], []>} : vector<16x8xf32>, vector<16x8xf32>, vector<16x16xf32> -> vector<16x16xf32>
    %cst_89 = arith.constant dense<0xFF800000> : vector<16xf32>
    %286 = vector.multi_reduction <maximumf>, %285, %cst_89 [1] : vector<16x16xf32> to vector<16xf32>
    %287 = vector.shape_cast %286 : vector<16xf32> to vector<16x1xf32>
    %288 = vector.broadcast %287 : vector<16x1xf32> to vector<16x16xf32>
    %289 = arith.subf %285, %288 : vector<16x16xf32>
    %290 = math.exp %289 : vector<16x16xf32>
    %cst_90 = arith.constant dense<0.000000e+00> : vector<16xf32>
    %291 = vector.multi_reduction <add>, %290, %cst_90 [1] : vector<16x16xf32> to vector<16xf32>
    %292 = vector.shape_cast %291 : vector<16xf32> to vector<16x1xf32>
    %293 = tpu.reciprocal %292 {approx = true} : vector<16x1xf32> -> vector<16x1xf32>
    %294 = vector.broadcast %293 : vector<16x1xf32> to vector<16x16xf32>
    %295 = arith.mulf %290, %294 : vector<16x16xf32>
    %296 = vector.extract_strided_slice %237 {offsets = [0, 24], sizes = [16, 8], strides = [1, 1]} : vector<16x32xf32> to vector<16x8xf32>
    %cst_91 = arith.constant dense<0.000000e+00> : vector<16x8xf32>
    %297 = tpu.matmul %295, %296, %cst_91 {dimension_numbers = #tpu.dot_dimension_numbers<[1], [0], [0], [1], [0, 0, 1, 1], [], []>} : vector<16x16xf32>, vector<16x8xf32>, vector<16x8xf32> -> vector<16x8xf32>
    %298 = tpu.concatenate %252, %267, %282, %297 in 1 : vector<16x8xf32>, vector<16x8xf32>, vector<16x8xf32>, vector<16x8xf32> -> vector<16x32xf32>
    %299 = vector.extract_strided_slice %231 {offsets = [16, 0], sizes = [16, 96], strides = [1, 1]} : vector<32x96xf32> to vector<16x96xf32>
    %300 = vector.extract_strided_slice %299 {offsets = [0, 0], sizes = [16, 32], strides = [1, 1]} : vector<16x96xf32> to vector<16x32xf32>
    %cst_92 = arith.constant 0.353553385 : f32
    %301 = vector.broadcast %cst_92 : f32 to vector<16x32xf32>
    %302 = arith.mulf %300, %301 : vector<16x32xf32>
    %303 = vector.extract_strided_slice %299 {offsets = [0, 32], sizes = [16, 32], strides = [1, 1]} : vector<16x96xf32> to vector<16x32xf32>
    %304 = vector.extract_strided_slice %299 {offsets = [0, 64], sizes = [16, 32], strides = [1, 1]} : vector<16x96xf32> to vector<16x32xf32>
    %305 = vector.extract_strided_slice %302 {offsets = [0, 0], sizes = [16, 8], strides = [1, 1]} : vector<16x32xf32> to vector<16x8xf32>
    %306 = vector.extract_strided_slice %303 {offsets = [0, 0], sizes = [16, 8], strides = [1, 1]} : vector<16x32xf32> to vector<16x8xf32>
    %cst_93 = arith.constant dense<0.000000e+00> : vector<16x16xf32>
    %307 = tpu.matmul %305, %306, %cst_93 {dimension_numbers = #tpu.dot_dimension_numbers<[1], [1], [0], [0], [0, 0, 1, 0], [], []>} : vector<16x8xf32>, vector<16x8xf32>, vector<16x16xf32> -> vector<16x16xf32>
    %cst_94 = arith.constant dense<0xFF800000> : vector<16xf32>
    %308 = vector.multi_reduction <maximumf>, %307, %cst_94 [1] : vector<16x16xf32> to vector<16xf32>
    %309 = vector.shape_cast %308 : vector<16xf32> to vector<16x1xf32>
    %310 = vector.broadcast %309 : vector<16x1xf32> to vector<16x16xf32>
    %311 = arith.subf %307, %310 : vector<16x16xf32>
    %312 = math.exp %311 : vector<16x16xf32>
    %cst_95 = arith.constant dense<0.000000e+00> : vector<16xf32>
    %313 = vector.multi_reduction <add>, %312, %cst_95 [1] : vector<16x16xf32> to vector<16xf32>
    %314 = vector.shape_cast %313 : vector<16xf32> to vector<16x1xf32>
    %315 = tpu.reciprocal %314 {approx = true} : vector<16x1xf32> -> vector<16x1xf32>
    %316 = vector.broadcast %315 : vector<16x1xf32> to vector<16x16xf32>
    %317 = arith.mulf %312, %316 : vector<16x16xf32>
    %318 = vector.extract_strided_slice %304 {offsets = [0, 0], sizes = [16, 8], strides = [1, 1]} : vector<16x32xf32> to vector<16x8xf32>
    %cst_96 = arith.constant dense<0.000000e+00> : vector<16x8xf32>
    %319 = tpu.matmul %317, %318, %cst_96 {dimension_numbers = #tpu.dot_dimension_numbers<[1], [0], [0], [1], [0, 0, 1, 1], [], []>} : vector<16x16xf32>, vector<16x8xf32>, vector<16x8xf32> -> vector<16x8xf32>
    %320 = vector.extract_strided_slice %302 {offsets = [0, 8], sizes = [16, 8], strides = [1, 1]} : vector<16x32xf32> to vector<16x8xf32>
    %321 = vector.extract_strided_slice %303 {offsets = [0, 8], sizes = [16, 8], strides = [1, 1]} : vector<16x32xf32> to vector<16x8xf32>
    %cst_97 = arith.constant dense<0.000000e+00> : vector<16x16xf32>
    %322 = tpu.matmul %320, %321, %cst_97 {dimension_numbers = #tpu.dot_dimension_numbers<[1], [1], [0], [0], [0, 0, 1, 0], [], []>} : vector<16x8xf32>, vector<16x8xf32>, vector<16x16xf32> -> vector<16x16xf32>
    %cst_98 = arith.constant dense<0xFF800000> : vector<16xf32>
    %323 = vector.multi_reduction <maximumf>, %322, %cst_98 [1] : vector<16x16xf32> to vector<16xf32>
    %324 = vector.shape_cast %323 : vector<16xf32> to vector<16x1xf32>
    %325 = vector.broadcast %324 : vector<16x1xf32> to vector<16x16xf32>
    %326 = arith.subf %322, %325 : vector<16x16xf32>
    %327 = math.exp %326 : vector<16x16xf32>
    %cst_99 = arith.constant dense<0.000000e+00> : vector<16xf32>
    %328 = vector.multi_reduction <add>, %327, %cst_99 [1] : vector<16x16xf32> to vector<16xf32>
    %329 = vector.shape_cast %328 : vector<16xf32> to vector<16x1xf32>
    %330 = tpu.reciprocal %329 {approx = true} : vector<16x1xf32> -> vector<16x1xf32>
    %331 = vector.broadcast %330 : vector<16x1xf32> to vector<16x16xf32>
    %332 = arith.mulf %327, %331 : vector<16x16xf32>
    %333 = vector.extract_strided_slice %304 {offsets = [0, 8], sizes = [16, 8], strides = [1, 1]} : vector<16x32xf32> to vector<16x8xf32>
    %cst_100 = arith.constant dense<0.000000e+00> : vector<16x8xf32>
    %334 = tpu.matmul %332, %333, %cst_100 {dimension_numbers = #tpu.dot_dimension_numbers<[1], [0], [0], [1], [0, 0, 1, 1], [], []>} : vector<16x16xf32>, vector<16x8xf32>, vector<16x8xf32> -> vector<16x8xf32>
    %335 = vector.extract_strided_slice %302 {offsets = [0, 16], sizes = [16, 8], strides = [1, 1]} : vector<16x32xf32> to vector<16x8xf32>
    %336 = vector.extract_strided_slice %303 {offsets = [0, 16], sizes = [16, 8], strides = [1, 1]} : vector<16x32xf32> to vector<16x8xf32>
    %cst_101 = arith.constant dense<0.000000e+00> : vector<16x16xf32>
    %337 = tpu.matmul %335, %336, %cst_101 {dimension_numbers = #tpu.dot_dimension_numbers<[1], [1], [0], [0], [0, 0, 1, 0], [], []>} : vector<16x8xf32>, vector<16x8xf32>, vector<16x16xf32> -> vector<16x16xf32>
    %cst_102 = arith.constant dense<0xFF800000> : vector<16xf32>
    %338 = vector.multi_reduction <maximumf>, %337, %cst_102 [1] : vector<16x16xf32> to vector<16xf32>
    %339 = vector.shape_cast %338 : vector<16xf32> to vector<16x1xf32>
    %340 = vector.broadcast %339 : vector<16x1xf32> to vector<16x16xf32>
    %341 = arith.subf %337, %340 : vector<16x16xf32>
    %342 = math.exp %341 : vector<16x16xf32>
    %cst_103 = arith.constant dense<0.000000e+00> : vector<16xf32>
    %343 = vector.multi_reduction <add>, %342, %cst_103 [1] : vector<16x16xf32> to vector<16xf32>
    %344 = vector.shape_cast %343 : vector<16xf32> to vector<16x1xf32>
    %345 = tpu.reciprocal %344 {approx = true} : vector<16x1xf32> -> vector<16x1xf32>
    %346 = vector.broadcast %345 : vector<16x1xf32> to vector<16x16xf32>
    %347 = arith.mulf %342, %346 : vector<16x16xf32>
    %348 = vector.extract_strided_slice %304 {offsets = [0, 16], sizes = [16, 8], strides = [1, 1]} : vector<16x32xf32> to vector<16x8xf32>
    %cst_104 = arith.constant dense<0.000000e+00> : vector<16x8xf32>
    %349 = tpu.matmul %347, %348, %cst_104 {dimension_numbers = #tpu.dot_dimension_numbers<[1], [0], [0], [1], [0, 0, 1, 1], [], []>} : vector<16x16xf32>, vector<16x8xf32>, vector<16x8xf32> -> vector<16x8xf32>
    %350 = vector.extract_strided_slice %302 {offsets = [0, 24], sizes = [16, 8], strides = [1, 1]} : vector<16x32xf32> to vector<16x8xf32>
    %351 = vector.extract_strided_slice %303 {offsets = [0, 24], sizes = [16, 8], strides = [1, 1]} : vector<16x32xf32> to vector<16x8xf32>
    %cst_105 = arith.constant dense<0.000000e+00> : vector<16x16xf32>
    %352 = tpu.matmul %350, %351, %cst_105 {dimension_numbers = #tpu.dot_dimension_numbers<[1], [1], [0], [0], [0, 0, 1, 0], [], []>} : vector<16x8xf32>, vector<16x8xf32>, vector<16x16xf32> -> vector<16x16xf32>
    %cst_106 = arith.constant dense<0xFF800000> : vector<16xf32>
    %353 = vector.multi_reduction <maximumf>, %352, %cst_106 [1] : vector<16x16xf32> to vector<16xf32>
    %354 = vector.shape_cast %353 : vector<16xf32> to vector<16x1xf32>
    %355 = vector.broadcast %354 : vector<16x1xf32> to vector<16x16xf32>
    %356 = arith.subf %352, %355 : vector<16x16xf32>
    %357 = math.exp %356 : vector<16x16xf32>
    %cst_107 = arith.constant dense<0.000000e+00> : vector<16xf32>
    %358 = vector.multi_reduction <add>, %357, %cst_107 [1] : vector<16x16xf32> to vector<16xf32>
    %359 = vector.shape_cast %358 : vector<16xf32> to vector<16x1xf32>
    %360 = tpu.reciprocal %359 {approx = true} : vector<16x1xf32> -> vector<16x1xf32>
    %361 = vector.broadcast %360 : vector<16x1xf32> to vector<16x16xf32>
    %362 = arith.mulf %357, %361 : vector<16x16xf32>
    %363 = vector.extract_strided_slice %304 {offsets = [0, 24], sizes = [16, 8], strides = [1, 1]} : vector<16x32xf32> to vector<16x8xf32>
    %cst_108 = arith.constant dense<0.000000e+00> : vector<16x8xf32>
    %364 = tpu.matmul %362, %363, %cst_108 {dimension_numbers = #tpu.dot_dimension_numbers<[1], [0], [0], [1], [0, 0, 1, 1], [], []>} : vector<16x16xf32>, vector<16x8xf32>, vector<16x8xf32> -> vector<16x8xf32>
    %365 = tpu.concatenate %319, %334, %349, %364 in 1 : vector<16x8xf32>, vector<16x8xf32>, vector<16x8xf32>, vector<16x8xf32> -> vector<16x32xf32>
    %366 = tpu.concatenate %298, %365 in 0 : vector<16x32xf32>, vector<16x32xf32> -> vector<32x32xf32>
    %c0_109 = arith.constant 0 : index
    %c0_110 = arith.constant 0 : index
    %c0_111 = arith.constant 0 : index
    %367 = vector.load %arg7[%c0_109, %c0_110, %c0_111] : memref<2x32x32xf32, #tpu.memory_space<vmem>>, vector<1x32x32xf32>
    %368 = vector.shape_cast %367 : vector<1x32x32xf32> to vector<32x32xf32>
    %cst_112 = arith.constant dense<0.000000e+00> : vector<32x32xf32>
    %369 = tpu.matmul %366, %368, %cst_112 {dimension_numbers = #tpu.dot_dimension_numbers<[1], [0], [0], [1], [0, 0, 1, 1], [], []>} : vector<32x32xf32>, vector<32x32xf32>, vector<32x32xf32> -> vector<32x32xf32>
    %c10 = arith.constant 10 : index
    %c0_113 = arith.constant 0 : index
    %370 = vector.load %arg14[%c10, %c0_113] : memref<28x128xf32, #tpu.memory_space<vmem>>, vector<1x32xf32>
    %371 = vector.broadcast %370 : vector<1x32xf32> to vector<32x32xf32>
    %372 = arith.addf %369, %371 : vector<32x32xf32>
    %373 = arith.addf %372, %225 : vector<32x32xf32>
    %c11 = arith.constant 11 : index
    %c0_114 = arith.constant 0 : index
    %374 = vector.load %arg14[%c11, %c0_114] : memref<28x128xf32, #tpu.memory_space<vmem>>, vector<1x32xf32>
    %c12 = arith.constant 12 : index
    %c0_115 = arith.constant 0 : index
    %375 = vector.load %arg14[%c12, %c0_115] : memref<28x128xf32, #tpu.memory_space<vmem>>, vector<1x32xf32>
    %cst_116 = arith.constant dense<0.000000e+00> : vector<32xf32>
    %376 = vector.multi_reduction <add>, %373, %cst_116 [1] : vector<32x32xf32> to vector<32xf32>
    %377 = vector.shape_cast %376 : vector<32xf32> to vector<32x1xf32>
    %cst_117 = arith.constant 3.200000e+01 : f32
    %378 = vector.broadcast %cst_117 : f32 to vector<32x1xf32>
    %379 = arith.divf %377, %378 : vector<32x1xf32>
    %380 = vector.broadcast %379 : vector<32x1xf32> to vector<32x32xf32>
    %381 = arith.subf %373, %380 : vector<32x32xf32>
    %382 = arith.mulf %381, %381 : vector<32x32xf32>
    %cst_118 = arith.constant dense<0.000000e+00> : vector<32xf32>
    %383 = vector.multi_reduction <add>, %382, %cst_118 [1] : vector<32x32xf32> to vector<32xf32>
    %384 = vector.shape_cast %383 : vector<32xf32> to vector<32x1xf32>
    %cst_119 = arith.constant 3.200000e+01 : f32
    %385 = vector.broadcast %cst_119 : f32 to vector<32x1xf32>
    %386 = arith.divf %384, %385 : vector<32x1xf32>
    %387 = vector.broadcast %379 : vector<32x1xf32> to vector<32x32xf32>
    %388 = arith.subf %373, %387 : vector<32x32xf32>
    %cst_120 = arith.constant 9.99999996E-13 : f32
    %389 = vector.broadcast %cst_120 : f32 to vector<32x1xf32>
    %390 = arith.addf %386, %389 : vector<32x1xf32>
    %391 = math.rsqrt %390 : vector<32x1xf32>
    %392 = vector.broadcast %391 : vector<32x1xf32> to vector<32x32xf32>
    %393 = arith.mulf %388, %392 : vector<32x32xf32>
    %394 = vector.broadcast %374 : vector<1x32xf32> to vector<32x32xf32>
    %395 = arith.mulf %393, %394 : vector<32x32xf32>
    %396 = vector.broadcast %375 : vector<1x32xf32> to vector<32x32xf32>
    %397 = arith.addf %395, %396 : vector<32x32xf32>
    %c0_121 = arith.constant 0 : index
    %c0_122 = arith.constant 0 : index
    %c0_123 = arith.constant 0 : index
    %398 = vector.load %arg8[%c0_121, %c0_122, %c0_123] : memref<2x32x64xf32, #tpu.memory_space<vmem>>, vector<1x32x64xf32>
    %399 = vector.shape_cast %398 : vector<1x32x64xf32> to vector<32x64xf32>
    %cst_124 = arith.constant dense<0.000000e+00> : vector<32x64xf32>
    %400 = tpu.matmul %397, %399, %cst_124 {dimension_numbers = #tpu.dot_dimension_numbers<[1], [0], [0], [1], [0, 0, 1, 1], [], []>} : vector<32x32xf32>, vector<32x64xf32>, vector<32x64xf32> -> vector<32x64xf32>
    %c13 = arith.constant 13 : index
    %c0_125 = arith.constant 0 : index
    %401 = vector.load %arg14[%c13, %c0_125] : memref<28x128xf32, #tpu.memory_space<vmem>>, vector<1x64xf32>
    %402 = vector.broadcast %401 : vector<1x64xf32> to vector<32x64xf32>
    %403 = arith.addf %400, %402 : vector<32x64xf32>
    %cst_126 = arith.constant 5.000000e-01 : f32
    %404 = vector.broadcast %cst_126 : f32 to vector<32x64xf32>
    %405 = arith.mulf %404, %403 : vector<32x64xf32>
    %cst_127 = arith.constant 2.000000e+00 : f32
    %406 = math.sqrt %cst_127 : f32
    %407 = vector.broadcast %406 : f32 to vector<32x64xf32>
    %408 = arith.divf %403, %407 : vector<32x64xf32>
    %409 = math.erf %408 : vector<32x64xf32>
    %cst_128 = arith.constant 1.000000e+00 : f32
    %410 = vector.broadcast %cst_128 : f32 to vector<32x64xf32>
    %411 = arith.addf %410, %409 : vector<32x64xf32>
    %412 = arith.mulf %405, %411 : vector<32x64xf32>
    %c0_129 = arith.constant 0 : index
    %c0_130 = arith.constant 0 : index
    %c0_131 = arith.constant 0 : index
    %413 = vector.load %arg9[%c0_129, %c0_130, %c0_131] : memref<2x64x32xf32, #tpu.memory_space<vmem>>, vector<1x64x32xf32>
    %414 = vector.shape_cast %413 : vector<1x64x32xf32> to vector<64x32xf32>
    %cst_132 = arith.constant dense<0.000000e+00> : vector<32x32xf32>
    %415 = tpu.matmul %412, %414, %cst_132 {dimension_numbers = #tpu.dot_dimension_numbers<[1], [0], [0], [1], [0, 0, 1, 1], [], []>} : vector<32x64xf32>, vector<64x32xf32>, vector<32x32xf32> -> vector<32x32xf32>
    %c14 = arith.constant 14 : index
    %c0_133 = arith.constant 0 : index
    %416 = vector.load %arg14[%c14, %c0_133] : memref<28x128xf32, #tpu.memory_space<vmem>>, vector<1x32xf32>
    %417 = vector.broadcast %416 : vector<1x32xf32> to vector<32x32xf32>
    %418 = arith.addf %415, %417 : vector<32x32xf32>
    %419 = arith.addf %418, %397 : vector<32x32xf32>
    %c15 = arith.constant 15 : index
    %c0_134 = arith.constant 0 : index
    %420 = vector.load %arg14[%c15, %c0_134] : memref<28x128xf32, #tpu.memory_space<vmem>>, vector<1x32xf32>
    %c16 = arith.constant 16 : index
    %c0_135 = arith.constant 0 : index
    %421 = vector.load %arg14[%c16, %c0_135] : memref<28x128xf32, #tpu.memory_space<vmem>>, vector<1x32xf32>
    %cst_136 = arith.constant dense<0.000000e+00> : vector<32xf32>
    %422 = vector.multi_reduction <add>, %419, %cst_136 [1] : vector<32x32xf32> to vector<32xf32>
    %423 = vector.shape_cast %422 : vector<32xf32> to vector<32x1xf32>
    %cst_137 = arith.constant 3.200000e+01 : f32
    %424 = vector.broadcast %cst_137 : f32 to vector<32x1xf32>
    %425 = arith.divf %423, %424 : vector<32x1xf32>
    %426 = vector.broadcast %425 : vector<32x1xf32> to vector<32x32xf32>
    %427 = arith.subf %419, %426 : vector<32x32xf32>
    %428 = arith.mulf %427, %427 : vector<32x32xf32>
    %cst_138 = arith.constant dense<0.000000e+00> : vector<32xf32>
    %429 = vector.multi_reduction <add>, %428, %cst_138 [1] : vector<32x32xf32> to vector<32xf32>
    %430 = vector.shape_cast %429 : vector<32xf32> to vector<32x1xf32>
    %cst_139 = arith.constant 3.200000e+01 : f32
    %431 = vector.broadcast %cst_139 : f32 to vector<32x1xf32>
    %432 = arith.divf %430, %431 : vector<32x1xf32>
    %433 = vector.broadcast %425 : vector<32x1xf32> to vector<32x32xf32>
    %434 = arith.subf %419, %433 : vector<32x32xf32>
    %cst_140 = arith.constant 9.99999996E-13 : f32
    %435 = vector.broadcast %cst_140 : f32 to vector<32x1xf32>
    %436 = arith.addf %432, %435 : vector<32x1xf32>
    %437 = math.rsqrt %436 : vector<32x1xf32>
    %438 = vector.broadcast %437 : vector<32x1xf32> to vector<32x32xf32>
    %439 = arith.mulf %434, %438 : vector<32x32xf32>
    %440 = vector.broadcast %420 : vector<1x32xf32> to vector<32x32xf32>
    %441 = arith.mulf %439, %440 : vector<32x32xf32>
    %442 = vector.broadcast %421 : vector<1x32xf32> to vector<32x32xf32>
    %443 = arith.addf %441, %442 : vector<32x32xf32>
    %c1_141 = arith.constant 1 : index
    %c0_142 = arith.constant 0 : index
    %c0_143 = arith.constant 0 : index
    %444 = vector.load %arg6[%c1_141, %c0_142, %c0_143] : memref<2x32x96xf32, #tpu.memory_space<vmem>>, vector<1x32x96xf32>
    %445 = vector.shape_cast %444 : vector<1x32x96xf32> to vector<32x96xf32>
    %c17 = arith.constant 17 : index
    %c0_144 = arith.constant 0 : index
    %446 = vector.load %arg14[%c17, %c0_144] : memref<28x128xf32, #tpu.memory_space<vmem>>, vector<1x96xf32>
    %cst_145 = arith.constant dense<0.000000e+00> : vector<32x96xf32>
    %447 = tpu.matmul %443, %445, %cst_145 {dimension_numbers = #tpu.dot_dimension_numbers<[1], [0], [0], [1], [0, 0, 1, 1], [], []>} : vector<32x32xf32>, vector<32x96xf32>, vector<32x96xf32> -> vector<32x96xf32>
    %448 = vector.broadcast %446 : vector<1x96xf32> to vector<32x96xf32>
    %449 = arith.addf %447, %448 : vector<32x96xf32>
    %450 = vector.extract_strided_slice %449 {offsets = [0, 0], sizes = [16, 96], strides = [1, 1]} : vector<32x96xf32> to vector<16x96xf32>
    %451 = vector.extract_strided_slice %450 {offsets = [0, 0], sizes = [16, 32], strides = [1, 1]} : vector<16x96xf32> to vector<16x32xf32>
    %cst_146 = arith.constant 0.353553385 : f32
    %452 = vector.broadcast %cst_146 : f32 to vector<16x32xf32>
    %453 = arith.mulf %451, %452 : vector<16x32xf32>
    %454 = vector.extract_strided_slice %450 {offsets = [0, 32], sizes = [16, 32], strides = [1, 1]} : vector<16x96xf32> to vector<16x32xf32>
    %455 = vector.extract_strided_slice %450 {offsets = [0, 64], sizes = [16, 32], strides = [1, 1]} : vector<16x96xf32> to vector<16x32xf32>
    %456 = vector.extract_strided_slice %453 {offsets = [0, 0], sizes = [16, 8], strides = [1, 1]} : vector<16x32xf32> to vector<16x8xf32>
    %457 = vector.extract_strided_slice %454 {offsets = [0, 0], sizes = [16, 8], strides = [1, 1]} : vector<16x32xf32> to vector<16x8xf32>
    %cst_147 = arith.constant dense<0.000000e+00> : vector<16x16xf32>
    %458 = tpu.matmul %456, %457, %cst_147 {dimension_numbers = #tpu.dot_dimension_numbers<[1], [1], [0], [0], [0, 0, 1, 0], [], []>} : vector<16x8xf32>, vector<16x8xf32>, vector<16x16xf32> -> vector<16x16xf32>
    %cst_148 = arith.constant dense<0xFF800000> : vector<16xf32>
    %459 = vector.multi_reduction <maximumf>, %458, %cst_148 [1] : vector<16x16xf32> to vector<16xf32>
    %460 = vector.shape_cast %459 : vector<16xf32> to vector<16x1xf32>
    %461 = vector.broadcast %460 : vector<16x1xf32> to vector<16x16xf32>
    %462 = arith.subf %458, %461 : vector<16x16xf32>
    %463 = math.exp %462 : vector<16x16xf32>
    %cst_149 = arith.constant dense<0.000000e+00> : vector<16xf32>
    %464 = vector.multi_reduction <add>, %463, %cst_149 [1] : vector<16x16xf32> to vector<16xf32>
    %465 = vector.shape_cast %464 : vector<16xf32> to vector<16x1xf32>
    %466 = tpu.reciprocal %465 {approx = true} : vector<16x1xf32> -> vector<16x1xf32>
    %467 = vector.broadcast %466 : vector<16x1xf32> to vector<16x16xf32>
    %468 = arith.mulf %463, %467 : vector<16x16xf32>
    %469 = vector.extract_strided_slice %455 {offsets = [0, 0], sizes = [16, 8], strides = [1, 1]} : vector<16x32xf32> to vector<16x8xf32>
    %cst_150 = arith.constant dense<0.000000e+00> : vector<16x8xf32>
    %470 = tpu.matmul %468, %469, %cst_150 {dimension_numbers = #tpu.dot_dimension_numbers<[1], [0], [0], [1], [0, 0, 1, 1], [], []>} : vector<16x16xf32>, vector<16x8xf32>, vector<16x8xf32> -> vector<16x8xf32>
    %471 = vector.extract_strided_slice %453 {offsets = [0, 8], sizes = [16, 8], strides = [1, 1]} : vector<16x32xf32> to vector<16x8xf32>
    %472 = vector.extract_strided_slice %454 {offsets = [0, 8], sizes = [16, 8], strides = [1, 1]} : vector<16x32xf32> to vector<16x8xf32>
    %cst_151 = arith.constant dense<0.000000e+00> : vector<16x16xf32>
    %473 = tpu.matmul %471, %472, %cst_151 {dimension_numbers = #tpu.dot_dimension_numbers<[1], [1], [0], [0], [0, 0, 1, 0], [], []>} : vector<16x8xf32>, vector<16x8xf32>, vector<16x16xf32> -> vector<16x16xf32>
    %cst_152 = arith.constant dense<0xFF800000> : vector<16xf32>
    %474 = vector.multi_reduction <maximumf>, %473, %cst_152 [1] : vector<16x16xf32> to vector<16xf32>
    %475 = vector.shape_cast %474 : vector<16xf32> to vector<16x1xf32>
    %476 = vector.broadcast %475 : vector<16x1xf32> to vector<16x16xf32>
    %477 = arith.subf %473, %476 : vector<16x16xf32>
    %478 = math.exp %477 : vector<16x16xf32>
    %cst_153 = arith.constant dense<0.000000e+00> : vector<16xf32>
    %479 = vector.multi_reduction <add>, %478, %cst_153 [1] : vector<16x16xf32> to vector<16xf32>
    %480 = vector.shape_cast %479 : vector<16xf32> to vector<16x1xf32>
    %481 = tpu.reciprocal %480 {approx = true} : vector<16x1xf32> -> vector<16x1xf32>
    %482 = vector.broadcast %481 : vector<16x1xf32> to vector<16x16xf32>
    %483 = arith.mulf %478, %482 : vector<16x16xf32>
    %484 = vector.extract_strided_slice %455 {offsets = [0, 8], sizes = [16, 8], strides = [1, 1]} : vector<16x32xf32> to vector<16x8xf32>
    %cst_154 = arith.constant dense<0.000000e+00> : vector<16x8xf32>
    %485 = tpu.matmul %483, %484, %cst_154 {dimension_numbers = #tpu.dot_dimension_numbers<[1], [0], [0], [1], [0, 0, 1, 1], [], []>} : vector<16x16xf32>, vector<16x8xf32>, vector<16x8xf32> -> vector<16x8xf32>
    %486 = vector.extract_strided_slice %453 {offsets = [0, 16], sizes = [16, 8], strides = [1, 1]} : vector<16x32xf32> to vector<16x8xf32>
    %487 = vector.extract_strided_slice %454 {offsets = [0, 16], sizes = [16, 8], strides = [1, 1]} : vector<16x32xf32> to vector<16x8xf32>
    %cst_155 = arith.constant dense<0.000000e+00> : vector<16x16xf32>
    %488 = tpu.matmul %486, %487, %cst_155 {dimension_numbers = #tpu.dot_dimension_numbers<[1], [1], [0], [0], [0, 0, 1, 0], [], []>} : vector<16x8xf32>, vector<16x8xf32>, vector<16x16xf32> -> vector<16x16xf32>
    %cst_156 = arith.constant dense<0xFF800000> : vector<16xf32>
    %489 = vector.multi_reduction <maximumf>, %488, %cst_156 [1] : vector<16x16xf32> to vector<16xf32>
    %490 = vector.shape_cast %489 : vector<16xf32> to vector<16x1xf32>
    %491 = vector.broadcast %490 : vector<16x1xf32> to vector<16x16xf32>
    %492 = arith.subf %488, %491 : vector<16x16xf32>
    %493 = math.exp %492 : vector<16x16xf32>
    %cst_157 = arith.constant dense<0.000000e+00> : vector<16xf32>
    %494 = vector.multi_reduction <add>, %493, %cst_157 [1] : vector<16x16xf32> to vector<16xf32>
    %495 = vector.shape_cast %494 : vector<16xf32> to vector<16x1xf32>
    %496 = tpu.reciprocal %495 {approx = true} : vector<16x1xf32> -> vector<16x1xf32>
    %497 = vector.broadcast %496 : vector<16x1xf32> to vector<16x16xf32>
    %498 = arith.mulf %493, %497 : vector<16x16xf32>
    %499 = vector.extract_strided_slice %455 {offsets = [0, 16], sizes = [16, 8], strides = [1, 1]} : vector<16x32xf32> to vector<16x8xf32>
    %cst_158 = arith.constant dense<0.000000e+00> : vector<16x8xf32>
    %500 = tpu.matmul %498, %499, %cst_158 {dimension_numbers = #tpu.dot_dimension_numbers<[1], [0], [0], [1], [0, 0, 1, 1], [], []>} : vector<16x16xf32>, vector<16x8xf32>, vector<16x8xf32> -> vector<16x8xf32>
    %501 = vector.extract_strided_slice %453 {offsets = [0, 24], sizes = [16, 8], strides = [1, 1]} : vector<16x32xf32> to vector<16x8xf32>
    %502 = vector.extract_strided_slice %454 {offsets = [0, 24], sizes = [16, 8], strides = [1, 1]} : vector<16x32xf32> to vector<16x8xf32>
    %cst_159 = arith.constant dense<0.000000e+00> : vector<16x16xf32>
    %503 = tpu.matmul %501, %502, %cst_159 {dimension_numbers = #tpu.dot_dimension_numbers<[1], [1], [0], [0], [0, 0, 1, 0], [], []>} : vector<16x8xf32>, vector<16x8xf32>, vector<16x16xf32> -> vector<16x16xf32>
    %cst_160 = arith.constant dense<0xFF800000> : vector<16xf32>
    %504 = vector.multi_reduction <maximumf>, %503, %cst_160 [1] : vector<16x16xf32> to vector<16xf32>
    %505 = vector.shape_cast %504 : vector<16xf32> to vector<16x1xf32>
    %506 = vector.broadcast %505 : vector<16x1xf32> to vector<16x16xf32>
    %507 = arith.subf %503, %506 : vector<16x16xf32>
    %508 = math.exp %507 : vector<16x16xf32>
    %cst_161 = arith.constant dense<0.000000e+00> : vector<16xf32>
    %509 = vector.multi_reduction <add>, %508, %cst_161 [1] : vector<16x16xf32> to vector<16xf32>
    %510 = vector.shape_cast %509 : vector<16xf32> to vector<16x1xf32>
    %511 = tpu.reciprocal %510 {approx = true} : vector<16x1xf32> -> vector<16x1xf32>
    %512 = vector.broadcast %511 : vector<16x1xf32> to vector<16x16xf32>
    %513 = arith.mulf %508, %512 : vector<16x16xf32>
    %514 = vector.extract_strided_slice %455 {offsets = [0, 24], sizes = [16, 8], strides = [1, 1]} : vector<16x32xf32> to vector<16x8xf32>
    %cst_162 = arith.constant dense<0.000000e+00> : vector<16x8xf32>
    %515 = tpu.matmul %513, %514, %cst_162 {dimension_numbers = #tpu.dot_dimension_numbers<[1], [0], [0], [1], [0, 0, 1, 1], [], []>} : vector<16x16xf32>, vector<16x8xf32>, vector<16x8xf32> -> vector<16x8xf32>
    %516 = tpu.concatenate %470, %485, %500, %515 in 1 : vector<16x8xf32>, vector<16x8xf32>, vector<16x8xf32>, vector<16x8xf32> -> vector<16x32xf32>
    %517 = vector.extract_strided_slice %449 {offsets = [16, 0], sizes = [16, 96], strides = [1, 1]} : vector<32x96xf32> to vector<16x96xf32>
    %518 = vector.extract_strided_slice %517 {offsets = [0, 0], sizes = [16, 32], strides = [1, 1]} : vector<16x96xf32> to vector<16x32xf32>
    %cst_163 = arith.constant 0.353553385 : f32
    %519 = vector.broadcast %cst_163 : f32 to vector<16x32xf32>
    %520 = arith.mulf %518, %519 : vector<16x32xf32>
    %521 = vector.extract_strided_slice %517 {offsets = [0, 32], sizes = [16, 32], strides = [1, 1]} : vector<16x96xf32> to vector<16x32xf32>
    %522 = vector.extract_strided_slice %517 {offsets = [0, 64], sizes = [16, 32], strides = [1, 1]} : vector<16x96xf32> to vector<16x32xf32>
    %523 = vector.extract_strided_slice %520 {offsets = [0, 0], sizes = [16, 8], strides = [1, 1]} : vector<16x32xf32> to vector<16x8xf32>
    %524 = vector.extract_strided_slice %521 {offsets = [0, 0], sizes = [16, 8], strides = [1, 1]} : vector<16x32xf32> to vector<16x8xf32>
    %cst_164 = arith.constant dense<0.000000e+00> : vector<16x16xf32>
    %525 = tpu.matmul %523, %524, %cst_164 {dimension_numbers = #tpu.dot_dimension_numbers<[1], [1], [0], [0], [0, 0, 1, 0], [], []>} : vector<16x8xf32>, vector<16x8xf32>, vector<16x16xf32> -> vector<16x16xf32>
    %cst_165 = arith.constant dense<0xFF800000> : vector<16xf32>
    %526 = vector.multi_reduction <maximumf>, %525, %cst_165 [1] : vector<16x16xf32> to vector<16xf32>
    %527 = vector.shape_cast %526 : vector<16xf32> to vector<16x1xf32>
    %528 = vector.broadcast %527 : vector<16x1xf32> to vector<16x16xf32>
    %529 = arith.subf %525, %528 : vector<16x16xf32>
    %530 = math.exp %529 : vector<16x16xf32>
    %cst_166 = arith.constant dense<0.000000e+00> : vector<16xf32>
    %531 = vector.multi_reduction <add>, %530, %cst_166 [1] : vector<16x16xf32> to vector<16xf32>
    %532 = vector.shape_cast %531 : vector<16xf32> to vector<16x1xf32>
    %533 = tpu.reciprocal %532 {approx = true} : vector<16x1xf32> -> vector<16x1xf32>
    %534 = vector.broadcast %533 : vector<16x1xf32> to vector<16x16xf32>
    %535 = arith.mulf %530, %534 : vector<16x16xf32>
    %536 = vector.extract_strided_slice %522 {offsets = [0, 0], sizes = [16, 8], strides = [1, 1]} : vector<16x32xf32> to vector<16x8xf32>
    %cst_167 = arith.constant dense<0.000000e+00> : vector<16x8xf32>
    %537 = tpu.matmul %535, %536, %cst_167 {dimension_numbers = #tpu.dot_dimension_numbers<[1], [0], [0], [1], [0, 0, 1, 1], [], []>} : vector<16x16xf32>, vector<16x8xf32>, vector<16x8xf32> -> vector<16x8xf32>
    %538 = vector.extract_strided_slice %520 {offsets = [0, 8], sizes = [16, 8], strides = [1, 1]} : vector<16x32xf32> to vector<16x8xf32>
    %539 = vector.extract_strided_slice %521 {offsets = [0, 8], sizes = [16, 8], strides = [1, 1]} : vector<16x32xf32> to vector<16x8xf32>
    %cst_168 = arith.constant dense<0.000000e+00> : vector<16x16xf32>
    %540 = tpu.matmul %538, %539, %cst_168 {dimension_numbers = #tpu.dot_dimension_numbers<[1], [1], [0], [0], [0, 0, 1, 0], [], []>} : vector<16x8xf32>, vector<16x8xf32>, vector<16x16xf32> -> vector<16x16xf32>
    %cst_169 = arith.constant dense<0xFF800000> : vector<16xf32>
    %541 = vector.multi_reduction <maximumf>, %540, %cst_169 [1] : vector<16x16xf32> to vector<16xf32>
    %542 = vector.shape_cast %541 : vector<16xf32> to vector<16x1xf32>
    %543 = vector.broadcast %542 : vector<16x1xf32> to vector<16x16xf32>
    %544 = arith.subf %540, %543 : vector<16x16xf32>
    %545 = math.exp %544 : vector<16x16xf32>
    %cst_170 = arith.constant dense<0.000000e+00> : vector<16xf32>
    %546 = vector.multi_reduction <add>, %545, %cst_170 [1] : vector<16x16xf32> to vector<16xf32>
    %547 = vector.shape_cast %546 : vector<16xf32> to vector<16x1xf32>
    %548 = tpu.reciprocal %547 {approx = true} : vector<16x1xf32> -> vector<16x1xf32>
    %549 = vector.broadcast %548 : vector<16x1xf32> to vector<16x16xf32>
    %550 = arith.mulf %545, %549 : vector<16x16xf32>
    %551 = vector.extract_strided_slice %522 {offsets = [0, 8], sizes = [16, 8], strides = [1, 1]} : vector<16x32xf32> to vector<16x8xf32>
    %cst_171 = arith.constant dense<0.000000e+00> : vector<16x8xf32>
    %552 = tpu.matmul %550, %551, %cst_171 {dimension_numbers = #tpu.dot_dimension_numbers<[1], [0], [0], [1], [0, 0, 1, 1], [], []>} : vector<16x16xf32>, vector<16x8xf32>, vector<16x8xf32> -> vector<16x8xf32>
    %553 = vector.extract_strided_slice %520 {offsets = [0, 16], sizes = [16, 8], strides = [1, 1]} : vector<16x32xf32> to vector<16x8xf32>
    %554 = vector.extract_strided_slice %521 {offsets = [0, 16], sizes = [16, 8], strides = [1, 1]} : vector<16x32xf32> to vector<16x8xf32>
    %cst_172 = arith.constant dense<0.000000e+00> : vector<16x16xf32>
    %555 = tpu.matmul %553, %554, %cst_172 {dimension_numbers = #tpu.dot_dimension_numbers<[1], [1], [0], [0], [0, 0, 1, 0], [], []>} : vector<16x8xf32>, vector<16x8xf32>, vector<16x16xf32> -> vector<16x16xf32>
    %cst_173 = arith.constant dense<0xFF800000> : vector<16xf32>
    %556 = vector.multi_reduction <maximumf>, %555, %cst_173 [1] : vector<16x16xf32> to vector<16xf32>
    %557 = vector.shape_cast %556 : vector<16xf32> to vector<16x1xf32>
    %558 = vector.broadcast %557 : vector<16x1xf32> to vector<16x16xf32>
    %559 = arith.subf %555, %558 : vector<16x16xf32>
    %560 = math.exp %559 : vector<16x16xf32>
    %cst_174 = arith.constant dense<0.000000e+00> : vector<16xf32>
    %561 = vector.multi_reduction <add>, %560, %cst_174 [1] : vector<16x16xf32> to vector<16xf32>
    %562 = vector.shape_cast %561 : vector<16xf32> to vector<16x1xf32>
    %563 = tpu.reciprocal %562 {approx = true} : vector<16x1xf32> -> vector<16x1xf32>
    %564 = vector.broadcast %563 : vector<16x1xf32> to vector<16x16xf32>
    %565 = arith.mulf %560, %564 : vector<16x16xf32>
    %566 = vector.extract_strided_slice %522 {offsets = [0, 16], sizes = [16, 8], strides = [1, 1]} : vector<16x32xf32> to vector<16x8xf32>
    %cst_175 = arith.constant dense<0.000000e+00> : vector<16x8xf32>
    %567 = tpu.matmul %565, %566, %cst_175 {dimension_numbers = #tpu.dot_dimension_numbers<[1], [0], [0], [1], [0, 0, 1, 1], [], []>} : vector<16x16xf32>, vector<16x8xf32>, vector<16x8xf32> -> vector<16x8xf32>
    %568 = vector.extract_strided_slice %520 {offsets = [0, 24], sizes = [16, 8], strides = [1, 1]} : vector<16x32xf32> to vector<16x8xf32>
    %569 = vector.extract_strided_slice %521 {offsets = [0, 24], sizes = [16, 8], strides = [1, 1]} : vector<16x32xf32> to vector<16x8xf32>
    %cst_176 = arith.constant dense<0.000000e+00> : vector<16x16xf32>
    %570 = tpu.matmul %568, %569, %cst_176 {dimension_numbers = #tpu.dot_dimension_numbers<[1], [1], [0], [0], [0, 0, 1, 0], [], []>} : vector<16x8xf32>, vector<16x8xf32>, vector<16x16xf32> -> vector<16x16xf32>
    %cst_177 = arith.constant dense<0xFF800000> : vector<16xf32>
    %571 = vector.multi_reduction <maximumf>, %570, %cst_177 [1] : vector<16x16xf32> to vector<16xf32>
    %572 = vector.shape_cast %571 : vector<16xf32> to vector<16x1xf32>
    %573 = vector.broadcast %572 : vector<16x1xf32> to vector<16x16xf32>
    %574 = arith.subf %570, %573 : vector<16x16xf32>
    %575 = math.exp %574 : vector<16x16xf32>
    %cst_178 = arith.constant dense<0.000000e+00> : vector<16xf32>
    %576 = vector.multi_reduction <add>, %575, %cst_178 [1] : vector<16x16xf32> to vector<16xf32>
    %577 = vector.shape_cast %576 : vector<16xf32> to vector<16x1xf32>
    %578 = tpu.reciprocal %577 {approx = true} : vector<16x1xf32> -> vector<16x1xf32>
    %579 = vector.broadcast %578 : vector<16x1xf32> to vector<16x16xf32>
    %580 = arith.mulf %575, %579 : vector<16x16xf32>
    %581 = vector.extract_strided_slice %522 {offsets = [0, 24], sizes = [16, 8], strides = [1, 1]} : vector<16x32xf32> to vector<16x8xf32>
    %cst_179 = arith.constant dense<0.000000e+00> : vector<16x8xf32>
    %582 = tpu.matmul %580, %581, %cst_179 {dimension_numbers = #tpu.dot_dimension_numbers<[1], [0], [0], [1], [0, 0, 1, 1], [], []>} : vector<16x16xf32>, vector<16x8xf32>, vector<16x8xf32> -> vector<16x8xf32>
    %583 = tpu.concatenate %537, %552, %567, %582 in 1 : vector<16x8xf32>, vector<16x8xf32>, vector<16x8xf32>, vector<16x8xf32> -> vector<16x32xf32>
    %584 = tpu.concatenate %516, %583 in 0 : vector<16x32xf32>, vector<16x32xf32> -> vector<32x32xf32>
    %c1_180 = arith.constant 1 : index
    %c0_181 = arith.constant 0 : index
    %c0_182 = arith.constant 0 : index
    %585 = vector.load %arg7[%c1_180, %c0_181, %c0_182] : memref<2x32x32xf32, #tpu.memory_space<vmem>>, vector<1x32x32xf32>
    %586 = vector.shape_cast %585 : vector<1x32x32xf32> to vector<32x32xf32>
    %cst_183 = arith.constant dense<0.000000e+00> : vector<32x32xf32>
    %587 = tpu.matmul %584, %586, %cst_183 {dimension_numbers = #tpu.dot_dimension_numbers<[1], [0], [0], [1], [0, 0, 1, 1], [], []>} : vector<32x32xf32>, vector<32x32xf32>, vector<32x32xf32> -> vector<32x32xf32>
    %c18 = arith.constant 18 : index
    %c0_184 = arith.constant 0 : index
    %588 = vector.load %arg14[%c18, %c0_184] : memref<28x128xf32, #tpu.memory_space<vmem>>, vector<1x32xf32>
    %589 = vector.broadcast %588 : vector<1x32xf32> to vector<32x32xf32>
    %590 = arith.addf %587, %589 : vector<32x32xf32>
    %591 = arith.addf %590, %443 : vector<32x32xf32>
    %c19 = arith.constant 19 : index
    %c0_185 = arith.constant 0 : index
    %592 = vector.load %arg14[%c19, %c0_185] : memref<28x128xf32, #tpu.memory_space<vmem>>, vector<1x32xf32>
    %c20 = arith.constant 20 : index
    %c0_186 = arith.constant 0 : index
    %593 = vector.load %arg14[%c20, %c0_186] : memref<28x128xf32, #tpu.memory_space<vmem>>, vector<1x32xf32>
    %cst_187 = arith.constant dense<0.000000e+00> : vector<32xf32>
    %594 = vector.multi_reduction <add>, %591, %cst_187 [1] : vector<32x32xf32> to vector<32xf32>
    %595 = vector.shape_cast %594 : vector<32xf32> to vector<32x1xf32>
    %cst_188 = arith.constant 3.200000e+01 : f32
    %596 = vector.broadcast %cst_188 : f32 to vector<32x1xf32>
    %597 = arith.divf %595, %596 : vector<32x1xf32>
    %598 = vector.broadcast %597 : vector<32x1xf32> to vector<32x32xf32>
    %599 = arith.subf %591, %598 : vector<32x32xf32>
    %600 = arith.mulf %599, %599 : vector<32x32xf32>
    %cst_189 = arith.constant dense<0.000000e+00> : vector<32xf32>
    %601 = vector.multi_reduction <add>, %600, %cst_189 [1] : vector<32x32xf32> to vector<32xf32>
    %602 = vector.shape_cast %601 : vector<32xf32> to vector<32x1xf32>
    %cst_190 = arith.constant 3.200000e+01 : f32
    %603 = vector.broadcast %cst_190 : f32 to vector<32x1xf32>
    %604 = arith.divf %602, %603 : vector<32x1xf32>
    %605 = vector.broadcast %597 : vector<32x1xf32> to vector<32x32xf32>
    %606 = arith.subf %591, %605 : vector<32x32xf32>
    %cst_191 = arith.constant 9.99999996E-13 : f32
    %607 = vector.broadcast %cst_191 : f32 to vector<32x1xf32>
    %608 = arith.addf %604, %607 : vector<32x1xf32>
    %609 = math.rsqrt %608 : vector<32x1xf32>
    %610 = vector.broadcast %609 : vector<32x1xf32> to vector<32x32xf32>
    %611 = arith.mulf %606, %610 : vector<32x32xf32>
    %612 = vector.broadcast %592 : vector<1x32xf32> to vector<32x32xf32>
    %613 = arith.mulf %611, %612 : vector<32x32xf32>
    %614 = vector.broadcast %593 : vector<1x32xf32> to vector<32x32xf32>
    %615 = arith.addf %613, %614 : vector<32x32xf32>
    %c1_192 = arith.constant 1 : index
    %c0_193 = arith.constant 0 : index
    %c0_194 = arith.constant 0 : index
    %616 = vector.load %arg8[%c1_192, %c0_193, %c0_194] : memref<2x32x64xf32, #tpu.memory_space<vmem>>, vector<1x32x64xf32>
    %617 = vector.shape_cast %616 : vector<1x32x64xf32> to vector<32x64xf32>
    %cst_195 = arith.constant dense<0.000000e+00> : vector<32x64xf32>
    %618 = tpu.matmul %615, %617, %cst_195 {dimension_numbers = #tpu.dot_dimension_numbers<[1], [0], [0], [1], [0, 0, 1, 1], [], []>} : vector<32x32xf32>, vector<32x64xf32>, vector<32x64xf32> -> vector<32x64xf32>
    %c21 = arith.constant 21 : index
    %c0_196 = arith.constant 0 : index
    %619 = vector.load %arg14[%c21, %c0_196] : memref<28x128xf32, #tpu.memory_space<vmem>>, vector<1x64xf32>
    %620 = vector.broadcast %619 : vector<1x64xf32> to vector<32x64xf32>
    %621 = arith.addf %618, %620 : vector<32x64xf32>
    %cst_197 = arith.constant 5.000000e-01 : f32
    %622 = vector.broadcast %cst_197 : f32 to vector<32x64xf32>
    %623 = arith.mulf %622, %621 : vector<32x64xf32>
    %cst_198 = arith.constant 2.000000e+00 : f32
    %624 = math.sqrt %cst_198 : f32
    %625 = vector.broadcast %624 : f32 to vector<32x64xf32>
    %626 = arith.divf %621, %625 : vector<32x64xf32>
    %627 = math.erf %626 : vector<32x64xf32>
    %cst_199 = arith.constant 1.000000e+00 : f32
    %628 = vector.broadcast %cst_199 : f32 to vector<32x64xf32>
    %629 = arith.addf %628, %627 : vector<32x64xf32>
    %630 = arith.mulf %623, %629 : vector<32x64xf32>
    %c1_200 = arith.constant 1 : index
    %c0_201 = arith.constant 0 : index
    %c0_202 = arith.constant 0 : index
    %631 = vector.load %arg9[%c1_200, %c0_201, %c0_202] : memref<2x64x32xf32, #tpu.memory_space<vmem>>, vector<1x64x32xf32>
    %632 = vector.shape_cast %631 : vector<1x64x32xf32> to vector<64x32xf32>
    %cst_203 = arith.constant dense<0.000000e+00> : vector<32x32xf32>
    %633 = tpu.matmul %630, %632, %cst_203 {dimension_numbers = #tpu.dot_dimension_numbers<[1], [0], [0], [1], [0, 0, 1, 1], [], []>} : vector<32x64xf32>, vector<64x32xf32>, vector<32x32xf32> -> vector<32x32xf32>
    %c22 = arith.constant 22 : index
    %c0_204 = arith.constant 0 : index
    %634 = vector.load %arg14[%c22, %c0_204] : memref<28x128xf32, #tpu.memory_space<vmem>>, vector<1x32xf32>
    %635 = vector.broadcast %634 : vector<1x32xf32> to vector<32x32xf32>
    %636 = arith.addf %633, %635 : vector<32x32xf32>
    %637 = arith.addf %636, %615 : vector<32x32xf32>
    %c23 = arith.constant 23 : index
    %c0_205 = arith.constant 0 : index
    %638 = vector.load %arg14[%c23, %c0_205] : memref<28x128xf32, #tpu.memory_space<vmem>>, vector<1x32xf32>
    %c24 = arith.constant 24 : index
    %c0_206 = arith.constant 0 : index
    %639 = vector.load %arg14[%c24, %c0_206] : memref<28x128xf32, #tpu.memory_space<vmem>>, vector<1x32xf32>
    %cst_207 = arith.constant dense<0.000000e+00> : vector<32xf32>
    %640 = vector.multi_reduction <add>, %637, %cst_207 [1] : vector<32x32xf32> to vector<32xf32>
    %641 = vector.shape_cast %640 : vector<32xf32> to vector<32x1xf32>
    %cst_208 = arith.constant 3.200000e+01 : f32
    %642 = vector.broadcast %cst_208 : f32 to vector<32x1xf32>
    %643 = arith.divf %641, %642 : vector<32x1xf32>
    %644 = vector.broadcast %643 : vector<32x1xf32> to vector<32x32xf32>
    %645 = arith.subf %637, %644 : vector<32x32xf32>
    %646 = arith.mulf %645, %645 : vector<32x32xf32>
    %cst_209 = arith.constant dense<0.000000e+00> : vector<32xf32>
    %647 = vector.multi_reduction <add>, %646, %cst_209 [1] : vector<32x32xf32> to vector<32xf32>
    %648 = vector.shape_cast %647 : vector<32xf32> to vector<32x1xf32>
    %cst_210 = arith.constant 3.200000e+01 : f32
    %649 = vector.broadcast %cst_210 : f32 to vector<32x1xf32>
    %650 = arith.divf %648, %649 : vector<32x1xf32>
    %651 = vector.broadcast %643 : vector<32x1xf32> to vector<32x32xf32>
    %652 = arith.subf %637, %651 : vector<32x32xf32>
    %cst_211 = arith.constant 9.99999996E-13 : f32
    %653 = vector.broadcast %cst_211 : f32 to vector<32x1xf32>
    %654 = arith.addf %650, %653 : vector<32x1xf32>
    %655 = math.rsqrt %654 : vector<32x1xf32>
    %656 = vector.broadcast %655 : vector<32x1xf32> to vector<32x32xf32>
    %657 = arith.mulf %652, %656 : vector<32x32xf32>
    %658 = vector.broadcast %638 : vector<1x32xf32> to vector<32x32xf32>
    %659 = arith.mulf %657, %658 : vector<32x32xf32>
    %660 = vector.broadcast %639 : vector<1x32xf32> to vector<32x32xf32>
    %661 = arith.addf %659, %660 : vector<32x32xf32>
    %662 = vector.extract_strided_slice %661 {offsets = [8, 0], sizes = [8, 32], strides = [1, 1]} : vector<32x32xf32> to vector<8x32xf32>
    %663 = vector.extract_strided_slice %661 {offsets = [24, 0], sizes = [8, 32], strides = [1, 1]} : vector<32x32xf32> to vector<8x32xf32>
    %664 = tpu.concatenate %662, %663 in 0 : vector<8x32xf32>, vector<8x32xf32> -> vector<16x32xf32>
    %c0_212 = arith.constant 0 : index
    %c0_213 = arith.constant 0 : index
    %665 = vector.load %arg11[%c0_212, %c0_213] : memref<32x4xf32, #tpu.memory_space<vmem>>, vector<32x4xf32>
    %cst_214 = arith.constant dense<0.000000e+00> : vector<16x4xf32>
    %666 = tpu.matmul %664, %665, %cst_214 {dimension_numbers = #tpu.dot_dimension_numbers<[1], [0], [0], [1], [0, 0, 1, 1], [], []>} : vector<16x32xf32>, vector<32x4xf32>, vector<16x4xf32> -> vector<16x4xf32>
    %c26 = arith.constant 26 : index
    %c0_215 = arith.constant 0 : index
    %667 = vector.load %arg14[%c26, %c0_215] : memref<28x128xf32, #tpu.memory_space<vmem>>, vector<1x4xf32>
    %668 = vector.broadcast %667 : vector<1x4xf32> to vector<16x4xf32>
    %669 = arith.addf %666, %668 : vector<16x4xf32>
    %cst_216 = arith.constant dense<0xFF800000> : vector<16xf32>
    %670 = vector.multi_reduction <maximumf>, %669, %cst_216 [1] : vector<16x4xf32> to vector<16xf32>
    %671 = vector.shape_cast %670 : vector<16xf32> to vector<16x1xf32>
    %672 = vector.broadcast %671 : vector<16x1xf32> to vector<16x4xf32>
    %673 = arith.subf %669, %672 : vector<16x4xf32>
    %674 = math.exp %673 : vector<16x4xf32>
    %cst_217 = arith.constant dense<0.000000e+00> : vector<16xf32>
    %675 = vector.multi_reduction <add>, %674, %cst_217 [1] : vector<16x4xf32> to vector<16xf32>
    %676 = vector.shape_cast %675 : vector<16xf32> to vector<16x1xf32>
    %677 = vector.broadcast %676 : vector<16x1xf32> to vector<16x4xf32>
    %678 = arith.divf %674, %677 : vector<16x4xf32>
    %c0_218 = arith.constant 0 : index
    %c0_219 = arith.constant 0 : index
    %679 = vector.load %arg12[%c0_218, %c0_219] : memref<4x128xf32, #tpu.memory_space<vmem>>, vector<4x128xf32>
    %cst_220 = arith.constant dense<0.000000e+00> : vector<16x128xf32>
    %680 = tpu.matmul %678, %679, %cst_220 {dimension_numbers = #tpu.dot_dimension_numbers<[1], [0], [0], [1], [0, 0, 1, 1], [], []>} : vector<16x4xf32>, vector<4x128xf32>, vector<16x128xf32> -> vector<16x128xf32>
    %c0_221 = arith.constant 0 : index
    %c0_222 = arith.constant 0 : index
    %681 = vector.load %arg10[%c0_221, %c0_222] : memref<32x128xf32, #tpu.memory_space<vmem>>, vector<32x128xf32>
    %cst_223 = arith.constant dense<0.000000e+00> : vector<16x128xf32>
    %682 = tpu.matmul %664, %681, %cst_223 {dimension_numbers = #tpu.dot_dimension_numbers<[1], [0], [0], [1], [0, 0, 1, 1], [], []>} : vector<16x32xf32>, vector<32x128xf32>, vector<16x128xf32> -> vector<16x128xf32>
    %c25 = arith.constant 25 : index
    %c0_224 = arith.constant 0 : index
    %683 = vector.load %arg14[%c25, %c0_224] : memref<28x128xf32, #tpu.memory_space<vmem>>, vector<1x128xf32>
    %684 = vector.broadcast %683 : vector<1x128xf32> to vector<16x128xf32>
    %685 = arith.addf %682, %684 : vector<16x128xf32>
    %cst_225 = arith.constant 5.000000e-01 : f32
    %686 = vector.broadcast %cst_225 : f32 to vector<16x128xf32>
    %687 = arith.mulf %686, %685 : vector<16x128xf32>
    %cst_226 = arith.constant 2.000000e+00 : f32
    %688 = math.sqrt %cst_226 : f32
    %689 = vector.broadcast %688 : f32 to vector<16x128xf32>
    %690 = arith.divf %685, %689 : vector<16x128xf32>
    %691 = math.erf %690 : vector<16x128xf32>
    %cst_227 = arith.constant 1.000000e+00 : f32
    %692 = vector.broadcast %cst_227 : f32 to vector<16x128xf32>
    %693 = arith.addf %692, %691 : vector<16x128xf32>
    %694 = arith.mulf %687, %693 : vector<16x128xf32>
    %695 = arith.mulf %680, %694 : vector<16x128xf32>
    %c0_228 = arith.constant 0 : index
    %c0_229 = arith.constant 0 : index
    %696 = vector.load %arg13[%c0_228, %c0_229] : memref<128x128xf32, #tpu.memory_space<vmem>>, vector<128x128xf32>
    %cst_230 = arith.constant dense<0.000000e+00> : vector<16x128xf32>
    %697 = tpu.matmul %695, %696, %cst_230 {dimension_numbers = #tpu.dot_dimension_numbers<[1], [0], [0], [1], [0, 0, 1, 1], [], []>} : vector<16x128xf32>, vector<128x128xf32>, vector<16x128xf32> -> vector<16x128xf32>
    %c27 = arith.constant 27 : index
    %c0_231 = arith.constant 0 : index
    %698 = vector.load %arg14[%c27, %c0_231] : memref<28x128xf32, #tpu.memory_space<vmem>>, vector<1x128xf32>
    %699 = vector.broadcast %698 : vector<1x128xf32> to vector<16x128xf32>
    %700 = arith.addf %697, %699 : vector<16x128xf32>
    %c0_232 = arith.constant 0 : index
    %c0_233 = arith.constant 0 : index
    %701 = vector.load %arg15[%c0_232, %c0_233] : memref<16x128xf32, #tpu.memory_space<vmem>>, vector<16x128xf32>
    tpu.vector_store %arg15[%c0_232, %c0_233], %700 {strides = array<i32>} : memref<16x128xf32, #tpu.memory_space<vmem>>, vector<16x128xf32>,
    return
  }
  func.func @transform_0(%arg0: i32) -> (i32, i32) {
    %c0_i32 = arith.constant 0 : i32
    %c0_i32_0 = arith.constant 0 : i32
    %c0_i32_1 = arith.constant 0 : i32
    return %c0_i32, %c0_i32_0 : i32, i32
  }
  func.func @transform_1(%arg0: i32) -> (i32, i32) {
    %c0_i32 = arith.constant 0 : i32
    %c0_i32_0 = arith.constant 0 : i32
    %c0_i32_1 = arith.constant 0 : i32
    return %c0_i32, %c0_i32_0 : i32, i32
  }
  func.func @transform_2(%arg0: i32) -> (i32, i32) {
    %c0_i32 = arith.constant 0 : i32
    %c0_i32_0 = arith.constant 0 : i32
    %c0_i32_1 = arith.constant 0 : i32
    return %c0_i32, %c0_i32_0 : i32, i32
  }
  func.func @transform_3(%arg0: i32) -> (i32, i32) {
    %c0_i32 = arith.constant 0 : i32
    %c0_i32_0 = arith.constant 0 : i32
    %c0_i32_1 = arith.constant 0 : i32
    return %c0_i32, %c0_i32_0 : i32, i32
  }
  func.func @transform_4(%arg0: i32) -> (i32, i32) {
    %c0_i32 = arith.constant 0 : i32
    %c0_i32_0 = arith.constant 0 : i32
    %c0_i32_1 = arith.constant 0 : i32
    return %c0_i32, %c0_i32_0 : i32, i32
  }
  func.func @transform_5(%arg0: i32) -> (i32, i32, i32) {
    %c0_i32 = arith.constant 0 : i32
    %c0_i32_0 = arith.constant 0 : i32
    %c0_i32_1 = arith.constant 0 : i32
    %c0_i32_2 = arith.constant 0 : i32
    return %c0_i32, %c0_i32_0, %c0_i32_1 : i32, i32, i32
  }
  func.func @transform_6(%arg0: i32) -> (i32, i32, i32) {
    %c0_i32 = arith.constant 0 : i32
    %c0_i32_0 = arith.constant 0 : i32
    %c0_i32_1 = arith.constant 0 : i32
    %c0_i32_2 = arith.constant 0 : i32
    return %c0_i32, %c0_i32_0, %c0_i32_1 : i32, i32, i32
  }
  func.func @transform_7(%arg0: i32) -> (i32, i32, i32) {
    %c0_i32 = arith.constant 0 : i32
    %c0_i32_0 = arith.constant 0 : i32
    %c0_i32_1 = arith.constant 0 : i32
    %c0_i32_2 = arith.constant 0 : i32
    return %c0_i32, %c0_i32_0, %c0_i32_1 : i32, i32, i32
  }
  func.func @transform_8(%arg0: i32) -> (i32, i32, i32) {
    %c0_i32 = arith.constant 0 : i32
    %c0_i32_0 = arith.constant 0 : i32
    %c0_i32_1 = arith.constant 0 : i32
    %c0_i32_2 = arith.constant 0 : i32
    return %c0_i32, %c0_i32_0, %c0_i32_1 : i32, i32, i32
  }
  func.func @transform_9(%arg0: i32) -> (i32, i32) {
    %c0_i32 = arith.constant 0 : i32
    %c0_i32_0 = arith.constant 0 : i32
    %c0_i32_1 = arith.constant 0 : i32
    return %c0_i32, %c0_i32_0 : i32, i32
  }
  func.func @transform_10(%arg0: i32) -> (i32, i32) {
    %c0_i32 = arith.constant 0 : i32
    %c0_i32_0 = arith.constant 0 : i32
    %c0_i32_1 = arith.constant 0 : i32
    return %c0_i32, %c0_i32_0 : i32, i32
  }
  func.func @transform_11(%arg0: i32) -> (i32, i32) {
    %c0_i32 = arith.constant 0 : i32
    %c0_i32_0 = arith.constant 0 : i32
    %c0_i32_1 = arith.constant 0 : i32
    return %c0_i32, %c0_i32_0 : i32, i32
  }
  func.func @transform_12(%arg0: i32) -> (i32, i32) {
    %c0_i32 = arith.constant 0 : i32
    %c0_i32_0 = arith.constant 0 : i32
    %c0_i32_1 = arith.constant 0 : i32
    return %c0_i32, %c0_i32_0 : i32, i32
  }
  func.func @transform_13(%arg0: i32) -> (i32, i32) {
    %c0_i32 = arith.constant 0 : i32
    %c0_i32_0 = arith.constant 0 : i32
    %c0_i32_1 = arith.constant 0 : i32
    return %c0_i32, %c0_i32_0 : i32, i32
  }
  func.func @transform_14(%arg0: i32) -> (i32, i32) {
    %c0_i32 = arith.constant 0 : i32
    %c0_i32_0 = arith.constant 0 : i32
    %c0_i32_1 = arith.constant 0 : i32
    return %c0_i32, %c0_i32_0 : i32, i32
  }
}

</mosaic_0001>

<bundles_post_ra>
// kernel: _lambda_.1
= control target key start
LH: loop header
LB: loop body
LE: loop exit
PB: predicated region body
PF: predicated region fallthrough
CT: control target
= control target key end

     0   :  { %vm54_vm0 = vcmask 367616   ;;  %s10681_s0 = inlined_call_operand.vmem [shape: f32[32,45], index: 0, kind: input, shape index: {}]   ;;  %s10682_s1 = inlined_call_operand.vmem [shape: f32[45,32], index: 1, kind: input, shape index: {}]   ;;  %s10683_s2 = inlined_call_operand.vmem [shape: f32[32,96], index: 2, kind: input, shape index: {}]   ;;  %s10684_s3 = inlined_call_operand.vmem [shape: f32[32,32], index: 3, kind: input, shape index: {}]   ;;  %s10685_s4 = inlined_call_operand.vmem [shape: f32[32,32], index: 4, kind: input, shape index: {}]   ;;  %s10686_s5 = inlined_call_operand.vmem [shape: f32[2,32,96], index: 5, kind: input, shape index: {}]   ;;  %s10687_s6 = inlined_call_operand.vmem [shape: f32[2,32,32], index: 6, kind: input, shape index: {}]   ;;  %s10688_s7 = inlined_call_operand.vmem [shape: f32[2,32,64], index: 7, kind: input, shape index: {}]   ;;  %s10689_s8 = inlined_call_operand.vmem [shape: f32[2,64,32], index: 8, kind: input, shape index: {}]   ;;  %s10690_s9 = inlined_call_operand.vmem [shape: f32[32,128], index: 9, kind: input, shape index: {}]   ;;  %s10691_s10 = inlined_call_operand.vmem [shape: f32[32,4], index: 10, kind: input, shape index: {}]   ;;  %s10692_s11 = inlined_call_operand.vmem [shape: f32[4,128], index: 11, kind: input, shape index: {}]   ;;  %s10693_s12 = inlined_call_operand.vmem [shape: f32[128,128], index: 12, kind: input, shape index: {}]   ;;  %s10694_s13 = inlined_call_operand.vmem [shape: f32[28,128], index: 13, kind: input, shape index: {}]   ;;  %s10695_s14 = inlined_call_operand.hbm [shape: f32[16,128], index: 14, kind: output, shape index: {}]  }
   0x1   :  { %v48_v0 = vld [vmem:[%s10681_s0] sm:$0xff]  ;;  %v49_v1 = vld [vmem:[%s10681_s0 + $0x8] sm:$0xff] }
   0x2   :  { %19 = vsyncpa [#allocation3], 0  ;;  %v55_v2 = vsel %vm54_vm0, %v48_v0, 0.0  ;;  %v58_v3 = vsel %vm54_vm0, %v49_v1, 0.0  ;;  %v50_v4 = vld [vmem:[%s10681_s0 + $0x10] sm:$0xff]  ;;  %v51_v15 = vld [vmem:[%s10681_s0 + $0x18] sm:$0xff] }
   0x3   :  { %56 = vadd.xlane.f32.xlu0 %v55_v2  ;;  %v61_v5 = vsel %vm54_vm0, %v50_v4, 0.0  ;;  %v64_v17 = vsel %vm54_vm0, %v51_v15, 0.0  ;;  %v124_v18 = vld [vmem:[%s10682_s1] sm:$0xff]  ;;  %v125_v19 = vld [vmem:[%s10682_s1 + $0x8] sm:$0xff]  ;;  %v126_v20 = vld [vmem:[%s10682_s1 + $0x10] sm:$0xff]  ;;  %vm147_vm1 = vcmask 1044480  }
   0x4   :  { %v8309_v21 = vpack.c.bf16 %v125_v19, %v124_v18  ;;  %v127_v22 = vld [vmem:[%s10682_s1 + $0x18] sm:$0xff]  ;;  %v128_v24 = vld [vmem:[%s10682_s1 + $0x20] sm:$0xff]  ;;  %v129_v25 = vld [vmem:[%s10682_s1 + $0x28] sm:$0x1f]  ;;  %vm9260_vm2 = vmmov 1   ;;  %vm245_vm4 = vcmask 261120  }
   0x5   :  { %v8313_v23 = vpack.c.bf16 %v127_v22, %v126_v20  ;;  %v8317_v26 = vpack.c.bf16 %v129_v25, %v128_v24  ;;  %vm8318_vm3 = vmpackc.low %vm147_vm1, %vm9260_vm2  ;;  %v7170_v43 = vld [vmem:[%s10694_s13] ss:$0 sm:$0xff]  ;;  %v7171_v46 = vld [vmem:[%s10694_s13 + $0x1] ss:$0 sm:$0xff]  ;;  %vm351_vm5 = vcmask 64512   ;;  %s9261_s29 = smov 88  }
   0x6   :  { %8310 = vmatprep.subr.bf16.mxu0 %v8309_v21  ;;  %v236_v56 = vld [vmem:[%s10683_s2] sm:$0xff]  ;;  %v237_v57 = vld [vmem:[%s10683_s2 + $0x8] sm:$0xff]  ;;  %v238_v63 = vld [vmem:[%s10683_s2 + $0x10] sm:$0xff]  ;;  %s9262_s30 = smov 96   ;;  %s9263_s15 = smov 120   ;;  %vm437_vm7 = vcmask 130048  }
   0x7   :  { %59 = vadd.xlane.f32.xlu0 %v58_v3  ;;  %8312 = vmatpush3.bf16.msra.mxu0 %v8309_v21  ;;  %v8323_v58 = vpack.c.bf16 %v237_v57, %v236_v56  ;;  %v7178_v18 = vld [vmem:[%s10694_s13 + $0x3] ss:$0 sm:$0xff]  ;;  %vm9452_vm6 = vmpackc.low %vm351_vm5, %vm351_vm5  ;;  %s9264_s1 = smov 56   ;;  %s9265_s16 = smov 64   ;;  %vm1175_vm8 = vcmask 195584   ;;  %vm4359_vm9 = vcmask 523264  }
   0x8   :  { %8314 = vmatprep.subr.bf16.mxu0 %v8313_v23  ;;  %s9266_s17 = smov 80   ;;  %s9267_s18 = smov 112   ;;  %vm6851_vm10 = vcmask 31744   ;;  %vm6881_vm11 = vcmask 1043456  }
   0x9   :  { %8324 = vmatprep.subr.bf16.mxu1 %v8323_v58  ;;  %s9268_s19 = smov 48   ;;  %s9269_s20 = smov 104  }
   0xa   :  { %8326 = vmatpush3.bf16.msra.mxu1 %v8323_v58  ;;  %s9270_s21 = smov 72   ;;  %s9271_s22 = smov 40  }
   0xb   :  { %62 = vadd.xlane.f32.xlu0 %v61_v5  ;;  %8316 = vmatpush3.bf16.msra.mxu0 %v8313_v23  ;;  %s10700_s23 = smov 8   ;;  %s10698_s24 = smov 16  }
   0xc   :  { %8319 = vmatprep.subr.msk.bf16.mxu0 %vm8318_vm3, %v8317_v26  ;;  %s10696_s25 = smov 24  }
   0xf   :  { %8322 = vmatpush3.bf16.msk.msra.mxu0 %vm8318_vm3, %v8317_v26 }
  0x90   :  { %v57_v6 = vpop.xlane.xlu0 %56 }
  0x91   :  { %v68_v7 = vmul.f32 0.022222223, %v57_v6 }
  0x93   :  { %v72_v8 = vsub.f32 %v48_v0, %v68_v7  ;;  %v239_v0 = vld [vmem:[%s10683_s2 + $0x18] sm:$0xff] }
  0x94   :  { %v60_v9 = vpop.xlane.xlu0 %59 }
  0x95   :  { %v69_v10 = vmul.f32 0.022222223, %v60_v9  ;;  %v76_v11 = vmul.f32 %v72_v8, %v72_v8  ;;  %v7172_v9 = vld [vmem:[%s10694_s13 + $0x2] ss:$0 sm:$0xff] }
  0x97   :  { %v73_v12 = vsub.f32 %v49_v1, %v69_v10  ;;  %v80_v13 = vsel %vm54_vm0, %v76_v11, 0.0  ;;  %v8327_v1 = vpack.c.bf16 %v239_v0, %v238_v63 }
  0x98   :  { %81 = vadd.xlane.f32.xlu1 %v80_v13  ;;  %v63_v27 = vpop.xlane.xlu0 %62 }
  0x99   :  { %v77_v14 = vmul.f32 %v73_v12, %v73_v12  ;;  %v70_v28 = vmul.f32 0.022222223, %v63_v27  ;;  %8328 = vmatprep.subr.bf16.mxu1 %v8327_v1 }
  0x9a   :  { %8330 = vmatpush3.bf16.msra.mxu1 %v8327_v1 }
  0x9b   :  { %v83_v16 = vsel %vm54_vm0, %v77_v14, 0.0  ;;  %v74_v29 = vsub.f32 %v50_v4, %v70_v28 }
  0x9c   :  { %84 = vadd.xlane.f32.xlu1 %v83_v16 }
  0x9d   :  { %v78_v30 = vmul.f32 %v74_v29, %v74_v29 }
  0x9f   :  { %v86_v31 = vsel %vm54_vm0, %v78_v30, 0.0 }
  0xa0   :  { %65 = vadd.xlane.f32.xlu1 %v64_v17  ;;  %87 = vadd.xlane.f32.xlu0 %v86_v31 }
 0x125   :  { %v82_v32 = vpop.xlane.xlu1 %81 }
 0x126   :  { %v92_v33 = vmul.f32 0.022222223, %v82_v32 }
 0x128   :  { %v96_v34 = vadd.f32 1e-05, %v92_v33 }
 0x129   :  { %v85_v35 = vpop.xlane.xlu1 %84 }
 0x12a   :  { %8964 = vrsqrt.f32 %v96_v34  ;;  %v93_v36 = vmul.f32 0.022222223, %v85_v35 }
 0x12c   :  { %v97_v37 = vadd.f32 1e-05, %v93_v36 }
 0x12d   :  { %v66_v38 = vpop.xlane.xlu1 %65  ;;  %v88_v53 = vpop.xlane.xlu0 %87 }
 0x12e   :  { %8966 = vrsqrt.f32 %v97_v37  ;;  %v71_v39 = vmul.f32 0.022222223, %v66_v38  ;;  %v94_v54 = vmul.f32 0.022222223, %v88_v53 }
 0x130   :  { %v75_v40 = vsub.f32 %v51_v15, %v71_v39  ;;  %v98_v55 = vadd.f32 1e-05, %v94_v54 }
 0x132   :  { %v79_v41 = vmul.f32 %v75_v40, %v75_v40  ;;  %8968 = vrsqrt.f32 %v98_v55 }
 0x134   :  { %v8965_v42 = vpop.eup %8964  ;;  %v89_v44 = vsel %vm54_vm0, %v79_v41, 0.0 }
 0x135   :  { %v104_v45 = vmul.f32 %v8965_v42, %v72_v8  ;;  %90 = vadd.xlane.f32.xlu1 %v89_v44 }
 0x137   :  { %v112_v47 = vmul.f32 %v7170_v43, %v104_v45 }
 0x138   :  { %v8967_v48 = vpop.eup %8966 }
 0x139   :  { %v120_v49 = vadd.f32 %v7171_v46, %v112_v47  ;;  %v105_v50 = vmul.f32 %v8967_v48, %v73_v12 }
 0x13b   :  { %7749 = vmatprep.mubr.msk.f32.mxu0 %vm54_vm0, %v120_v49  ;;  %v113_v51 = vmul.f32 %v7170_v43, %v105_v50 }
 0x13c   :  { %v8969_v59 = vpop.eup %8968 }
 0x13d   :  { %v121_v52 = vadd.f32 %v7171_v46, %v113_v51  ;;  %v106_v60 = vmul.f32 %v8969_v59, %v74_v29 }
 0x13f   :  { %7750 = vmatmul.mubr.msk.f32.vlgmr.msra.gmra.mrb[0].mxu0 %vm54_vm0, %v121_v52  ;;  %v114_v61 = vmul.f32 %v7170_v43, %v106_v60 }
 0x141   :  { %v122_v62 = vadd.f32 %v7171_v46, %v114_v61 }
 0x143   :  { %7752 = vmatprep.mubr.msk.f32.mxu0 %vm54_vm0, %v122_v62 }
 0x1c2   :  { %v91_v2 = vpop.xlane.xlu1 %90 }
 0x1c3   :  { %v95_v3 = vmul.f32 0.022222223, %v91_v2 }
 0x1c5   :  { %v99_v4 = vadd.f32 1e-05, %v95_v3 }
 0x1c7   :  { %8970 = vrsqrt.f32 %v99_v4 }
 0x1d1   :  { %v8971_v5 = vpop.eup %8970 }
 0x1d2   :  { %v107_v6 = vmul.f32 %v8971_v5, %v75_v40 }
 0x1d4   :  { %v115_v7 = vmul.f32 %v7170_v43, %v107_v6 }
 0x1d6   :  { %v123_v8 = vadd.f32 %v7171_v46, %v115_v7 }
 0x1d8   :  { %7753 = vmatmul.mubr.msk.f32.gmra.mrb[2].mxu0 %vm54_vm0, %v123_v8 }
 0x212   :  { %v7751_v10 = vpop.f32.mrb[0].mxu0 }
 0x213   :  { %v217_v11 = vpop.f32.mrb[1].mxu0  ;;  %v9417_v13 = vadd.f32 %v7751_v10, %v7172_v9 }
 0x214   :  { %v9415_v12 = vadd.f32 %v7172_v9, %v217_v11 }
 0x216   :  { %7763 = vmatprep.mubr.msk.f32.mxu1 %vm245_vm4, %v9415_v12 }
 0x217   :  { %7764 = vmatmul.mubr.msk.f32.vlgmr.msra.gmra.mrb[0].mxu1 %vm245_vm4, %v9417_v13 }
 0x2ab   :  { %v7754_v14 = vpop.f32.mrb[2].mxu0 }
 0x2ac   :  { %v9423_v15 = vadd.f32 %v7754_v14, %v7172_v9  ;;  %v227_v16 = vpop.f32.mrb[3].mxu0 }
 0x2ad   :  { %v9425_v17 = vadd.f32 %v7172_v9, %v227_v16 }
 0x2af   :  { %7766 = vmatprep.mubr.msk.f32.mxu1 %vm245_vm4, %v9425_v17 }
 0x2b0   :  { %7767 = vmatmul.mubr.msk.f32.gmra.mrb[2].mxu1 %vm245_vm4, %v9423_v15 }
 0x2ea   :  { %v7765_v19 = vpop.f32.mrb[0].mxu1 }
 0x2eb   :  { %v330_v20 = vadd.f32 %v7765_v19, %v7178_v18  ;;  %v324_v21 = vpop.f32.mrb[1].mxu1 }
 0x2ec   :  { %v325_v22 = vadd.f32 %v7178_v18, %v324_v21 }
 0x2ed   :  { %v9446_v25 = vmul.f32 0.35355338, %v330_v20 }
 0x2ee   :  { %v9434_v23 = vpack.i.bf16 %v330_v20, %v325_v22  ;;  %v9436_v24 = vmul.f32 0.35355338, %v325_v22 }
 0x2f0   :  { %8730 = vrot.lane.b32.xlu1 %v9434_v23, %s9261_s29  ;;  %8725 = vrot.lane.b32.xlu0 %v9434_v23, %s9262_s30 }
 0x2f1   :  { %7773 = vmatprep.mubr.msk.f32.mxu1 %vm351_vm5, %v9436_v24 }
 0x2f4   :  { %547 = vrot.lane.b32.xlu1 %v9436_v24, %s9263_s15 }
 0x2f8   :  { %549 = vrot.lane.b32.xlu1 %v9446_v25, %s9263_s15 }
 0x362   :  { %v8731_v26 = vpop.permute.xlu1 %8730  ;;  %v8726_v27 = vpop.permute.xlu0 %8725 }
 0x363   :  { %v8733_v28 = vunpack.i.h.bf16 %v8731_v26  ;;  %v8732_v29 = vunpack.i.l.bf16 %v8731_v26  ;;  %v8728_v30 = vunpack.i.h.bf16 %v8726_v27  ;;  %v8727_v31 = vunpack.i.l.bf16 %v8726_v27 }
 0x365   :  { %v8331_v33 = vpack.c.bf16 %v8728_v30, %v8727_v31  ;;  %v8341_v34 = vpack.c.bf16 %v8733_v28, %v8732_v29 }
 0x366   :  { %v548_v35 = vpop.permute.xlu1 %547 }
 0x367   :  { %8333 = vmatprep.subr.msk.bf16.mxu1 %vm9452_vm6, %v8331_v33 }
 0x368   :  { %8336 = vmatpush3.bf16.xpose.msk.msra.mxu1 %vm9452_vm6, %v8331_v33 }
 0x369   :  { %8343 = vmatprep.subr.msk.bf16.mxu1 %vm9452_vm6, %v8341_v34 }
 0x36a   :  { %v550_v36 = vpop.permute.xlu1 %549 }
 0x36f   :  { %7774 = vmatmul.mubr.msk.f32.vlgmr.msra.gmra.mrb[4].mxu1 %vm351_vm5, %v9446_v25 }
 0x370   :  { %8346 = vmatpush3.bf16.xpose.msk.msra.mxu1 %vm9452_vm6, %v8341_v34  ;;  %7787 = vmatprep.mubr.msk.f32.mxu1 %vm351_vm5, %v548_v35 }
 0x377   :  { %7788 = vmatmul.mubr.msk.f32.vlgmr.msra.gmra.mrb[6].mxu1 %vm351_vm5, %v550_v36 }
 0x383   :  { %v7768_v37 = vpop.f32.mrb[2].mxu1 }
 0x384   :  { %v9468_v38 = vadd.f32 %v7768_v37, %v7178_v18  ;;  %v334_v39 = vpop.f32.mrb[3].mxu1 }
 0x385   :  { %v9470_v40 = vadd.f32 %v7178_v18, %v334_v39 }
 0x387   :  { %v9474_v41 = vpack.i.bf16 %v9468_v38, %v9470_v40 }
 0x442   :  { %v7775_v42 = vpop.f32.mrb[4].mxu1 }
 0x443   :  { %v428_v43 = vpop.f32.mrb[5].mxu1  ;;  %v441_v44 = vsel %vm437_vm7, %v7775_v42, -inf }
 0x444   :  { %442 = vmax.xlane.f32.xlu1 %v441_v44  ;;  %v438_v45 = vsel %vm437_vm7, %v428_v43, -inf }
 0x445   :  { %439 = vmax.xlane.f32.xlu0 %v438_v45 }
 0x44a   :  { %v7789_v46 = vpop.f32.mrb[6].mxu1 }
 0x44b   :  { %v629_v47 = vpop.f32.mrb[7].mxu1  ;;  %v641_v49 = vsel %vm437_vm7, %v7789_v46, -inf }
 0x44c   :  { %v638_v48 = vsel %vm437_vm7, %v629_v47, -inf }
 0x44d   :  { %639 = vmax.xlane.f32.xlu0 %v638_v48 }
 0x451   :  { %642 = vmax.xlane.f32.xlu0 %v641_v49 }
 0x4d1   :  { %v443_v50 = vpop.xlane.xlu1 %442 }
 0x4d2   :  { %v445_v51 = vsub.f32 %v7775_v42, %v443_v50  ;;  %v440_v52 = vpop.xlane.xlu0 %439 }
 0x4d3   :  { %v444_v53 = vsub.f32 %v428_v43, %v440_v52 }
 0x4d4   :  { %v448_v54 = vmul.f32 1.442695, %v445_v51 }
 0x4d5   :  { %v446_v55 = vmul.f32 1.442695, %v444_v53 }
 0x4d6   :  { %8972 = vpow2.f32 %v448_v54 }
 0x4d7   :  { %8974 = vpow2.f32 %v446_v55 }
 0x4da   :  { %v640_v56 = vpop.xlane.xlu0 %639 }
 0x4db   :  { %v644_v57 = vsub.f32 %v629_v47, %v640_v56 }
 0x4dd   :  { %v646_v58 = vmul.f32 1.442695, %v644_v57 }
 0x4de   :  { %v643_v59 = vpop.xlane.xlu0 %642 }
 0x4df   :  { %8976 = vpow2.f32 %v646_v58  ;;  %v645_v60 = vsub.f32 %v7789_v46, %v643_v59 }
 0x4e0   :  { %v8973_v61 = vpop.eup %8972 }
 0x4e1   :  { %v8975_v62 = vpop.eup %8974  ;;  %v648_v63 = vmul.f32 1.442695, %v645_v60  ;;  %v453_v0 = vsel %vm437_vm7, %v8973_v61, 0.0 }
 0x4e2   :  { %454 = vadd.xlane.f32.xlu1 %v453_v0  ;;  %v450_v1 = vsel %vm437_vm7, %v8975_v62, 0.0 }
 0x4e3   :  { %8978 = vpow2.f32 %v648_v63  ;;  %451 = vadd.xlane.f32.xlu0 %v450_v1 }
 0x4e9   :  { %v8977_v2 = vpop.eup %8976 }
 0x4ea   :  { %v650_v3 = vsel %vm437_vm7, %v8977_v2, 0.0 }
 0x4eb   :  { %651 = vadd.xlane.f32.xlu0 %v650_v3 }
 0x4ed   :  { %v8979_v4 = vpop.eup %8978 }
 0x4ee   :  { %v653_v5 = vsel %vm437_vm7, %v8979_v4, 0.0 }
 0x4ef   :  { %654 = vadd.xlane.f32.xlu1 %v653_v5 }
 0x500   :  { %8740 = vrot.lane.b32.xlu1 %v9434_v23, %s9264_s1 }
 0x501   :  { %8735 = vrot.lane.b32.xlu0 %v9434_v23, %s9265_s16 }
 0x504   :  { %8745 = vrot.lane.b32.xlu1 %v9434_v23, %s9266_s17 }
 0x505   :  { %749 = vrot.lane.b32.xlu0 %v9446_v25, %s9267_s18 }
 0x508   :  { %747 = vrot.lane.b32.xlu1 %v9436_v24, %s9267_s18 }
 0x56f   :  { %v455_v7 = vpop.xlane.xlu1 %454 }
 0x570   :  { %v452_v6 = vpop.xlane.xlu0 %451 }
 0x571   :  { %8980 = vrcp.f32 %v452_v6 }
 0x572   :  { %8982 = vrcp.f32 %v455_v7 }
 0x578   :  { %v652_v8 = vpop.xlane.xlu0 %651 }
 0x579   :  { %8984 = vrcp.f32 %v652_v8 }
 0x57b   :  { %v8981_v9 = vpop.eup %8980 }
 0x57c   :  { %v655_v10 = vpop.xlane.xlu1 %654  ;;  %v8736_v11 = vpop.permute.xlu0 %8735  ;;  %v458_v14 = vmul.f32 %v8981_v9, %v8975_v62 }
 0x57d   :  { %8986 = vrcp.f32 %v655_v10  ;;  %v8738_v16 = vunpack.i.h.bf16 %v8736_v11  ;;  %v8737_v18 = vunpack.i.l.bf16 %v8736_v11  ;;  %v8983_v20 = vpop.eup %8982 }
 0x57e   :  { %7780 = vmatprep.mubr.msk.f32.mxu0 %vm437_vm7, %v458_v14  ;;  %v459_v28 = vmul.f32 %v8983_v20, %v8973_v61 }
 0x57f   :  { %v8337_v19 = vpack.c.bf16 %v8738_v16, %v8737_v18 }
 0x580   :  { %v8741_v21 = vpop.permute.xlu1 %8740  ;;  %v750_v42 = vpop.permute.xlu0 %749 }
 0x581   :  { %v8743_v22 = vunpack.i.h.bf16 %v8741_v21  ;;  %v8742_v26 = vunpack.i.l.bf16 %v8741_v21  ;;  %8338 = vmatprep.subr.bf16.mxu0 %v8337_v19 }
 0x582   :  { %8340 = vmatpush3.bf16.msra.mxu0 %v8337_v19 }
 0x583   :  { %v8985_v27 = vpop.eup %8984  ;;  %v8347_v29 = vpack.c.bf16 %v8743_v22, %v8742_v26 }
 0x584   :  { %v8746_v30 = vpop.permute.xlu1 %8745  ;;  %v658_v31 = vmul.f32 %v8985_v27, %v8977_v2 }
 0x585   :  { %v8748_v33 = vunpack.i.h.bf16 %v8746_v30  ;;  %v8747_v34 = vunpack.i.l.bf16 %v8746_v30  ;;  %7781 = vmatmul.mubr.msk.f32.vlgmr.msra.gmra.mrb[4].mxu0 %vm437_vm7, %v459_v28  ;;  %8348 = vmatprep.subr.bf16.mxu0 %v8347_v29 }
 0x586   :  { %8350 = vmatpush3.bf16.msra.mxu0 %v8347_v29  ;;  %7794 = vmatprep.mubr.msk.f32.mxu0 %vm437_vm7, %v658_v31 }
 0x587   :  { %v8987_v35 = vpop.eup %8986  ;;  %v8351_v36 = vpack.c.bf16 %v8748_v33, %v8747_v34 }
 0x588   :  { %v659_v37 = vmul.f32 %v8987_v35, %v8979_v4  ;;  %v748_v39 = vpop.permute.xlu1 %747 }
 0x589   :  { %8353 = vmatprep.subr.msk.bf16.mxu0 %vm9452_vm6, %v8351_v36 }
 0x58a   :  { %7795 = vmatmul.mubr.msk.f32.vlgmr.msra.gmra.mrb[6].mxu0 %vm437_vm7, %v659_v37 }
 0x58b   :  { %7801 = vmatprep.mubr.msk.f32.mxu0 %vm351_vm5, %v748_v39 }
 0x58f   :  { %8356 = vmatpush3.bf16.xpose.msk.msra.mxu0 %vm9452_vm6, %v8351_v36 }
 0x596   :  { %7802 = vmatmul.mubr.msk.f32.vlgmr.msra.gmra.mrb[8].mxu0 %vm351_vm5, %v750_v42 }
 0x658   :  { %v9504_v43 = vpop.f32.mrb[4].mxu0 }
 0x659   :  { %v9506_v44 = vpop.f32.mrb[5].mxu0 }
 0x65d   :  { %v9508_v45 = vpop.f32.mrb[6].mxu0 }
 0x65e   :  { %v9510_v46 = vpop.f32.mrb[7].mxu0 }
 0x669   :  { %v7803_v47 = vpop.f32.mrb[8].mxu0 }
 0x66a   :  { %v829_v48 = vpop.f32.mrb[9].mxu0  ;;  %v841_v49 = vsel %vm437_vm7, %v7803_v47, -inf }
 0x66b   :  { %842 = vmax.xlane.f32.xlu0 %v841_v49  ;;  %v838_v50 = vsel %vm437_vm7, %v829_v48, -inf }
 0x66c   :  { %839 = vmax.xlane.f32.xlu1 %v838_v50 }
 0x67d   :  { %8750 = vrot.lane.b32.xlu1 %v9434_v23, %s9268_s19 }
 0x681   :  { %947 = vrot.lane.b32.xlu1 %v9436_v24, %s9269_s20 }
 0x685   :  { %949 = vrot.lane.b32.xlu1 %v9446_v25, %s9269_s20 }
 0x6f8   :  { %v843_v51 = vpop.xlane.xlu0 %842 }
 0x6f9   :  { %v845_v52 = vsub.f32 %v7803_v47, %v843_v51  ;;  %v840_v53 = vpop.xlane.xlu1 %839 }
 0x6fa   :  { %v844_v54 = vsub.f32 %v829_v48, %v840_v53 }
 0x6fb   :  { %v848_v55 = vmul.f32 1.442695, %v845_v52 }
 0x6fc   :  { %v846_v56 = vmul.f32 1.442695, %v844_v54 }
 0x6fd   :  { %8988 = vpow2.f32 %v848_v55  ;;  %v8751_v57 = vpop.permute.xlu1 %8750  ;;  %v9548_v55 = vmul.f32 0.35355338, %v9470_v40 }
 0x6fe   :  { %v8753_v58 = vunpack.i.h.bf16 %v8751_v57  ;;  %v8752_v59 = vunpack.i.l.bf16 %v8751_v57  ;;  %8990 = vpow2.f32 %v846_v56  ;;  %v9556_v56 = vmul.f32 0.35355338, %v9468_v38 }
 0x700   :  { %v8357_v60 = vpack.c.bf16 %v8753_v58, %v8752_v59 }
 0x701   :  { %v948_v9 = vpop.permute.xlu1 %947 }
 0x702   :  { %8358 = vmatprep.subr.bf16.mxu1 %v8357_v60 }
 0x703   :  { %8360 = vmatpush3.bf16.msra.mxu1 %v8357_v60 }
 0x705   :  { %v950_v10 = vpop.permute.xlu1 %949 }
 0x707   :  { %v8989_v61 = vpop.eup %8988 }
 0x708   :  { %v853_v24 = vsel %vm437_vm7, %v8989_v61, 0.0  ;;  %v8991_v62 = vpop.eup %8990 }
 0x709   :  { %854 = vadd.xlane.f32.xlu0 %v853_v24  ;;  %v850_v25 = vsel %vm437_vm7, %v8991_v62, 0.0 }
 0x70d   :  { %851 = vadd.xlane.f32.xlu0 %v850_v25 }
 0x723   :  { %8755 = vrot.lane.b32.xlu0 %v9434_v23, %s9270_s21 }
 0x796   :  { %v855_v63 = vpop.xlane.xlu0 %854 }
 0x797   :  { %8992 = vrcp.f32 %v855_v63 }
 0x79a   :  { %v852_v0 = vpop.xlane.xlu0 %851 }
 0x79b   :  { %8994 = vrcp.f32 %v852_v0 }
 0x79e   :  { %v8756_v1 = vpop.permute.xlu0 %8755 }
 0x79f   :  { %v8758_v2 = vunpack.i.h.bf16 %v8756_v1  ;;  %v8757_v3 = vunpack.i.l.bf16 %v8756_v1 }
 0x7a1   :  { %v8361_v4 = vpack.c.bf16 %v8758_v2, %v8757_v3  ;;  %v8993_v5 = vpop.eup %8992 }
 0x7a2   :  { %v859_v8 = vmul.f32 %v8993_v5, %v8989_v61 }
 0x7a3   :  { %8363 = vmatprep.subr.msk.bf16.mxu1 %vm9452_vm6, %v8361_v4 }
 0x7a5   :  { %v8995_v6 = vpop.eup %8994 }
 0x7a6   :  { %v858_v7 = vmul.f32 %v8995_v6, %v8991_v62 }
 0x7a8   :  { %7808 = vmatprep.mubr.msk.f32.mxu1 %vm437_vm7, %v858_v7 }
 0x7a9   :  { %7809 = vmatmul.mubr.msk.f32.vlgmr.msra.gmra.mrb[8].mxu1 %vm437_vm7, %v859_v8 }
 0x7aa   :  { %8366 = vmatpush3.bf16.xpose.msk.msra.mxu1 %vm9452_vm6, %v8361_v4  ;;  %7815 = vmatprep.mubr.msk.f32.mxu1 %vm351_vm5, %v948_v9 }
 0x7b1   :  { %7816 = vmatmul.mubr.msk.f32.vlgmr.msra.gmra.mrb[10].mxu1 %vm351_vm5, %v950_v10 }
 0x87c   :  { %v9532_v11 = vpop.f32.mrb[8].mxu1 }
 0x87d   :  { %v9534_v14 = vpop.f32.mrb[9].mxu1 }
 0x884   :  { %v7817_v16 = vpop.f32.mrb[10].mxu1 }
 0x885   :  { %v1029_v18 = vpop.f32.mrb[11].mxu1  ;;  %v1041_v19 = vsel %vm437_vm7, %v7817_v16, -inf }
 0x886   :  { %1042 = vmax.xlane.f32.xlu0 %v1041_v19  ;;  %v1038_v20 = vsel %vm437_vm7, %v1029_v18, -inf }
 0x887   :  { %1039 = vmax.xlane.f32.xlu1 %v1038_v20 }
 0x898   :  { %8760 = vrot.lane.b32.xlu1 %v9434_v23, %s9271_s22 }
 0x913   :  { %v1043_v21 = vpop.xlane.xlu0 %1042 }
 0x914   :  { %v1045_v22 = vsub.f32 %v7817_v16, %v1043_v21  ;;  %v1040_v26 = vpop.xlane.xlu1 %1039 }
 0x915   :  { %v1044_v27 = vsub.f32 %v1029_v18, %v1040_v26 }
 0x916   :  { %v1048_v28 = vmul.f32 1.442695, %v1045_v22 }
 0x917   :  { %v1046_v29 = vmul.f32 1.442695, %v1044_v27 }
 0x918   :  { %8996 = vpow2.f32 %v1048_v28  ;;  %v8761_v30 = vpop.permute.xlu1 %8760 }
 0x919   :  { %v8763_v31 = vunpack.i.h.bf16 %v8761_v30  ;;  %v8762_v33 = vunpack.i.l.bf16 %v8761_v30  ;;  %8998 = vpow2.f32 %v1046_v29 }
 0x91b   :  { %v8367_v34 = vpack.c.bf16 %v8763_v31, %v8762_v33 }
 0x91d   :  { %8368 = vmatprep.subr.bf16.mxu0 %v8367_v34 }
 0x91e   :  { %8370 = vmatpush3.bf16.msra.mxu0 %v8367_v34 }
 0x922   :  { %v8997_v35 = vpop.eup %8996 }
 0x923   :  { %v1053_v36 = vsel %vm437_vm7, %v8997_v35, 0.0  ;;  %v8999_v37 = vpop.eup %8998 }
 0x924   :  { %1054 = vadd.xlane.f32.xlu0 %v1053_v36  ;;  %v1050_v23 = vsel %vm437_vm7, %v8999_v37, 0.0 }
 0x928   :  { %1051 = vadd.xlane.f32.xlu0 %v1050_v23 }
 0x93e   :  { %8765 = vrot.lane.b32.xlu0 %v9474_v41, %s9262_s30 }
 0x9b1   :  { %v1055_v39 = vpop.xlane.xlu0 %1054 }
 0x9b2   :  { %9000 = vrcp.f32 %v1055_v39 }
 0x9b5   :  { %v1052_v42 = vpop.xlane.xlu0 %1051 }
 0x9b6   :  { %9002 = vrcp.f32 %v1052_v42 }
 0x9b9   :  { %v8766_v47 = vpop.permute.xlu0 %8765 }
 0x9ba   :  { %v8768_v48 = vunpack.i.h.bf16 %v8766_v47  ;;  %v8767_v49 = vunpack.i.l.bf16 %v8766_v47 }
 0x9bc   :  { %v8371_v50 = vpack.c.bf16 %v8768_v48, %v8767_v49  ;;  %v9001_v51 = vpop.eup %9000 }
 0x9bd   :  { %v1059_v54 = vmul.f32 %v9001_v51, %v8997_v35 }
 0x9be   :  { %8373 = vmatprep.subr.msk.bf16.mxu0 %vm9452_vm6, %v8371_v50 }
 0x9c0   :  { %v9003_v52 = vpop.eup %9002 }
 0x9c1   :  { %v1058_v53 = vmul.f32 %v9003_v52, %v8999_v37 }
 0x9c3   :  { %7822 = vmatprep.mubr.msk.f32.mxu0 %vm437_vm7, %v1058_v53 }
 0x9c4   :  { %7823 = vmatmul.mubr.msk.f32.vlgmr.msra.gmra.mrb[10].mxu0 %vm437_vm7, %v1059_v54 }
 0x9c5   :  { %8376 = vmatpush3.bf16.xpose.msk.msra.mxu0 %vm9452_vm6, %v8371_v50  ;;  %7829 = vmatprep.mubr.msk.f32.mxu0 %vm351_vm5, %v9548_v55 }
 0x9cc   :  { %7830 = vmatmul.mubr.msk.f32.vlgmr.msra.gmra.mrb[12].mxu0 %vm351_vm5, %v9556_v56 }
 0xa97   :  { %v9560_v57 = vpop.f32.mrb[10].mxu0 }
 0xa98   :  { %v9562_v58 = vpop.f32.mrb[11].mxu0 }
 0xa9f   :  { %v7831_v40 = vpop.f32.mrb[12].mxu0 }
 0xaa0   :  { %v1262_v59 = vpop.f32.mrb[13].mxu0  ;;  %v1274_v60 = vsel %vm437_vm7, %v7831_v40, -inf }
 0xaa1   :  { %1275 = vmax.xlane.f32.xlu0 %v1274_v60  ;;  %v1271_v61 = vsel %vm437_vm7, %v1262_v59, -inf }
 0xaa2   :  { %1272 = vmax.xlane.f32.xlu1 %v1271_v61 }
 0xab3   :  { %8770 = vrot.lane.b32.xlu1 %v9474_v41, %s9265_s16 }
 0xab7   :  { %1380 = vrot.lane.b32.xlu1 %v9548_v55, %s9263_s15 }
 0xb2e   :  { %v1276_v38 = vpop.xlane.xlu0 %1275 }
 0xb2f   :  { %v1278_v24 = vsub.f32 %v7831_v40, %v1276_v38  ;;  %v1273_v62 = vpop.xlane.xlu1 %1272 }
 0xb30   :  { %v1277_v25 = vsub.f32 %v1262_v59, %v1273_v62 }
 0xb31   :  { %v1281_v63 = vmul.f32 1.442695, %v1278_v24 }
 0xb32   :  { %v1279_v0 = vmul.f32 1.442695, %v1277_v25 }
 0xb33   :  { %9004 = vpow2.f32 %v1281_v63  ;;  %v8771_v1 = vpop.permute.xlu1 %8770 }
 0xb34   :  { %9006 = vpow2.f32 %v1279_v0  ;;  %v8773_v2 = vunpack.i.h.bf16 %v8771_v1  ;;  %v8772_v3 = vunpack.i.l.bf16 %v8771_v1 }
 0xb36   :  { %v8377_v4 = vpack.c.bf16 %v8773_v2, %v8772_v3 }
 0xb37   :  { %v1381_v9 = vpop.permute.xlu1 %1380 }
 0xb38   :  { %8378 = vmatprep.subr.bf16.mxu1 %v8377_v4 }
 0xb39   :  { %8380 = vmatpush3.bf16.msra.mxu1 %v8377_v4 }
 0xb3d   :  { %v9005_v5 = vpop.eup %9004 }
 0xb3e   :  { %v9007_v6 = vpop.eup %9006  ;;  %v1286_v7 = vsel %vm437_vm7, %v9005_v5, 0.0 }
 0xb3f   :  { %1287 = vadd.xlane.f32.xlu0 %v1286_v7  ;;  %v1283_v8 = vsel %vm437_vm7, %v9007_v6, 0.0 }
 0xb40   :  { %1284 = vadd.xlane.f32.xlu1 %v1283_v8 }
 0xb51   :  { %1382 = vrot.lane.b32.xlu1 %v9556_v56, %s9263_s15 }
 0xb55   :  { %8775 = vrot.lane.b32.xlu0 %v9474_v41, %s9261_s29 }
 0xbcc   :  { %v1288_v10 = vpop.xlane.xlu0 %1287 }
 0xbcd   :  { %9008 = vrcp.f32 %v1288_v10  ;;  %v1285_v16 = vpop.xlane.xlu1 %1284 }
 0xbce   :  { %9010 = vrcp.f32 %v1285_v16 }
 0xbd0   :  { %v8776_v18 = vpop.permute.xlu0 %8775 }
 0xbd1   :  { %v8778_v19 = vunpack.i.h.bf16 %v8776_v18  ;;  %v8777_v20 = vunpack.i.l.bf16 %v8776_v18  ;;  %v1383_v29 = vpop.permute.xlu1 %1382 }
 0xbd3   :  { %v8381_v21 = vpack.c.bf16 %v8778_v19, %v8777_v20 }
 0xbd5   :  { %8383 = vmatprep.subr.msk.bf16.mxu1 %vm9452_vm6, %v8381_v21 }
 0xbd7   :  { %v9009_v22 = vpop.eup %9008 }
 0xbd8   :  { %v9011_v26 = vpop.eup %9010  ;;  %v1292_v28 = vmul.f32 %v9009_v22, %v9005_v5 }
 0xbd9   :  { %v1291_v27 = vmul.f32 %v9011_v26, %v9007_v6 }
 0xbdb   :  { %7836 = vmatprep.mubr.msk.f32.mxu1 %vm437_vm7, %v1291_v27 }
 0xbdc   :  { %7837 = vmatmul.mubr.msk.f32.vlgmr.msra.gmra.mrb[12].mxu1 %vm437_vm7, %v1292_v28 }
 0xbdd   :  { %8386 = vmatpush3.bf16.xpose.msk.msra.mxu1 %vm9452_vm6, %v8381_v21  ;;  %7843 = vmatprep.mubr.msk.f32.mxu1 %vm351_vm5, %v1381_v9 }
 0xbe4   :  { %7844 = vmatmul.mubr.msk.f32.vlgmr.msra.gmra.mrb[14].mxu1 %vm351_vm5, %v1383_v29 }
 0xcaf   :  { %v9584_v30 = vpop.f32.mrb[12].mxu1 }
 0xcb0   :  { %v9586_v31 = vpop.f32.mrb[13].mxu1 }
 0xcb7   :  { %v7845_v33 = vpop.f32.mrb[14].mxu1 }
 0xcb8   :  { %v1462_v34 = vpop.f32.mrb[15].mxu1  ;;  %v1474_v35 = vsel %vm437_vm7, %v7845_v33, -inf }
 0xcb9   :  { %1475 = vmax.xlane.f32.xlu0 %v1474_v35  ;;  %v1471_v36 = vsel %vm437_vm7, %v1462_v34, -inf }
 0xcba   :  { %1472 = vmax.xlane.f32.xlu1 %v1471_v36 }
 0xccb   :  { %8780 = vrot.lane.b32.xlu1 %v9474_v41, %s9264_s1 }
 0xccf   :  { %1580 = vrot.lane.b32.xlu1 %v9548_v55, %s9267_s18 }
 0xcd3   :  { %1582 = vrot.lane.b32.xlu1 %v9556_v56, %s9267_s18 }
 0xd46   :  { %v1476_v37 = vpop.xlane.xlu0 %1475 }
 0xd47   :  { %v1478_v23 = vsub.f32 %v7845_v33, %v1476_v37  ;;  %v1473_v39 = vpop.xlane.xlu1 %1472 }
 0xd48   :  { %v1477_v42 = vsub.f32 %v1462_v34, %v1473_v39 }
 0xd49   :  { %v1481_v47 = vmul.f32 1.442695, %v1478_v23 }
 0xd4a   :  { %v1479_v48 = vmul.f32 1.442695, %v1477_v42 }
 0xd4b   :  { %9012 = vpow2.f32 %v1481_v47  ;;  %v8781_v49 = vpop.permute.xlu1 %8780 }
 0xd4c   :  { %v8783_v50 = vunpack.i.h.bf16 %v8781_v49  ;;  %v8782_v51 = vunpack.i.l.bf16 %v8781_v49  ;;  %9014 = vpow2.f32 %v1479_v48 }
 0xd4e   :  { %v8387_v52 = vpack.c.bf16 %v8783_v50, %v8782_v51 }
 0xd4f   :  { %v1581_v3 = vpop.permute.xlu1 %1580 }
 0xd50   :  { %8388 = vmatprep.subr.bf16.mxu0 %v8387_v52 }
 0xd51   :  { %8390 = vmatpush3.bf16.msra.mxu0 %v8387_v52 }
 0xd53   :  { %v1583_v4 = vpop.permute.xlu1 %1582 }
 0xd55   :  { %v9013_v53 = vpop.eup %9012 }
 0xd56   :  { %v1486_v54 = vsel %vm437_vm7, %v9013_v53, 0.0  ;;  %v9015_v40 = vpop.eup %9014 }
 0xd57   :  { %1487 = vadd.xlane.f32.xlu0 %v1486_v54  ;;  %v1483_v59 = vsel %vm437_vm7, %v9015_v40, 0.0 }
 0xd5b   :  { %1484 = vadd.xlane.f32.xlu0 %v1483_v59 }
 0xd71   :  { %8785 = vrot.lane.b32.xlu0 %v9474_v41, %s9266_s17 }
 0xde4   :  { %v1488_v60 = vpop.xlane.xlu0 %1487 }
 0xde5   :  { %9016 = vrcp.f32 %v1488_v60 }
 0xde8   :  { %v1485_v61 = vpop.xlane.xlu0 %1484 }
 0xde9   :  { %9018 = vrcp.f32 %v1485_v61 }
 0xdec   :  { %v8786_v38 = vpop.permute.xlu0 %8785 }
 0xded   :  { %v8788_v24 = vunpack.i.h.bf16 %v8786_v38  ;;  %v8787_v62 = vunpack.i.l.bf16 %v8786_v38 }
 0xdef   :  { %v8391_v25 = vpack.c.bf16 %v8788_v24, %v8787_v62  ;;  %v9017_v63 = vpop.eup %9016 }
 0xdf0   :  { %v1492_v2 = vmul.f32 %v9017_v63, %v9013_v53 }
 0xdf1   :  { %8393 = vmatprep.subr.msk.bf16.mxu0 %vm9452_vm6, %v8391_v25 }
 0xdf3   :  { %v9019_v0 = vpop.eup %9018 }
 0xdf4   :  { %v1491_v1 = vmul.f32 %v9019_v0, %v9015_v40 }
 0xdf6   :  { %7850 = vmatprep.mubr.msk.f32.mxu0 %vm437_vm7, %v1491_v1 }
 0xdf7   :  { %7851 = vmatmul.mubr.msk.f32.vlgmr.msra.gmra.mrb[14].mxu0 %vm437_vm7, %v1492_v2 }
 0xdf8   :  { %8396 = vmatpush3.bf16.xpose.msk.msra.mxu0 %vm9452_vm6, %v8391_v25  ;;  %7857 = vmatprep.mubr.msk.f32.mxu0 %vm351_vm5, %v1581_v3 }
 0xdff   :  { %7858 = vmatmul.mubr.msk.f32.vlgmr.msra.gmra.mrb[16].mxu0 %vm351_vm5, %v1583_v4  ;;  %v2010_v4 = vld [vmem:[%s10684_s3] sm:$0xff] }
 0xeca   :  { %v9608_v5 = vpop.f32.mrb[14].mxu0 }
 0xecb   :  { %v9610_v6 = vpop.f32.mrb[15].mxu0 }
 0xed2   :  { %v7859_v7 = vpop.f32.mrb[16].mxu0 }
 0xed3   :  { %v1662_v8 = vpop.f32.mrb[17].mxu0  ;;  %v1674_v9 = vsel %vm437_vm7, %v7859_v7, -inf }
 0xed4   :  { %1675 = vmax.xlane.f32.xlu0 %v1674_v9  ;;  %v1671_v10 = vsel %vm437_vm7, %v1662_v8, -inf }
 0xed5   :  { %1672 = vmax.xlane.f32.xlu1 %v1671_v10 }
 0xee6   :  { %8790 = vrot.lane.b32.xlu1 %v9474_v41, %s9268_s19 }
 0xeea   :  { %1780 = vrot.lane.b32.xlu1 %v9548_v55, %s9269_s20 }
 0xeee   :  { %1782 = vrot.lane.b32.xlu1 %v9556_v56, %s9269_s20 }
 0xf61   :  { %v1676_v16 = vpop.xlane.xlu0 %1675 }
 0xf62   :  { %v1678_v18 = vsub.f32 %v7859_v7, %v1676_v16  ;;  %v1673_v19 = vpop.xlane.xlu1 %1672 }
 0xf63   :  { %v1677_v20 = vsub.f32 %v1662_v8, %v1673_v19 }
 0xf64   :  { %v1681_v21 = vmul.f32 1.442695, %v1678_v18 }
 0xf65   :  { %v1679_v22 = vmul.f32 1.442695, %v1677_v20 }
 0xf66   :  { %9020 = vpow2.f32 %v1681_v21  ;;  %v8791_v26 = vpop.permute.xlu1 %8790 }
 0xf67   :  { %v8793_v27 = vunpack.i.h.bf16 %v8791_v26  ;;  %v8792_v28 = vunpack.i.l.bf16 %v8791_v26  ;;  %9022 = vpow2.f32 %v1679_v22 }
 0xf69   :  { %v8397_v29 = vpack.c.bf16 %v8793_v27, %v8792_v28 }
 0xf6a   :  { %v1781_v51 = vpop.permute.xlu1 %1780 }
 0xf6b   :  { %8398 = vmatprep.subr.bf16.mxu1 %v8397_v29 }
 0xf6c   :  { %8400 = vmatpush3.bf16.msra.mxu1 %v8397_v29 }
 0xf6e   :  { %v1783_v52 = vpop.permute.xlu1 %1782 }
 0xf70   :  { %v9021_v33 = vpop.eup %9020 }
 0xf71   :  { %v1686_v55 = vsel %vm437_vm7, %v9021_v33, 0.0  ;;  %v9023_v34 = vpop.eup %9022 }
 0xf72   :  { %1687 = vadd.xlane.f32.xlu0 %v1686_v55  ;;  %v1683_v56 = vsel %vm437_vm7, %v9023_v34, 0.0 }
 0xf76   :  { %1684 = vadd.xlane.f32.xlu0 %v1683_v56 }
 0xf8c   :  { %8795 = vrot.lane.b32.xlu0 %v9474_v41, %s9270_s21 }
 0xfff   :  { %v1688_v35 = vpop.xlane.xlu0 %1687 }
0x1000   :  { %9024 = vrcp.f32 %v1688_v35 }
0x1003   :  { %v1685_v36 = vpop.xlane.xlu0 %1684 }
0x1004   :  { %9026 = vrcp.f32 %v1685_v36 }
0x1007   :  { %v8796_v37 = vpop.permute.xlu0 %8795 }
0x1008   :  { %v8798_v23 = vunpack.i.h.bf16 %v8796_v37  ;;  %v8797_v39 = vunpack.i.l.bf16 %v8796_v37  ;;  %v9684_v37 = vld [vmem:[%s10694_s13 + $0x4] ss:$0 sm:$0xff] }
0x100a   :  { %v8401_v42 = vpack.c.bf16 %v8798_v23, %v8797_v39  ;;  %v9025_v47 = vpop.eup %9024 }
0x100b   :  { %v1692_v50 = vmul.f32 %v9025_v47, %v9021_v33 }
0x100c   :  { %8403 = vmatprep.subr.msk.bf16.mxu1 %vm9452_vm6, %v8401_v42 }
0x100e   :  { %v9027_v48 = vpop.eup %9026 }
0x100f   :  { %v1691_v49 = vmul.f32 %v9027_v48, %v9023_v34 }
0x1011   :  { %7864 = vmatprep.mubr.msk.f32.mxu1 %vm437_vm7, %v1691_v49 }
0x1012   :  { %7865 = vmatmul.mubr.msk.f32.vlgmr.msra.gmra.mrb[16].mxu1 %vm437_vm7, %v1692_v50 }
0x1013   :  { %8406 = vmatpush3.bf16.xpose.msk.msra.mxu1 %vm9452_vm6, %v8401_v42  ;;  %7871 = vmatprep.mubr.msk.f32.mxu1 %vm351_vm5, %v1781_v51 }
0x101a   :  { %7872 = vmatmul.mubr.msk.f32.vlgmr.msra.gmra.mrb[18].mxu1 %vm351_vm5, %v1783_v52 }
0x10e5   :  { %v7866_v53 = vpop.f32.mrb[16].mxu1 }
0x10e6   :  { %v1771_v54 = vpop.f32.mrb[17].mxu1 }
0x10ed   :  { %v7873_v40 = vpop.f32.mrb[18].mxu1 }
0x10ee   :  { %v1862_v59 = vpop.f32.mrb[19].mxu1  ;;  %v1874_v60 = vsel %vm437_vm7, %v7873_v40, -inf }
0x10ef   :  { %1875 = vmax.xlane.f32.xlu0 %v1874_v60  ;;  %v1871_v61 = vsel %vm437_vm7, %v1862_v59, -inf }
0x10f0   :  { %1872 = vmax.xlane.f32.xlu1 %v1871_v61 }
0x1101   :  { %8800 = vrot.lane.b32.xlu1 %v9474_v41, %s9271_s22 }
0x1105   :  { %1151 = vrot.lane.b32.xlu1 %v9508_v45, %s10700_s23 }
0x1109   :  { %1157 = vrot.lane.b32.xlu1 %v9534_v14, %s10698_s24 }
0x110d   :  { %1159 = vrot.lane.b32.xlu1 %v9532_v11, %s10698_s24 }
0x1111   :  { %1167 = vrot.lane.b32.xlu1 %v9560_v57, %s10696_s25 }
0x1115   :  { %1984 = vrot.lane.b32.xlu1 %v9608_v5, %s10700_s23  ;;  %v2011_v5 = vld [vmem:[%s10684_s3 + $0x8] sm:$0xff] }
0x1116   :  { %v8411_v7 = vpack.c.bf16 %v2011_v5, %v2010_v4  ;;  %v9708_v4 = vld [vmem:[%s10694_s13 + $0x5] ss:$0 sm:$0xff] }
0x117c   :  { %v1876_v38 = vpop.xlane.xlu0 %1875 }
0x117d   :  { %v1878_v41 = vsub.f32 %v7873_v40, %v1876_v38  ;;  %v1873_v24 = vpop.xlane.xlu1 %1872 }
0x117e   :  { %v1877_v62 = vsub.f32 %v1862_v59, %v1873_v24 }
0x117f   :  { %v1881_v25 = vmul.f32 1.442695, %v1878_v41 }
0x1180   :  { %v1879_v45 = vmul.f32 1.442695, %v1877_v62 }
0x1181   :  { %9028 = vpow2.f32 %v1881_v25  ;;  %v8801_v63 = vpop.permute.xlu1 %8800 }
0x1182   :  { %v8803_v0 = vunpack.i.h.bf16 %v8801_v63  ;;  %v8802_v14 = vunpack.i.l.bf16 %v8801_v63  ;;  %9030 = vpow2.f32 %v1879_v45 }
0x1184   :  { %v8407_v1 = vpack.c.bf16 %v8803_v0, %v8802_v14 }
0x1185   :  { %v1152_v9 = vpop.permute.xlu1 %1151 }
0x1186   :  { %8408 = vmatprep.subr.bf16.mxu0 %v8407_v1 }
0x1187   :  { %8410 = vmatpush3.bf16.msra.mxu0 %v8407_v1 }
0x1188   :  { %8412 = vmatprep.subr.bf16.mxu0 %v8411_v7 }
0x1189   :  { %v1158_v16 = vpop.permute.xlu1 %1157 }
0x118b   :  { %v9029_v11 = vpop.eup %9028 }
0x118c   :  { %v1886_v57 = vsel %vm437_vm7, %v9029_v11, 0.0  ;;  %v9031_v2 = vpop.eup %9030 }
0x118d   :  { %1887 = vadd.xlane.f32.xlu0 %v1886_v57  ;;  %v1883_v3 = vsel %vm437_vm7, %v9031_v2, 0.0  ;;  %v1160_v26 = vpop.permute.xlu1 %1159 }
0x1191   :  { %1884 = vadd.xlane.f32.xlu0 %v1883_v3  ;;  %v1168_v55 = vpop.permute.xlu1 %1167 }
0x1195   :  { %v1985_v60 = vpop.permute.xlu1 %1984 }
0x1196   :  { %v2005_v38 = vsel %vm351_vm5, %v9584_v30, %v1985_v60 }
0x11a7   :  { %1149 = vrot.lane.b32.xlu0 %v9510_v46, %s10700_s23 }
0x11ab   :  { %1165 = vrot.lane.b32.xlu0 %v9562_v58, %s10696_s25  ;;  %v2012_v58 = vld [vmem:[%s10684_s3 + $0x10] sm:$0xff] }
0x11af   :  { %1982 = vrot.lane.b32.xlu0 %v9610_v6, %s10700_s23  ;;  %v2013_v6 = vld [vmem:[%s10684_s3 + $0x18] sm:$0xff]  ;;  %s10705_s3 = smov 24  }
0x11b0   :  { %v8415_v28 = vpack.c.bf16 %v2013_v6, %v2012_v58 }
0x11b3   :  { %1990 = vrot.lane.b32.xlu0 %v1771_v54, %s10698_s24 }
0x11b7   :  { %1992 = vrot.lane.b32.xlu0 %v7866_v53, %s10698_s24 }
0x121a   :  { %v1888_v46 = vpop.xlane.xlu0 %1887 }
0x121b   :  { %9032 = vrcp.f32 %v1888_v46 }
0x121e   :  { %v1885_v8 = vpop.xlane.xlu0 %1884 }
0x121f   :  { %9034 = vrcp.f32 %v1885_v8 }
0x1222   :  { %v1150_v10 = vpop.permute.xlu0 %1149 }
0x1223   :  { %v1171_v20 = vsel %vm351_vm5, %v9506_v44, %v1150_v10  ;;  %v1172_v44 = vsel %vm351_vm5, %v9504_v43, %v1152_v9  ;;  %v2191_v10 = vld [vmem:[%s10685_s4] sm:$0xff] }
0x1224   :  { %v1173_v29 = vsel %vm437_vm7, %v1171_v20, %v1158_v16  ;;  %v1174_v34 = vsel %vm437_vm7, %v1172_v44, %v1160_v26 }
0x1225   :  { %v9033_v18 = vpop.eup %9032  ;;  %v1177_v56 = vsel %vm1175_vm8, %v1174_v34, %v1168_v55 }
0x1226   :  { %v1166_v21 = vpop.permute.xlu0 %1165  ;;  %v1892_v27 = vmul.f32 %v9033_v18, %v9029_v11 }
0x1227   :  { %v1176_v33 = vsel %vm1175_vm8, %v1173_v29, %v1166_v21 }
0x1229   :  { %v9035_v19 = vpop.eup %9034 }
0x122a   :  { %v1891_v22 = vmul.f32 %v9035_v19, %v9031_v2  ;;  %v1983_v51 = vpop.permute.xlu0 %1982 }
0x122b   :  { %v2004_v54 = vsel %vm351_vm5, %v9586_v31, %v1983_v51 }
0x122c   :  { %7878 = vmatprep.mubr.msk.f32.mxu0 %vm437_vm7, %v1891_v22  ;;  %v2192_v22 = vld [vmem:[%s10685_s4 + $0x8] sm:$0xff] }
0x122d   :  { %7879 = vmatmul.mubr.msk.f32.vlgmr.msra.gmra.mrb[18].mxu0 %vm437_vm7, %v1892_v27 }
0x122e   :  { %8414 = vmatpush3.bf16.msra.mxu0 %v8411_v7  ;;  %7889 = vmatprep.mubr.msk.f32.mxu0 %vm245_vm4, %v1176_v33  ;;  %v1991_v52 = vpop.permute.xlu0 %1990  ;;  %v9713_v7 = vld [vmem:[%s10694_s13 + $0x6] ss:$0 sm:$0xff] }
0x122f   :  { %8416 = vmatprep.subr.bf16.mxu0 %v8415_v28 }
0x1232   :  { %8418 = vmatpush3.bf16.msra.mxu0 %v8415_v28  ;;  %v1993_v53 = vpop.permute.xlu0 %1992 }
0x1233   :  { %v2007_v24 = vsel %vm437_vm7, %v2005_v38, %v1993_v53  ;;  %v2269_v53 = vld [vmem:[%s10686_s5] sm:$0xff] }
0x1235   :  { %7890 = vmatmul.mubr.msk.f32.vlgmr.msra.gmra.mrb[20].mxu0 %vm245_vm4, %v1177_v56 }
0x1300   :  { %v7880_v35 = vpop.f32.mrb[18].mxu0 }
0x1301   :  { %v1971_v36 = vpop.f32.mrb[19].mxu0 }
0x1302   :  { %1998 = vrot.lane.b32.xlu0 %v1971_v36, %s10696_s25 }
0x1308   :  { %v7891_v23 = vpop.f32.mrb[20].mxu0 }
0x1309   :  { %v2097_v39 = vpop.f32.mrb[21].mxu0  ;;  %v2103_v48 = vadd.f32 %v7891_v23, %v9684_v37 }
0x130a   :  { %v2098_v43 = vadd.f32 %v9684_v37, %v2097_v39 }
0x130b   :  { %v2117_v49 = vadd.f32 %v2103_v48, %v9417_v13 }
0x130c   :  { %v2116_v42 = vadd.f32 %v2098_v43, %v9415_v12  ;;  %v2006_v12 = vsel %vm437_vm7, %v2004_v54, %v1991_v52 }
0x130d   :  { %v2125_v50 = vsel %vm245_vm4, %v2117_v49, 0.0 }
0x130e   :  { %v2122_v47 = vsel %vm245_vm4, %v2116_v42, 0.0 }
0x130f   :  { %2123 = vadd.xlane.f32.xlu1 %v2122_v47 }
0x1320   :  { %2000 = vrot.lane.b32.xlu1 %v7880_v35, %s10696_s25 }
0x1321   :  { %2126 = vadd.xlane.f32.xlu0 %v2125_v50 }
0x1374   :  { %v1999_v40 = vpop.permute.xlu0 %1998 }
0x1375   :  { %v2008_v59 = vsel %vm1175_vm8, %v2006_v12, %v1999_v40 }
0x1376   :  { %7892 = vmatprep.mubr.msk.f32.mxu0 %vm245_vm4, %v2008_v59 }
0x139c   :  { %v2124_v13 = vpop.xlane.xlu1 %2123 }
0x139d   :  { %v2135_v61 = vmul.f32 0.03125, %v2124_v13 }
0x139f   :  { %v2139_v41 = vsub.f32 %v2116_v42, %v2135_v61  ;;  %v9750_v61 = vld [vmem:[%s10694_s13 + $0x7] ss:$0 sm:$0xff] }
0x13a0   :  { %v2001_v62 = vpop.permute.xlu1 %2000 }
0x13a1   :  { %v2009_v25 = vsel %vm1175_vm8, %v2007_v24, %v2001_v62  ;;  %v2143_v31 = vmul.f32 %v2139_v41, %v2139_v41 }
0x13a2   :  { %7893 = vmatmul.mubr.msk.f32.gmra.mrb[22].mxu0 %vm245_vm4, %v2009_v25 }
0x13a3   :  { %v2147_v45 = vsel %vm245_vm4, %v2143_v31, 0.0 }
0x13a4   :  { %2148 = vadd.xlane.f32.xlu0 %v2147_v45 }
0x13ae   :  { %v2127_v63 = vpop.xlane.xlu0 %2126 }
0x13af   :  { %v2136_v0 = vmul.f32 0.03125, %v2127_v63 }
0x13b1   :  { %v2140_v14 = vsub.f32 %v2117_v49, %v2136_v0 }
0x13b3   :  { %v2144_v1 = vmul.f32 %v2140_v14, %v2140_v14 }
0x13b5   :  { %v2150_v11 = vsel %vm245_vm4, %v2144_v1, 0.0 }
0x13b6   :  { %2151 = vadd.xlane.f32.xlu0 %v2150_v11 }
0x1431   :  { %v2149_v30 = vpop.xlane.xlu0 %2148 }
0x1432   :  { %v2159_v57 = vmul.f32 0.03125, %v2149_v30 }
0x1434   :  { %v2163_v2 = vadd.f32 1e-05, %v2159_v57 }
0x1436   :  { %9036 = vrsqrt.f32 %v2163_v2 }
0x1440   :  { %v9037_v3 = vpop.eup %9036 }
0x1441   :  { %v2171_v5 = vmul.f32 %v9037_v3, %v2139_v41  ;;  %v9755_v41 = vld [vmem:[%s10694_s13 + $0x8] ss:$0 sm:$0xff] }
0x1443   :  { %v2152_v46 = vpop.xlane.xlu0 %2151  ;;  %v2179_v8 = vmul.f32 %v9708_v4, %v2171_v5 }
0x1444   :  { %v2160_v9 = vmul.f32 0.03125, %v2152_v46 }
0x1445   :  { %v2187_v16 = vadd.f32 %v9713_v7, %v2179_v8 }
0x1446   :  { %v2164_v18 = vadd.f32 1e-05, %v2160_v9 }
0x1447   :  { %v2195_v58 = vadd.f32 %v2191_v10, %v2187_v16 }
0x1448   :  { %9038 = vrsqrt.f32 %v2164_v18 }
0x1449   :  { %v2201_v6 = vsel %vm245_vm4, %v2195_v58, 0.0 }
0x144a   :  { %2202 = vadd.xlane.f32.xlu0 %v2201_v6 }
0x1452   :  { %v9039_v19 = vpop.eup %9038 }
0x1453   :  { %v2172_v20 = vmul.f32 %v9039_v19, %v2140_v14 }
0x1455   :  { %v2180_v21 = vmul.f32 %v9708_v4, %v2172_v20 }
0x1457   :  { %v2188_v26 = vadd.f32 %v9713_v7, %v2180_v21 }
0x1459   :  { %v2196_v27 = vadd.f32 %v2192_v22, %v2188_v26 }
0x145b   :  { %v2204_v28 = vsel %vm245_vm4, %v2196_v27, 0.0 }
0x145c   :  { %2205 = vadd.xlane.f32.xlu0 %v2204_v28  ;;  %v2193_v28 = vld [vmem:[%s10685_s4 + $0x10] sm:$0xff] }
0x1475   :  { %v7894_v29 = vpop.f32.mrb[22].mxu0 }
0x1476   :  { %v2107_v33 = vpop.f32.mrb[23].mxu0  ;;  %v2113_v47 = vadd.f32 %v7894_v29, %v9684_v37 }
0x1477   :  { %v2108_v39 = vadd.f32 %v9684_v37, %v2107_v33  ;;  %v2270_v37 = vld [vmem:[%s10686_s5 + $0x8] sm:$0xff] }
0x1478   :  { %v2119_v51 = vadd.f32 %v2113_v47, %v9423_v15  ;;  %v8419_v54 = vpack.c.bf16 %v2270_v37, %v2269_v53  ;;  %v2272_v15 = vld [vmem:[%s10686_s5 + $0x18] sm:$0xff] }
0x1479   :  { %v2118_v49 = vadd.f32 %v2108_v39, %v9425_v17  ;;  %v2271_v17 = vld [vmem:[%s10686_s5 + $0x10] sm:$0xff]  ;;  %v9786_v39 = vld [vmem:[%s10694_s13 + $0x9] ss:$0 sm:$0xff] }
0x147a   :  { %v2131_v52 = vsel %vm245_vm4, %v2119_v51, 0.0  ;;  %8420 = vmatprep.subr.bf16.mxu0 %v8419_v54  ;;  %v8423_v12 = vpack.c.bf16 %v2272_v15, %v2271_v17 }
0x147b   :  { %v2128_v50 = vsel %vm245_vm4, %v2118_v49, 0.0  ;;  %8422 = vmatpush3.bf16.msra.mxu0 %v8419_v54 }
0x147c   :  { %8424 = vmatprep.subr.bf16.mxu0 %v8423_v12 }
0x147f   :  { %8426 = vmatpush3.bf16.msra.mxu0 %v8423_v12 }
0x14d7   :  { %v2203_v55 = vpop.xlane.xlu0 %2202 }
0x14d8   :  { %v2213_v44 = vmul.f32 0.03125, %v2203_v55 }
0x14da   :  { %v2217_v34 = vsub.f32 %v2195_v58, %v2213_v44 }
0x14dc   :  { %v2221_v56 = vmul.f32 %v2217_v34, %v2217_v34 }
0x14de   :  { %v2225_v35 = vsel %vm245_vm4, %v2221_v56, 0.0 }
0x14df   :  { %2226 = vadd.xlane.f32.xlu1 %v2225_v35 }
0x14e9   :  { %v2206_v36 = vpop.xlane.xlu0 %2205 }
0x14ea   :  { %v2214_v23 = vmul.f32 0.03125, %v2206_v36 }
0x14ec   :  { %v2218_v43 = vsub.f32 %v2196_v27, %v2214_v23 }
0x14ee   :  { %v2222_v42 = vmul.f32 %v2218_v43, %v2218_v43 }
0x14f0   :  { %v2228_v48 = vsel %vm245_vm4, %v2222_v42, 0.0 }
0x14f1   :  { %2229 = vadd.xlane.f32.xlu0 %v2228_v48 }
0x14f5   :  { %2129 = vadd.xlane.f32.xlu0 %v2128_v50 }
0x14f9   :  { %2132 = vadd.xlane.f32.xlu0 %v2131_v52 }
0x156c   :  { %v2227_v40 = vpop.xlane.xlu1 %2226 }
0x156d   :  { %v2237_v59 = vmul.f32 0.03125, %v2227_v40 }
0x156f   :  { %v2241_v60 = vadd.f32 1e-12, %v2237_v59 }
0x1571   :  { %9040 = vrsqrt.f32 %v2241_v60 }
0x157b   :  { %v9041_v13 = vpop.eup %9040 }
0x157c   :  { %v2249_v38 = vmul.f32 %v9041_v13, %v2217_v34  ;;  %v2194_v34 = vld [vmem:[%s10685_s4 + $0x18] sm:$0xff]  ;;  %s10704_s4 = smov 16  }
0x157e   :  { %v2230_v24 = vpop.xlane.xlu0 %2229  ;;  %v2257_v62 = vmul.f32 %v9750_v61, %v2249_v38 }
0x157f   :  { %v2238_v25 = vmul.f32 0.03125, %v2230_v24 }
0x1580   :  { %v9759_v31 = vadd.f32 %v9755_v41, %v2257_v62 }
0x1581   :  { %v2242_v45 = vadd.f32 1e-12, %v2238_v25 }
0x1582   :  { %7903 = vmatprep.mubr.msk.f32.mxu0 %vm245_vm4, %v9759_v31  ;;  %v2130_v63 = vpop.xlane.xlu0 %2129 }
0x1583   :  { %9042 = vrsqrt.f32 %v2242_v45  ;;  %v2137_v0 = vmul.f32 0.03125, %v2130_v63 }
0x1585   :  { %v2141_v14 = vsub.f32 %v2118_v49, %v2137_v0 }
0x1586   :  { %v2133_v1 = vpop.xlane.xlu0 %2132 }
0x1587   :  { %v2138_v11 = vmul.f32 0.03125, %v2133_v1  ;;  %v2145_v30 = vmul.f32 %v2141_v14, %v2141_v14 }
0x1589   :  { %v2142_v57 = vsub.f32 %v2119_v51, %v2138_v11  ;;  %v2153_v2 = vsel %vm245_vm4, %v2145_v30, 0.0 }
0x158a   :  { %2154 = vadd.xlane.f32.xlu0 %v2153_v2 }
0x158b   :  { %v2146_v3 = vmul.f32 %v2142_v57, %v2142_v57 }
0x158d   :  { %v9043_v5 = vpop.eup %9042  ;;  %v2156_v46 = vsel %vm245_vm4, %v2146_v3, 0.0 }
0x158e   :  { %v2250_v8 = vmul.f32 %v9043_v5, %v2218_v43  ;;  %2157 = vadd.xlane.f32.xlu0 %v2156_v46 }
0x1590   :  { %v2258_v9 = vmul.f32 %v9750_v61, %v2250_v8 }
0x1592   :  { %v9767_v10 = vadd.f32 %v9755_v41, %v2258_v9 }
0x1594   :  { %7904 = vmatmul.mubr.msk.f32.vlgmr.msra.gmra.mrb[24].mxu0 %vm245_vm4, %v9767_v10 }
0x1617   :  { %v2155_v16 = vpop.xlane.xlu0 %2154 }
0x1618   :  { %v2161_v18 = vmul.f32 0.03125, %v2155_v16 }
0x161a   :  { %v2165_v58 = vadd.f32 1e-05, %v2161_v18 }
0x161b   :  { %v2158_v6 = vpop.xlane.xlu0 %2157 }
0x161c   :  { %9044 = vrsqrt.f32 %v2165_v58  ;;  %v2162_v19 = vmul.f32 0.03125, %v2158_v6 }
0x161e   :  { %v2166_v20 = vadd.f32 1e-05, %v2162_v19 }
0x1620   :  { %9046 = vrsqrt.f32 %v2166_v20 }
0x1626   :  { %v9045_v21 = vpop.eup %9044 }
0x1627   :  { %v2173_v22 = vmul.f32 %v9045_v21, %v2141_v14 }
0x1629   :  { %v2181_v26 = vmul.f32 %v9708_v4, %v2173_v22 }
0x162a   :  { %v9047_v27 = vpop.eup %9046 }
0x162b   :  { %v2189_v29 = vadd.f32 %v9713_v7, %v2181_v26  ;;  %v2174_v33 = vmul.f32 %v9047_v27, %v2142_v57 }
0x162d   :  { %v2197_v55 = vadd.f32 %v2193_v28, %v2189_v29  ;;  %v2182_v44 = vmul.f32 %v9708_v4, %v2174_v33 }
0x162f   :  { %v2207_v56 = vsel %vm245_vm4, %v2197_v55, 0.0  ;;  %v2190_v35 = vadd.f32 %v9713_v7, %v2182_v44 }
0x1630   :  { %2208 = vadd.xlane.f32.xlu0 %v2207_v56 }
0x1631   :  { %v2198_v36 = vadd.f32 %v2194_v34, %v2190_v35 }
0x1633   :  { %v2210_v23 = vsel %vm245_vm4, %v2198_v36, 0.0 }
0x1634   :  { %2211 = vadd.xlane.f32.xlu0 %v2210_v23 }
0x1667   :  { %v7905_v43 = vpop.f32.mrb[24].mxu0 }
0x1668   :  { %v2362_v4 = vadd.f32 %v7905_v43, %v9786_v39  ;;  %v2356_v42 = vpop.f32.mrb[25].mxu0 }
0x1669   :  { %v2357_v47 = vadd.f32 %v9786_v39, %v2356_v42 }
0x166a   :  { %v9798_v49 = vmul.f32 0.35355338, %v2362_v4 }
0x166b   :  { %v9790_v48 = vpack.i.bf16 %v2362_v4, %v2357_v47  ;;  %v9794_v7 = vmul.f32 0.35355338, %v2357_v47 }
0x166d   :  { %8805 = vrot.lane.b32.xlu1 %v9790_v48, %s9262_s30 }
0x1671   :  { %2577 = vrot.lane.b32.xlu1 %v9794_v7, %s9263_s15 }
0x1675   :  { %2579 = vrot.lane.b32.xlu1 %v9798_v49, %s9263_s15 }
0x16bd   :  { %v2209_v50 = vpop.xlane.xlu0 %2208 }
0x16be   :  { %v2215_v51 = vmul.f32 0.03125, %v2209_v50 }
0x16c0   :  { %v2219_v52 = vsub.f32 %v2197_v55, %v2215_v51 }
0x16c1   :  { %v2212_v53 = vpop.xlane.xlu0 %2211 }
0x16c2   :  { %v2216_v37 = vmul.f32 0.03125, %v2212_v53  ;;  %v2223_v54 = vmul.f32 %v2219_v52, %v2219_v52 }
0x16c4   :  { %v2220_v17 = vsub.f32 %v2198_v36, %v2216_v37  ;;  %v2231_v15 = vsel %vm245_vm4, %v2223_v54, 0.0 }
0x16c5   :  { %2232 = vadd.xlane.f32.xlu0 %v2231_v15 }
0x16c6   :  { %v2224_v12 = vmul.f32 %v2220_v17, %v2220_v17 }
0x16c8   :  { %v2234_v40 = vsel %vm245_vm4, %v2224_v12, 0.0 }
0x16c9   :  { %2235 = vadd.xlane.f32.xlu0 %v2234_v40 }
0x16df   :  { %8810 = vrot.lane.b32.xlu0 %v9790_v48, %s9261_s29  ;;  %v8806_v59 = vpop.permute.xlu1 %8805 }
0x16e0   :  { %v8808_v60 = vunpack.i.h.bf16 %v8806_v59  ;;  %v8807_v13 = vunpack.i.l.bf16 %v8806_v59 }
0x16e2   :  { %v8427_v38 = vpack.c.bf16 %v8808_v60, %v8807_v13 }
0x16e3   :  { %v2578_v18 = vpop.permute.xlu1 %2577 }
0x16e4   :  { %8429 = vmatprep.subr.msk.bf16.mxu0 %vm9452_vm6, %v8427_v38 }
0x16e5   :  { %8432 = vmatpush3.bf16.xpose.msk.msra.mxu0 %vm9452_vm6, %v8427_v38 }
0x16e7   :  { %v2580_v58 = vpop.permute.xlu1 %2579 }
0x1752   :  { %v2233_v24 = vpop.xlane.xlu0 %2232 }
0x1753   :  { %v2239_v62 = vmul.f32 0.03125, %v2233_v24 }
0x1755   :  { %v2243_v25 = vadd.f32 1e-12, %v2239_v62 }
0x1756   :  { %v2236_v45 = vpop.xlane.xlu0 %2235 }
0x1757   :  { %9048 = vrsqrt.f32 %v2243_v25  ;;  %v2240_v63 = vmul.f32 0.03125, %v2236_v45 }
0x1759   :  { %v2244_v0 = vadd.f32 1e-12, %v2240_v63 }
0x175a   :  { %v8811_v14 = vpop.permute.xlu0 %8810 }
0x175b   :  { %9050 = vrsqrt.f32 %v2244_v0  ;;  %v8813_v1 = vunpack.i.h.bf16 %v8811_v14  ;;  %v8812_v11 = vunpack.i.l.bf16 %v8811_v14 }
0x175d   :  { %v8437_v30 = vpack.c.bf16 %v8813_v1, %v8812_v11 }
0x175f   :  { %8439 = vmatprep.subr.msk.bf16.mxu0 %vm9452_vm6, %v8437_v30 }
0x1761   :  { %v9049_v57 = vpop.eup %9048 }
0x1762   :  { %v2251_v2 = vmul.f32 %v9049_v57, %v2219_v52 }
0x1764   :  { %v2259_v3 = vmul.f32 %v9750_v61, %v2251_v2 }
0x1765   :  { %v9051_v5 = vpop.eup %9050 }
0x1766   :  { %v9814_v46 = vadd.f32 %v9755_v41, %v2259_v3  ;;  %v2252_v8 = vmul.f32 %v9051_v5, %v2220_v17 }
0x1768   :  { %7906 = vmatprep.mubr.msk.f32.mxu0 %vm245_vm4, %v9814_v46  ;;  %v2260_v9 = vmul.f32 %v9750_v61, %v2252_v8 }
0x176a   :  { %v9820_v16 = vadd.f32 %v9755_v41, %v2260_v9 }
0x176c   :  { %7907 = vmatmul.mubr.msk.f32.gmra.mrb[26].mxu0 %vm245_vm4, %v9820_v16 }
0x176d   :  { %7913 = vmatprep.mubr.msk.f32.mxu0 %vm351_vm5, %v9794_v7 }
0x1770   :  { %7914 = vmatmul.mubr.msk.f32.vlgmr.msra.gmra.mrb[28].mxu0 %vm351_vm5, %v9798_v49 }
0x1771   :  { %8442 = vmatpush3.bf16.xpose.msk.msra.mxu0 %vm9452_vm6, %v8437_v30  ;;  %7927 = vmatprep.mubr.msk.f32.mxu0 %vm351_vm5, %v2578_v18 }
0x1778   :  { %7928 = vmatmul.mubr.msk.f32.vlgmr.msra.gmra.mrb[30].mxu0 %vm351_vm5, %v2580_v58 }
0x183f   :  { %v7908_v61 = vpop.f32.mrb[26].mxu0 }
0x1840   :  { %v9833_v41 = vadd.f32 %v7908_v61, %v9786_v39  ;;  %v2366_v6 = vpop.f32.mrb[27].mxu0 }
0x1841   :  { %v9836_v19 = vadd.f32 %v9786_v39, %v2366_v6 }
0x1843   :  { %v7915_v20 = vpop.f32.mrb[28].mxu0  ;;  %v9840_v21 = vpack.i.bf16 %v9833_v41, %v9836_v19 }
0x1844   :  { %v2459_v22 = vpop.f32.mrb[29].mxu0  ;;  %v2471_v26 = vsel %vm437_vm7, %v7915_v20, -inf }
0x1845   :  { %2472 = vmax.xlane.f32.xlu1 %v2471_v26  ;;  %v2468_v27 = vsel %vm437_vm7, %v2459_v22, -inf }
0x1846   :  { %2469 = vmax.xlane.f32.xlu0 %v2468_v27 }
0x184b   :  { %v7929_v28 = vpop.f32.mrb[30].mxu0 }
0x184c   :  { %v2659_v29 = vpop.f32.mrb[31].mxu0  ;;  %v2671_v55 = vsel %vm437_vm7, %v7929_v28, -inf }
0x184d   :  { %v2668_v33 = vsel %vm437_vm7, %v2659_v29, -inf }
0x184e   :  { %2669 = vmax.xlane.f32.xlu0 %v2668_v33 }
0x1852   :  { %2672 = vmax.xlane.f32.xlu0 %v2671_v55 }
0x1856   :  { %8815 = vrot.lane.b32.xlu1 %v9790_v48, %s9265_s16 }
0x18d2   :  { %v2473_v44 = vpop.xlane.xlu1 %2472 }
0x18d3   :  { %v2475_v34 = vsub.f32 %v7915_v20, %v2473_v44  ;;  %v2470_v56 = vpop.xlane.xlu0 %2469 }
0x18d4   :  { %v2474_v35 = vsub.f32 %v2459_v22, %v2470_v56 }
0x18d5   :  { %v2478_v36 = vmul.f32 1.442695, %v2475_v34 }
0x18d6   :  { %v2476_v23 = vmul.f32 1.442695, %v2474_v35  ;;  %v8816_v39 = vpop.permute.xlu1 %8815 }
0x18d7   :  { %9052 = vpow2.f32 %v2478_v36  ;;  %v8818_v43 = vunpack.i.h.bf16 %v8816_v39  ;;  %v8817_v4 = vunpack.i.l.bf16 %v8816_v39 }
0x18d8   :  { %9054 = vpow2.f32 %v2476_v23 }
0x18d9   :  { %v8433_v42 = vpack.c.bf16 %v8818_v43, %v8817_v4 }
0x18db   :  { %v2670_v47 = vpop.xlane.xlu0 %2669  ;;  %8434 = vmatprep.subr.bf16.mxu1 %v8433_v42 }
0x18dc   :  { %8436 = vmatpush3.bf16.msra.mxu1 %v8433_v42  ;;  %v2674_v40 = vsub.f32 %v2659_v29, %v2670_v47 }
0x18de   :  { %v2676_v59 = vmul.f32 1.442695, %v2674_v40 }
0x18df   :  { %v2673_v50 = vpop.xlane.xlu0 %2672 }
0x18e0   :  { %v2675_v51 = vsub.f32 %v7929_v28, %v2673_v50 }
0x18e1   :  { %v9053_v52 = vpop.eup %9052 }
0x18e2   :  { %v9055_v53 = vpop.eup %9054  ;;  %v2678_v37 = vmul.f32 1.442695, %v2675_v51  ;;  %v2483_v54 = vsel %vm437_vm7, %v9053_v52, 0.0 }
0x18e3   :  { %2484 = vadd.xlane.f32.xlu0 %v2483_v54  ;;  %v2480_v17 = vsel %vm437_vm7, %v9055_v53, 0.0 }
0x18e4   :  { %9056 = vpow2.f32 %v2678_v37  ;;  %2481 = vadd.xlane.f32.xlu1 %v2480_v17 }
0x18e5   :  { %9058 = vpow2.f32 %v2676_v59 }
0x18ee   :  { %v9057_v15 = vpop.eup %9056 }
0x18ef   :  { %v2683_v12 = vsel %vm437_vm7, %v9057_v15, 0.0  ;;  %v9059_v60 = vpop.eup %9058 }
0x18f0   :  { %2684 = vadd.xlane.f32.xlu0 %v2683_v12  ;;  %v2680_v13 = vsel %vm437_vm7, %v9059_v60, 0.0 }
0x18f5   :  { %8825 = vrot.lane.b32.xlu1 %v9790_v48, %s9266_s17 }
0x1906   :  { %8820 = vrot.lane.b32.xlu0 %v9790_v48, %s9264_s1 }
0x190a   :  { %2779 = vrot.lane.b32.xlu0 %v9798_v49, %s9267_s18 }
0x1919   :  { %2681 = vadd.xlane.f32.xlu1 %v2680_v13 }
0x192a   :  { %2777 = vrot.lane.b32.xlu1 %v9794_v7, %s9267_s18 }
0x1970   :  { %v2485_v38 = vpop.xlane.xlu0 %2484 }
0x1971   :  { %9060 = vrcp.f32 %v2485_v38  ;;  %v2482_v24 = vpop.xlane.xlu1 %2481 }
0x1972   :  { %9062 = vrcp.f32 %v2482_v24 }
0x1975   :  { %v8826_v14 = vpop.permute.xlu1 %8825 }
0x1976   :  { %v8828_v11 = vunpack.i.h.bf16 %v8826_v14  ;;  %v8827_v30 = vunpack.i.l.bf16 %v8826_v14 }
0x1978   :  { %v8447_v5 = vpack.c.bf16 %v8828_v11, %v8827_v30 }
0x197b   :  { %v9061_v62 = vpop.eup %9060 }
0x197c   :  { %v9063_v25 = vpop.eup %9062  ;;  %v2489_v0 = vmul.f32 %v9061_v62, %v9053_v52 }
0x197d   :  { %v2685_v45 = vpop.xlane.xlu0 %2684  ;;  %v2488_v63 = vmul.f32 %v9063_v25, %v9055_v53 }
0x197e   :  { %9064 = vrcp.f32 %v2685_v45 }
0x197f   :  { %7920 = vmatprep.mubr.msk.f32.mxu1 %vm437_vm7, %v2488_v63 }
0x1980   :  { %7921 = vmatmul.mubr.msk.f32.vlgmr.msra.gmra.mrb[20].mxu1 %vm437_vm7, %v2489_v0 }
0x1981   :  { %v8821_v1 = vpop.permute.xlu0 %8820 }
0x1982   :  { %v8823_v57 = vunpack.i.h.bf16 %v8821_v1  ;;  %v8822_v2 = vunpack.i.l.bf16 %v8821_v1 }
0x1984   :  { %v8443_v3 = vpack.c.bf16 %v8823_v57, %v8822_v2 }
0x1985   :  { %v2780_v20 = vpop.permute.xlu0 %2779 }
0x1986   :  { %8444 = vmatprep.subr.bf16.mxu1 %v8443_v3 }
0x1987   :  { %8446 = vmatpush3.bf16.msra.mxu1 %v8443_v3 }
0x1988   :  { %8449 = vmatprep.subr.msk.bf16.mxu1 %vm9452_vm6, %v8447_v5  ;;  %v9065_v9 = vpop.eup %9064 }
0x1989   :  { %v2689_v61 = vmul.f32 %v9065_v9, %v9057_v15 }
0x19a6   :  { %v2682_v8 = vpop.xlane.xlu1 %2681 }
0x19a7   :  { %9066 = vrcp.f32 %v2682_v8 }
0x19aa   :  { %v2778_v6 = vpop.permute.xlu1 %2777 }
0x19b1   :  { %v9067_v18 = vpop.eup %9066 }
0x19b2   :  { %v2688_v58 = vmul.f32 %v9067_v18, %v9059_v60 }
0x19b4   :  { %7934 = vmatprep.mubr.msk.f32.mxu1 %vm437_vm7, %v2688_v58 }
0x19b5   :  { %7935 = vmatmul.mubr.msk.f32.vlgmr.msra.gmra.mrb[22].mxu1 %vm437_vm7, %v2689_v61 }
0x19b6   :  { %8452 = vmatpush3.bf16.xpose.msk.msra.mxu1 %vm9452_vm6, %v8447_v5  ;;  %7941 = vmatprep.mubr.msk.f32.mxu1 %vm351_vm5, %v2778_v6 }
0x19bd   :  { %7942 = vmatmul.mubr.msk.f32.vlgmr.msra.gmra.mrb[24].mxu1 %vm351_vm5, %v2780_v20 }
0x1a53   :  { %v9870_v22 = vpop.f32.mrb[20].mxu1 }
0x1a54   :  { %v9872_v26 = vpop.f32.mrb[21].mxu1 }
0x1a88   :  { %v9874_v27 = vpop.f32.mrb[22].mxu1 }
0x1a89   :  { %v9876_v28 = vpop.f32.mrb[23].mxu1 }
0x1a90   :  { %v7943_v29 = vpop.f32.mrb[24].mxu1 }
0x1a91   :  { %v2859_v33 = vpop.f32.mrb[25].mxu1  ;;  %v2871_v55 = vsel %vm437_vm7, %v7943_v29, -inf }
0x1a92   :  { %2872 = vmax.xlane.f32.xlu0 %v2871_v55  ;;  %v2868_v44 = vsel %vm437_vm7, %v2859_v33, -inf }
0x1a93   :  { %2869 = vmax.xlane.f32.xlu1 %v2868_v44 }
0x1b1f   :  { %v2873_v34 = vpop.xlane.xlu0 %2872 }
0x1b20   :  { %v2875_v56 = vsub.f32 %v7943_v29, %v2873_v34  ;;  %v2870_v35 = vpop.xlane.xlu1 %2869 }
0x1b21   :  { %v2874_v36 = vsub.f32 %v2859_v33, %v2870_v35 }
0x1b22   :  { %v2878_v23 = vmul.f32 1.442695, %v2875_v56 }
0x1b23   :  { %v2876_v39 = vmul.f32 1.442695, %v2874_v36 }
0x1b24   :  { %9068 = vpow2.f32 %v2878_v23  ;;  %v9914_v23 = vmul.f32 0.35355338, %v9836_v19 }
0x1b25   :  { %9070 = vpow2.f32 %v2876_v39  ;;  %v9922_v39 = vmul.f32 0.35355338, %v9833_v41 }
0x1b2e   :  { %v9069_v43 = vpop.eup %9068 }
0x1b2f   :  { %v9071_v4 = vpop.eup %9070  ;;  %v2883_v42 = vsel %vm437_vm7, %v9069_v43, 0.0 }
0x1b30   :  { %2884 = vadd.xlane.f32.xlu1 %v2883_v42  ;;  %v2880_v47 = vsel %vm437_vm7, %v9071_v4, 0.0 }
0x1b31   :  { %2881 = vadd.xlane.f32.xlu0 %v2880_v47 }
0x1b41   :  { %8835 = vrot.lane.b32.xlu1 %v9790_v48, %s9270_s21 }
0x1b45   :  { %2977 = vrot.lane.b32.xlu1 %v9794_v7, %s9269_s20 }
0x1b47   :  { %8830 = vrot.lane.b32.xlu0 %v9790_v48, %s9268_s19 }
0x1b4b   :  { %2979 = vrot.lane.b32.xlu0 %v9798_v49, %s9269_s20 }
0x1bbd   :  { %v2885_v50 = vpop.xlane.xlu1 %2884 }
0x1bbe   :  { %9072 = vrcp.f32 %v2885_v50  ;;  %v2882_v51 = vpop.xlane.xlu0 %2881 }
0x1bbf   :  { %9074 = vrcp.f32 %v2882_v51 }
0x1bc1   :  { %v8836_v52 = vpop.permute.xlu1 %8835 }
0x1bc2   :  { %v8831_v53 = vpop.permute.xlu0 %8830  ;;  %v8838_v37 = vunpack.i.h.bf16 %v8836_v52  ;;  %v8837_v54 = vunpack.i.l.bf16 %v8836_v52 }
0x1bc3   :  { %v8833_v17 = vunpack.i.h.bf16 %v8831_v53  ;;  %v8832_v15 = vunpack.i.l.bf16 %v8831_v53 }
0x1bc4   :  { %v8457_v40 = vpack.c.bf16 %v8838_v37, %v8837_v54 }
0x1bc5   :  { %v8453_v12 = vpack.c.bf16 %v8833_v17, %v8832_v15  ;;  %v2978_v13 = vpop.permute.xlu1 %2977 }
0x1bc6   :  { %v2980_v38 = vpop.permute.xlu0 %2979 }
0x1bc7   :  { %8454 = vmatprep.subr.bf16.mxu0 %v8453_v12 }
0x1bc8   :  { %v9073_v7 = vpop.eup %9072  ;;  %8456 = vmatpush3.bf16.msra.mxu0 %v8453_v12 }
0x1bc9   :  { %v9075_v59 = vpop.eup %9074  ;;  %8459 = vmatprep.subr.msk.bf16.mxu0 %vm9452_vm6, %v8457_v40  ;;  %v2889_v60 = vmul.f32 %v9073_v7, %v9069_v43 }
0x1bca   :  { %v2888_v49 = vmul.f32 %v9075_v59, %v9071_v4 }
0x1bcc   :  { %7948 = vmatprep.mubr.msk.f32.mxu0 %vm437_vm7, %v2888_v49 }
0x1bcd   :  { %7949 = vmatmul.mubr.msk.f32.vlgmr.msra.gmra.mrb[32].mxu0 %vm437_vm7, %v2889_v60 }
0x1bce   :  { %7955 = vmatprep.mubr.msk.f32.mxu0 %vm351_vm5, %v2978_v13 }
0x1bd1   :  { %8462 = vmatpush3.bf16.xpose.msk.msra.mxu0 %vm9452_vm6, %v8457_v40 }
0x1bd8   :  { %7956 = vmatmul.mubr.msk.f32.vlgmr.msra.gmra.mrb[34].mxu0 %vm351_vm5, %v2980_v38 }
0x1ca0   :  { %v9898_v24 = vpop.f32.mrb[32].mxu0 }
0x1ca1   :  { %v9900_v62 = vpop.f32.mrb[33].mxu0 }
0x1cab   :  { %v7957_v25 = vpop.f32.mrb[34].mxu0 }
0x1cac   :  { %v3059_v45 = vpop.f32.mrb[35].mxu0  ;;  %v3071_v63 = vsel %vm437_vm7, %v7957_v25, -inf }
0x1cad   :  { %3072 = vmax.xlane.f32.xlu0 %v3071_v63  ;;  %v3068_v0 = vsel %vm437_vm7, %v3059_v45, -inf }
0x1cae   :  { %3069 = vmax.xlane.f32.xlu1 %v3068_v0 }
0x1d3a   :  { %v3073_v14 = vpop.xlane.xlu0 %3072 }
0x1d3b   :  { %v3075_v1 = vsub.f32 %v7957_v25, %v3073_v14  ;;  %v3070_v11 = vpop.xlane.xlu1 %3069 }
0x1d3c   :  { %v3074_v30 = vsub.f32 %v3059_v45, %v3070_v11 }
0x1d3d   :  { %v3078_v57 = vmul.f32 1.442695, %v3075_v1 }
0x1d3e   :  { %v3076_v2 = vmul.f32 1.442695, %v3074_v30 }
0x1d3f   :  { %9076 = vpow2.f32 %v3078_v57 }
0x1d40   :  { %9078 = vpow2.f32 %v3076_v2 }
0x1d49   :  { %v9077_v3 = vpop.eup %9076 }
0x1d4a   :  { %v9079_v5 = vpop.eup %9078  ;;  %v3083_v8 = vsel %vm437_vm7, %v9077_v3, 0.0 }
0x1d4b   :  { %3084 = vadd.xlane.f32.xlu1 %v3083_v8  ;;  %v3080_v9 = vsel %vm437_vm7, %v9079_v5, 0.0 }
0x1d4c   :  { %3081 = vadd.xlane.f32.xlu0 %v3080_v9 }
0x1d5c   :  { %8845 = vrot.lane.b32.xlu1 %v9840_v21, %s9262_s30 }
0x1d62   :  { %8840 = vrot.lane.b32.xlu0 %v9790_v48, %s9271_s22 }
0x1dd8   :  { %v3085_v18 = vpop.xlane.xlu1 %3084 }
0x1dd9   :  { %9080 = vrcp.f32 %v3085_v18  ;;  %v3082_v58 = vpop.xlane.xlu0 %3081 }
0x1dda   :  { %9082 = vrcp.f32 %v3082_v58 }
0x1ddc   :  { %v8846_v61 = vpop.permute.xlu1 %8845 }
0x1ddd   :  { %v8841_v6 = vpop.permute.xlu0 %8840  ;;  %v8848_v20 = vunpack.i.h.bf16 %v8846_v61  ;;  %v8847_v29 = vunpack.i.l.bf16 %v8846_v61 }
0x1dde   :  { %v8843_v33 = vunpack.i.h.bf16 %v8841_v6  ;;  %v8842_v55 = vunpack.i.l.bf16 %v8841_v6 }
0x1ddf   :  { %v8467_v34 = vpack.c.bf16 %v8848_v20, %v8847_v29 }
0x1de0   :  { %v8463_v44 = vpack.c.bf16 %v8843_v33, %v8842_v55 }
0x1de2   :  { %8464 = vmatprep.subr.bf16.mxu1 %v8463_v44 }
0x1de3   :  { %v9081_v56 = vpop.eup %9080  ;;  %8466 = vmatpush3.bf16.msra.mxu1 %v8463_v44 }
0x1de4   :  { %v9083_v35 = vpop.eup %9082  ;;  %8469 = vmatprep.subr.msk.bf16.mxu1 %vm9452_vm6, %v8467_v34  ;;  %v3089_v36 = vmul.f32 %v9081_v56, %v9077_v3 }
0x1de5   :  { %v3088_v48 = vmul.f32 %v9083_v35, %v9079_v5 }
0x1de7   :  { %7962 = vmatprep.mubr.msk.f32.mxu1 %vm437_vm7, %v3088_v48 }
0x1de8   :  { %7963 = vmatmul.mubr.msk.f32.vlgmr.msra.gmra.mrb[26].mxu1 %vm437_vm7, %v3089_v36 }
0x1de9   :  { %7969 = vmatprep.mubr.msk.f32.mxu1 %vm351_vm5, %v9914_v23 }
0x1dec   :  { %8472 = vmatpush3.bf16.xpose.msk.msra.mxu1 %vm9452_vm6, %v8467_v34 }
0x1df3   :  { %7970 = vmatmul.mubr.msk.f32.vlgmr.msra.gmra.mrb[28].mxu1 %vm351_vm5, %v9922_v39 }
0x1ebb   :  { %v9926_v43 = vpop.f32.mrb[26].mxu1 }
0x1ebc   :  { %v9928_v4 = vpop.f32.mrb[27].mxu1 }
0x1ec6   :  { %v7971_v19 = vpop.f32.mrb[28].mxu1 }
0x1ec7   :  { %v3291_v42 = vpop.f32.mrb[29].mxu1  ;;  %v3303_v47 = vsel %vm437_vm7, %v7971_v19, -inf }
0x1ec8   :  { %3304 = vmax.xlane.f32.xlu0 %v3303_v47  ;;  %v3300_v50 = vsel %vm437_vm7, %v3291_v42, -inf }
0x1ec9   :  { %3301 = vmax.xlane.f32.xlu1 %v3300_v50 }
0x1f55   :  { %v3305_v51 = vpop.xlane.xlu0 %3304 }
0x1f56   :  { %v3307_v52 = vsub.f32 %v7971_v19, %v3305_v51  ;;  %v3302_v53 = vpop.xlane.xlu1 %3301 }
0x1f57   :  { %v3306_v41 = vsub.f32 %v3291_v42, %v3302_v53 }
0x1f58   :  { %v3310_v37 = vmul.f32 1.442695, %v3307_v52 }
0x1f59   :  { %v3308_v54 = vmul.f32 1.442695, %v3306_v41 }
0x1f5a   :  { %9084 = vpow2.f32 %v3310_v37 }
0x1f5b   :  { %9086 = vpow2.f32 %v3308_v54 }
0x1f64   :  { %v9085_v17 = vpop.eup %9084 }
0x1f65   :  { %v9087_v15 = vpop.eup %9086  ;;  %v3315_v12 = vsel %vm437_vm7, %v9085_v17, 0.0 }
0x1f66   :  { %3316 = vadd.xlane.f32.xlu1 %v3315_v12  ;;  %v3312_v40 = vsel %vm437_vm7, %v9087_v15, 0.0 }
0x1f67   :  { %3313 = vadd.xlane.f32.xlu0 %v3312_v40 }
0x1f77   :  { %8855 = vrot.lane.b32.xlu1 %v9840_v21, %s9261_s29 }
0x1f7b   :  { %3409 = vrot.lane.b32.xlu1 %v9914_v23, %s9263_s15 }
0x1f7d   :  { %8850 = vrot.lane.b32.xlu0 %v9840_v21, %s9265_s16 }
0x1f81   :  { %3411 = vrot.lane.b32.xlu0 %v9922_v39, %s9263_s15 }
0x1ff3   :  { %v3317_v7 = vpop.xlane.xlu1 %3316 }
0x1ff4   :  { %9088 = vrcp.f32 %v3317_v7  ;;  %v3314_v59 = vpop.xlane.xlu0 %3313 }
0x1ff5   :  { %9090 = vrcp.f32 %v3314_v59 }
0x1ff7   :  { %v8856_v49 = vpop.permute.xlu1 %8855 }
0x1ff8   :  { %v8851_v60 = vpop.permute.xlu0 %8850  ;;  %v8858_v13 = vunpack.i.h.bf16 %v8856_v49  ;;  %v8857_v38 = vunpack.i.l.bf16 %v8856_v49 }
0x1ff9   :  { %v8853_v25 = vunpack.i.h.bf16 %v8851_v60  ;;  %v8852_v45 = vunpack.i.l.bf16 %v8851_v60 }
0x1ffa   :  { %v8477_v0 = vpack.c.bf16 %v8858_v13, %v8857_v38 }
0x1ffb   :  { %v8473_v63 = vpack.c.bf16 %v8853_v25, %v8852_v45  ;;  %v3410_v57 = vpop.permute.xlu1 %3409 }
0x1ffc   :  { %v3412_v2 = vpop.permute.xlu0 %3411 }
0x1ffd   :  { %8474 = vmatprep.subr.bf16.mxu0 %v8473_v63 }
0x1ffe   :  { %v9089_v14 = vpop.eup %9088  ;;  %8476 = vmatpush3.bf16.msra.mxu0 %v8473_v63 }
0x1fff   :  { %v9091_v1 = vpop.eup %9090  ;;  %8479 = vmatprep.subr.msk.bf16.mxu0 %vm9452_vm6, %v8477_v0  ;;  %v3321_v30 = vmul.f32 %v9089_v14, %v9085_v17 }
0x2000   :  { %v3320_v11 = vmul.f32 %v9091_v1, %v9087_v15 }
0x2002   :  { %7976 = vmatprep.mubr.msk.f32.mxu0 %vm437_vm7, %v3320_v11 }
0x2003   :  { %7977 = vmatmul.mubr.msk.f32.vlgmr.msra.gmra.mrb[36].mxu0 %vm437_vm7, %v3321_v30 }
0x2004   :  { %7983 = vmatprep.mubr.msk.f32.mxu0 %vm351_vm5, %v3410_v57 }
0x2007   :  { %8482 = vmatpush3.bf16.xpose.msk.msra.mxu0 %vm9452_vm6, %v8477_v0 }
0x200e   :  { %7984 = vmatmul.mubr.msk.f32.vlgmr.msra.gmra.mrb[38].mxu0 %vm351_vm5, %v3412_v2 }
0x20d6   :  { %v9950_v3 = vpop.f32.mrb[36].mxu0 }
0x20d7   :  { %v9952_v5 = vpop.f32.mrb[37].mxu0 }
0x20e1   :  { %v7985_v8 = vpop.f32.mrb[38].mxu0 }
0x20e2   :  { %v3491_v9 = vpop.f32.mrb[39].mxu0  ;;  %v3503_v18 = vsel %vm437_vm7, %v7985_v8, -inf }
0x20e3   :  { %3504 = vmax.xlane.f32.xlu0 %v3503_v18  ;;  %v3500_v58 = vsel %vm437_vm7, %v3491_v9, -inf }
0x20e4   :  { %3501 = vmax.xlane.f32.xlu1 %v3500_v58 }
0x2170   :  { %v3505_v61 = vpop.xlane.xlu0 %3504 }
0x2171   :  { %v3507_v6 = vsub.f32 %v7985_v8, %v3505_v61  ;;  %v3502_v20 = vpop.xlane.xlu1 %3501 }
0x2172   :  { %v3506_v29 = vsub.f32 %v3491_v9, %v3502_v20 }
0x2173   :  { %v3510_v33 = vmul.f32 1.442695, %v3507_v6 }
0x2174   :  { %v3508_v55 = vmul.f32 1.442695, %v3506_v29 }
0x2175   :  { %9092 = vpow2.f32 %v3510_v33 }
0x2176   :  { %9094 = vpow2.f32 %v3508_v55 }
0x217f   :  { %v9093_v44 = vpop.eup %9092 }
0x2180   :  { %v9095_v34 = vpop.eup %9094  ;;  %v3515_v56 = vsel %vm437_vm7, %v9093_v44, 0.0 }
0x2181   :  { %3516 = vadd.xlane.f32.xlu1 %v3515_v56  ;;  %v3512_v35 = vsel %vm437_vm7, %v9095_v34, 0.0 }
0x2182   :  { %3513 = vadd.xlane.f32.xlu0 %v3512_v35 }
0x2192   :  { %8865 = vrot.lane.b32.xlu1 %v9840_v21, %s9266_s17 }
0x2196   :  { %3609 = vrot.lane.b32.xlu1 %v9914_v23, %s9267_s18 }
0x2198   :  { %8860 = vrot.lane.b32.xlu0 %v9840_v21, %s9264_s1 }
0x219c   :  { %3611 = vrot.lane.b32.xlu0 %v9922_v39, %s9267_s18 }
0x220e   :  { %v3517_v48 = vpop.xlane.xlu1 %3516 }
0x220f   :  { %9096 = vrcp.f32 %v3517_v48  ;;  %v3514_v36 = vpop.xlane.xlu0 %3513 }
0x2210   :  { %9098 = vrcp.f32 %v3514_v36 }
0x2212   :  { %v8866_v19 = vpop.permute.xlu1 %8865 }
0x2213   :  { %v8861_v42 = vpop.permute.xlu0 %8860  ;;  %v8868_v47 = vunpack.i.h.bf16 %v8866_v19  ;;  %v8867_v50 = vunpack.i.l.bf16 %v8866_v19 }
0x2214   :  { %v8863_v51 = vunpack.i.h.bf16 %v8861_v42  ;;  %v8862_v52 = vunpack.i.l.bf16 %v8861_v42 }
0x2215   :  { %v8487_v41 = vpack.c.bf16 %v8868_v47, %v8867_v50 }
0x2216   :  { %v8483_v53 = vpack.c.bf16 %v8863_v51, %v8862_v52  ;;  %v3610_v12 = vpop.permute.xlu1 %3609 }
0x2217   :  { %v3612_v40 = vpop.permute.xlu0 %3611 }
0x2218   :  { %8484 = vmatprep.subr.bf16.mxu1 %v8483_v53 }
0x2219   :  { %v9097_v37 = vpop.eup %9096  ;;  %8486 = vmatpush3.bf16.msra.mxu1 %v8483_v53 }
0x221a   :  { %v9099_v54 = vpop.eup %9098  ;;  %8489 = vmatprep.subr.msk.bf16.mxu1 %vm9452_vm6, %v8487_v41  ;;  %v3521_v15 = vmul.f32 %v9097_v37, %v9093_v44 }
0x221b   :  { %v3520_v17 = vmul.f32 %v9099_v54, %v9095_v34 }
0x221d   :  { %7990 = vmatprep.mubr.msk.f32.mxu1 %vm437_vm7, %v3520_v17 }
0x221e   :  { %7991 = vmatmul.mubr.msk.f32.vlgmr.msra.gmra.mrb[30].mxu1 %vm437_vm7, %v3521_v15 }
0x221f   :  { %7997 = vmatprep.mubr.msk.f32.mxu1 %vm351_vm5, %v3610_v12 }
0x2222   :  { %8492 = vmatpush3.bf16.xpose.msk.msra.mxu1 %vm9452_vm6, %v8487_v41 }
0x2229   :  { %7998 = vmatmul.mubr.msk.f32.vlgmr.msra.gmra.mrb[32].mxu1 %vm351_vm5, %v3612_v40 }
0x22f1   :  { %v9974_v7 = vpop.f32.mrb[30].mxu1 }
0x22f2   :  { %v9976_v59 = vpop.f32.mrb[31].mxu1 }
0x22fc   :  { %v7999_v49 = vpop.f32.mrb[32].mxu1 }
0x22fd   :  { %v3691_v60 = vpop.f32.mrb[33].mxu1  ;;  %v3703_v13 = vsel %vm437_vm7, %v7999_v49, -inf }
0x22fe   :  { %3704 = vmax.xlane.f32.xlu0 %v3703_v13  ;;  %v3700_v38 = vsel %vm437_vm7, %v3691_v60, -inf  ;;  %v4040_v13 = vld [vmem:[%s10687_s6 + $0x8] sm:$0xff] }
0x22ff   :  { %3701 = vmax.xlane.f32.xlu1 %v3700_v38 }
0x238b   :  { %v3705_v25 = vpop.xlane.xlu0 %3704 }
0x238c   :  { %v3707_v45 = vsub.f32 %v7999_v49, %v3705_v25  ;;  %v3702_v63 = vpop.xlane.xlu1 %3701 }
0x238d   :  { %v3706_v0 = vsub.f32 %v3691_v60, %v3702_v63  ;;  %v4039_v60 = vld [vmem:[%s10687_s6] sm:$0xff] }
0x238e   :  { %v3710_v14 = vmul.f32 1.442695, %v3707_v45 }
0x238f   :  { %v3708_v1 = vmul.f32 1.442695, %v3706_v0 }
0x2390   :  { %9100 = vpow2.f32 %v3710_v14 }
0x2391   :  { %9102 = vpow2.f32 %v3708_v1 }
0x239a   :  { %v9101_v11 = vpop.eup %9100 }
0x239b   :  { %v9103_v30 = vpop.eup %9102  ;;  %v3715_v57 = vsel %vm437_vm7, %v9101_v11, 0.0 }
0x239c   :  { %3716 = vadd.xlane.f32.xlu1 %v3715_v57  ;;  %v3712_v2 = vsel %vm437_vm7, %v9103_v30, 0.0 }
0x239d   :  { %3713 = vadd.xlane.f32.xlu0 %v3712_v2 }
0x23ad   :  { %8875 = vrot.lane.b32.xlu1 %v9840_v21, %s9270_s21 }
0x23b1   :  { %3809 = vrot.lane.b32.xlu1 %v9914_v23, %s9269_s20 }
0x23b3   :  { %8870 = vrot.lane.b32.xlu0 %v9840_v21, %s9268_s19 }
0x23b7   :  { %3811 = vrot.lane.b32.xlu0 %v9922_v39, %s9269_s20 }
0x2429   :  { %v3717_v8 = vpop.xlane.xlu1 %3716 }
0x242a   :  { %9104 = vrcp.f32 %v3717_v8  ;;  %v3714_v9 = vpop.xlane.xlu0 %3713 }
0x242b   :  { %9106 = vrcp.f32 %v3714_v9 }
0x242d   :  { %v8876_v18 = vpop.permute.xlu1 %8875 }
0x242e   :  { %v8871_v58 = vpop.permute.xlu0 %8870  ;;  %v8878_v61 = vunpack.i.h.bf16 %v8876_v18  ;;  %v8877_v6 = vunpack.i.l.bf16 %v8876_v18 }
0x242f   :  { %v8873_v20 = vunpack.i.h.bf16 %v8871_v58  ;;  %v8872_v29 = vunpack.i.l.bf16 %v8871_v58 }
0x2430   :  { %v8497_v55 = vpack.c.bf16 %v8878_v61, %v8877_v6 }
0x2431   :  { %v8493_v33 = vpack.c.bf16 %v8873_v20, %v8872_v29  ;;  %v3810_v56 = vpop.permute.xlu1 %3809  ;;  %v10050_v20 = vld [vmem:[%s10694_s13 + $0xa] ss:$0 sm:$0xff] }
0x2432   :  { %v3812_v35 = vpop.permute.xlu0 %3811 }
0x2433   :  { %8494 = vmatprep.subr.bf16.mxu0 %v8493_v33 }
0x2434   :  { %v9105_v23 = vpop.eup %9104  ;;  %8496 = vmatpush3.bf16.msra.mxu0 %v8493_v33 }
0x2435   :  { %v9107_v44 = vpop.eup %9106  ;;  %8499 = vmatprep.subr.msk.bf16.mxu0 %vm9452_vm6, %v8497_v55  ;;  %v3721_v34 = vmul.f32 %v9105_v23, %v9101_v11 }
0x2436   :  { %v3720_v39 = vmul.f32 %v9107_v44, %v9103_v30 }
0x2438   :  { %8004 = vmatprep.mubr.msk.f32.mxu0 %vm437_vm7, %v3720_v39 }
0x2439   :  { %8005 = vmatmul.mubr.msk.f32.vlgmr.msra.gmra.mrb[40].mxu0 %vm437_vm7, %v3721_v34 }
0x243a   :  { %8011 = vmatprep.mubr.msk.f32.mxu0 %vm351_vm5, %v3810_v56 }
0x243d   :  { %8502 = vmatpush3.bf16.xpose.msk.msra.mxu0 %vm9452_vm6, %v8497_v55 }
0x2444   :  { %8012 = vmatmul.mubr.msk.f32.vlgmr.msra.gmra.mrb[42].mxu0 %vm351_vm5, %v3812_v35 }
0x250c   :  { %v8006_v48 = vpop.f32.mrb[40].mxu0 }
0x250d   :  { %v3800_v36 = vpop.f32.mrb[41].mxu0 }
0x2517   :  { %v8013_v19 = vpop.f32.mrb[42].mxu0 }
0x2518   :  { %v3891_v42 = vpop.f32.mrb[43].mxu0  ;;  %v3903_v47 = vsel %vm437_vm7, %v8013_v19, -inf }
0x2519   :  { %3904 = vmax.xlane.f32.xlu0 %v3903_v47  ;;  %v3900_v50 = vsel %vm437_vm7, %v3891_v42, -inf }
0x251a   :  { %3901 = vmax.xlane.f32.xlu1 %v3900_v50 }
0x252b   :  { %3179 = vrot.lane.b32.xlu1 %v9876_v28, %s10700_s23 }
0x252f   :  { %8880 = vrot.lane.b32.xlu0 %v9840_v21, %s9271_s22  ;;  %3181 = vrot.lane.b32.xlu1 %v9874_v27, %s10700_s23 }
0x25a6   :  { %v3905_v51 = vpop.xlane.xlu0 %3904 }
0x25a7   :  { %v3907_v52 = vsub.f32 %v8013_v19, %v3905_v51  ;;  %v3902_v53 = vpop.xlane.xlu1 %3901 }
0x25a8   :  { %v3906_v41 = vsub.f32 %v3891_v42, %v3902_v53 }
0x25a9   :  { %v3910_v37 = vmul.f32 1.442695, %v3907_v52 }
0x25aa   :  { %v3908_v54 = vmul.f32 1.442695, %v3906_v41  ;;  %v8881_v17 = vpop.permute.xlu0 %8880 }
0x25ab   :  { %9108 = vpow2.f32 %v3910_v37  ;;  %v8883_v15 = vunpack.i.h.bf16 %v8881_v17  ;;  %v8882_v12 = vunpack.i.l.bf16 %v8881_v17 }
0x25ac   :  { %9110 = vpow2.f32 %v3908_v54 }
0x25ad   :  { %v8503_v40 = vpack.c.bf16 %v8883_v15, %v8882_v12 }
0x25af   :  { %8504 = vmatprep.subr.bf16.mxu1 %v8503_v40 }
0x25b0   :  { %8506 = vmatpush3.bf16.msra.mxu1 %v8503_v40 }
0x25b5   :  { %v9109_v28 = vpop.eup %9108 }
0x25b6   :  { %v9111_v49 = vpop.eup %9110  ;;  %v3915_v21 = vsel %vm437_vm7, %v9109_v28, 0.0 }
0x25b7   :  { %3916 = vadd.xlane.f32.xlu1 %v3915_v21  ;;  %v3912_v27 = vsel %vm437_vm7, %v9111_v49, 0.0 }
0x25b8   :  { %3913 = vadd.xlane.f32.xlu0 %v3912_v27  ;;  %v4221_v27 = vld [vmem:[%s10688_s7 + $0x10] sm:$0xff] }
0x25c8   :  { %3189 = vrot.lane.b32.xlu1 %v9898_v24, %s10704_s4  ;;  %v8507_v24 = vpack.c.bf16 %v4040_v13, %v4039_v60  ;;  %v4222_v60 = vld [vmem:[%s10688_s7 + $0x18] sm:$0xff] }
0x25c9   :  { %v8519_v13 = vpack.c.bf16 %v4222_v60, %v4221_v27 }
0x25ca   :  { %8508 = vmatprep.subr.bf16.mxu1 %v8507_v24 }
0x25cc   :  { %3197 = vrot.lane.b32.xlu1 %v9926_v43, %s10705_s3 }
0x25ce   :  { %3187 = vrot.lane.b32.xlu0 %v9900_v62, %s10704_s4  ;;  %v3180_v62 = vpop.permute.xlu1 %3179 }
0x25cf   :  { %v3201_v1 = vsel %vm351_vm5, %v9872_v26, %v3180_v62 }
0x25d0   :  { %4013 = vrot.lane.b32.xlu1 %v9974_v7, %s10700_s23 }
0x25d2   :  { %3195 = vrot.lane.b32.xlu0 %v9928_v4, %s10705_s3  ;;  %v3182_v43 = vpop.permute.xlu1 %3181  ;;  %v4041_v4 = vld [vmem:[%s10687_s6 + $0x10] sm:$0xff] }
0x25d3   :  { %v3202_v18 = vsel %vm351_vm5, %v9870_v22, %v3182_v43 }
0x25d6   :  { %4011 = vrot.lane.b32.xlu0 %v9976_v59, %s10700_s23  ;;  %v4042_v59 = vld [vmem:[%s10687_s6 + $0x18] sm:$0xff] }
0x25d7   :  { %v8511_v57 = vpack.c.bf16 %v4042_v59, %v4041_v4 }
0x25da   :  { %4019 = vrot.lane.b32.xlu0 %v3800_v36, %s10704_s4 }
0x25de   :  { %4021 = vrot.lane.b32.xlu0 %v8006_v48, %s10704_s4 }
0x2644   :  { %v3917_v7 = vpop.xlane.xlu1 %3916 }
0x2645   :  { %9112 = vrcp.f32 %v3917_v7  ;;  %v3914_v38 = vpop.xlane.xlu0 %3913 }
0x2646   :  { %9114 = vrcp.f32 %v3914_v38  ;;  %v10086_v38 = vld [vmem:[%s10694_s13 + $0xb] ss:$0 sm:$0xff] }
0x2648   :  { %v3190_v11 = vpop.permute.xlu1 %3189 }
0x2649   :  { %v3188_v25 = vpop.permute.xlu0 %3187  ;;  %v3204_v26 = vsel %vm437_vm7, %v3202_v18, %v3190_v11 }
0x264a   :  { %v3203_v2 = vsel %vm437_vm7, %v3201_v1, %v3188_v25 }
0x264c   :  { %v3198_v9 = vpop.permute.xlu1 %3197 }
0x264d   :  { %v3196_v0 = vpop.permute.xlu0 %3195  ;;  %v3206_v58 = vsel %vm1175_vm8, %v3204_v26, %v3198_v9 }
0x264e   :  { %v3205_v8 = vsel %vm1175_vm8, %v3203_v2, %v3196_v0 }
0x264f   :  { %v9113_v45 = vpop.eup %9112 }
0x2650   :  { %v9115_v63 = vpop.eup %9114  ;;  %v3921_v30 = vmul.f32 %v9113_v45, %v9109_v28  ;;  %v4014_v47 = vpop.permute.xlu1 %4013  ;;  %v10091_v45 = vld [vmem:[%s10694_s13 + $0xc] ss:$0 sm:$0xff] }
0x2651   :  { %v3920_v14 = vmul.f32 %v9115_v63, %v9111_v49  ;;  %v4012_v56 = vpop.permute.xlu0 %4011  ;;  %v4034_v51 = vsel %vm351_vm5, %v9950_v3, %v4014_v47  ;;  %v4219_v3 = vld [vmem:[%s10688_s7] sm:$0xff]  ;;  %v4220_v49 = vld [vmem:[%s10688_s7 + $0x8] sm:$0xff] }
0x2652   :  { %v4033_v36 = vsel %vm351_vm5, %v9952_v5, %v4012_v56  ;;  %v8515_v21 = vpack.c.bf16 %v4220_v49, %v4219_v3 }
0x2653   :  { %8018 = vmatprep.mubr.msk.f32.mxu1 %vm437_vm7, %v3920_v14 }
0x2654   :  { %8019 = vmatmul.mubr.msk.f32.vlgmr.msra.gmra.mrb[34].mxu1 %vm437_vm7, %v3921_v30  ;;  %8516 = vmatprep.subr.bf16.mxu0 %v8515_v21 }
0x2655   :  { %8510 = vmatpush3.bf16.msra.mxu1 %v8507_v24  ;;  %8029 = vmatprep.mubr.msk.f32.mxu1 %vm245_vm4, %v3205_v8  ;;  %v4020_v35 = vpop.permute.xlu0 %4019 }
0x2656   :  { %8512 = vmatprep.subr.bf16.mxu1 %v8511_v57  ;;  %8518 = vmatpush3.bf16.msra.mxu0 %v8515_v21 }
0x2657   :  { %8520 = vmatprep.subr.bf16.mxu0 %v8519_v13 }
0x2659   :  { %8514 = vmatpush3.bf16.msra.mxu1 %v8511_v57  ;;  %v4022_v48 = vpop.permute.xlu0 %4021 }
0x265a   :  { %v4036_v53 = vsel %vm437_vm7, %v4034_v51, %v4022_v48  ;;  %8522 = vmatpush3.bf16.msra.mxu0 %v8519_v13 }
0x265c   :  { %8030 = vmatmul.mubr.msk.f32.vlgmr.msra.gmra.mrb[36].mxu1 %vm245_vm4, %v3206_v58 }
0x2727   :  { %v8020_v61 = vpop.f32.mrb[34].mxu1 }
0x2728   :  { %v4000_v6 = vpop.f32.mrb[35].mxu1 }
0x2729   :  { %4027 = vrot.lane.b32.xlu0 %v4000_v6, %s10705_s3 }
0x272f   :  { %v8031_v29 = vpop.f32.mrb[36].mxu1 }
0x2730   :  { %v4126_v33 = vpop.f32.mrb[37].mxu1  ;;  %v4132_v44 = vadd.f32 %v8031_v29, %v10050_v20  ;;  %v4346_v29 = vld [vmem:[%s10689_s8] sm:$0xff] }
0x2731   :  { %v4127_v22 = vadd.f32 %v10050_v20, %v4126_v33  ;;  %v4347_v33 = vld [vmem:[%s10689_s8 + $0x8] sm:$0xff] }
0x2732   :  { %v4146_v39 = vadd.f32 %v4132_v44, %v9767_v10 }
0x2733   :  { %v4145_v55 = vadd.f32 %v4127_v22, %v9759_v31  ;;  %v4035_v31 = vsel %vm437_vm7, %v4033_v36, %v4020_v35  ;;  %v8523_v22 = vpack.c.bf16 %v4347_v33, %v4346_v29 }
0x2734   :  { %v4154_v34 = vsel %vm245_vm4, %v4146_v39, 0.0 }
0x2735   :  { %v4151_v23 = vsel %vm245_vm4, %v4145_v55, 0.0  ;;  %8524 = vmatprep.subr.bf16.mxu1 %v8523_v22 }
0x2736   :  { %4152 = vadd.xlane.f32.xlu1 %v4151_v23  ;;  %8526 = vmatpush3.bf16.msra.mxu1 %v8523_v22  ;;  %v4351_v23 = vld [vmem:[%s10689_s8 + $0x28] sm:$0xff] }
0x2747   :  { %4029 = vrot.lane.b32.xlu1 %v8020_v61, %s10705_s3 }
0x2748   :  { %4155 = vadd.xlane.f32.xlu0 %v4154_v34  ;;  %v4353_v34 = vld [vmem:[%s10689_s8 + $0x38] sm:$0xff] }
0x279b   :  { %v4028_v19 = vpop.permute.xlu0 %4027 }
0x279c   :  { %v4037_v42 = vsel %vm1175_vm8, %v4035_v31, %v4028_v19 }
0x279d   :  { %8032 = vmatprep.mubr.msk.f32.mxu1 %vm245_vm4, %v4037_v42 }
0x27c3   :  { %v4153_v10 = vpop.xlane.xlu1 %4152 }
0x27c4   :  { %v4163_v50 = vmul.f32 0.03125, %v4153_v10 }
0x27c6   :  { %v4167_v52 = vsub.f32 %v4145_v55, %v4163_v50  ;;  %v4350_v55 = vld [vmem:[%s10689_s8 + $0x20] sm:$0xff] }
0x27c7   :  { %v4030_v41 = vpop.permute.xlu1 %4029  ;;  %v8531_v44 = vpack.c.bf16 %v4351_v23, %v4350_v55 }
0x27c8   :  { %v4038_v37 = vsel %vm1175_vm8, %v4036_v53, %v4030_v41  ;;  %v4171_v5 = vmul.f32 %v4167_v52, %v4167_v52 }
0x27c9   :  { %8033 = vmatmul.mubr.msk.f32.gmra.mrb[38].mxu1 %vm245_vm4, %v4038_v37 }
0x27ca   :  { %v4175_v54 = vsel %vm245_vm4, %v4171_v5, 0.0 }
0x27cb   :  { %4176 = vadd.xlane.f32.xlu0 %v4175_v54 }
0x27d5   :  { %v4156_v17 = vpop.xlane.xlu0 %4155 }
0x27d6   :  { %v4164_v15 = vmul.f32 0.03125, %v4156_v17 }
0x27d8   :  { %v4168_v12 = vsub.f32 %v4146_v39, %v4164_v15  ;;  %v4352_v39 = vld [vmem:[%s10689_s8 + $0x30] sm:$0xff] }
0x27d9   :  { %v8535_v56 = vpack.c.bf16 %v4353_v34, %v4352_v39 }
0x27da   :  { %v4172_v40 = vmul.f32 %v4168_v12, %v4168_v12 }
0x27dc   :  { %v4178_v28 = vsel %vm245_vm4, %v4172_v40, 0.0 }
0x27dd   :  { %4179 = vadd.xlane.f32.xlu0 %v4178_v28 }
0x2858   :  { %v4177_v24 = vpop.xlane.xlu0 %4176 }
0x2859   :  { %v4187_v62 = vmul.f32 0.03125, %v4177_v24 }
0x285b   :  { %v4191_v43 = vadd.f32 1e-12, %v4187_v62 }
0x285d   :  { %9116 = vrsqrt.f32 %v4191_v43 }
0x2867   :  { %v9117_v7 = vpop.eup %9116 }
0x2868   :  { %v4199_v25 = vmul.f32 %v9117_v7, %v4167_v52  ;;  %v7300_v52 = vld [vmem:[%s10694_s13 + $0xd] ss:$0 sm:$0xff] }
0x286a   :  { %v4180_v4 = vpop.xlane.xlu0 %4179  ;;  %v4207_v59 = vmul.f32 %v10086_v38, %v4199_v25 }
0x286b   :  { %v4188_v63 = vmul.f32 0.03125, %v4180_v4 }
0x286c   :  { %v10095_v0 = vadd.f32 %v10091_v45, %v4207_v59 }
0x286d   :  { %v4192_v14 = vadd.f32 1e-12, %v4188_v63 }
0x286e   :  { %8043 = vmatprep.mubr.msk.f32.mxu0 %vm245_vm4, %v10095_v0 }
0x286f   :  { %9118 = vrsqrt.f32 %v4192_v14 }
0x2879   :  { %v9119_v1 = vpop.eup %9118 }
0x287a   :  { %v4200_v11 = vmul.f32 %v9119_v1, %v4168_v12 }
0x287c   :  { %v4208_v30 = vmul.f32 %v10086_v38, %v4200_v11 }
0x287e   :  { %v10101_v57 = vadd.f32 %v10091_v45, %v4208_v30 }
0x2880   :  { %8044 = vmatmul.mubr.msk.f32.vlgmr.msra.gmra.mrb[44].mxu0 %vm245_vm4, %v10101_v57 }
0x289c   :  { %v8034_v2 = vpop.f32.mrb[38].mxu1 }
0x289d   :  { %v4142_v8 = vadd.f32 %v8034_v2, %v10050_v20  ;;  %v4136_v9 = vpop.f32.mrb[39].mxu1  ;;  %v10157_v2 = vld [vmem:[%s10694_s13 + $0xe] ss:$0 sm:$0xff] }
0x289e   :  { %v4137_v18 = vadd.f32 %v10050_v20, %v4136_v9 }
0x289f   :  { %v4148_v26 = vadd.f32 %v4142_v8, %v9820_v16  ;;  %v4349_v16 = vld [vmem:[%s10689_s8 + $0x18] sm:$0xff] }
0x28a0   :  { %v4147_v58 = vadd.f32 %v4137_v18, %v9814_v46  ;;  %v4348_v46 = vld [vmem:[%s10689_s8 + $0x10] sm:$0xff] }
0x28a1   :  { %v4160_v61 = vsel %vm245_vm4, %v4148_v26, 0.0  ;;  %v8527_v20 = vpack.c.bf16 %v4349_v16, %v4348_v46 }
0x28a2   :  { %4161 = vadd.xlane.f32.xlu1 %v4160_v61  ;;  %v4157_v6 = vsel %vm245_vm4, %v4147_v58, 0.0 }
0x28a3   :  { %4158 = vadd.xlane.f32.xlu0 %v4157_v6  ;;  %8528 = vmatprep.subr.bf16.mxu1 %v8527_v20 }
0x28a4   :  { %8530 = vmatpush3.bf16.msra.mxu1 %v8527_v20 }
0x28a5   :  { %8532 = vmatprep.subr.bf16.mxu1 %v8531_v44 }
0x28a8   :  { %8534 = vmatpush3.bf16.msra.mxu1 %v8531_v44 }
0x28a9   :  { %8536 = vmatprep.subr.bf16.mxu1 %v8535_v56 }
0x28ac   :  { %8538 = vmatpush3.bf16.msra.mxu1 %v8535_v56 }
0x292f   :  { %v4162_v35 = vpop.xlane.xlu1 %4161 }
0x2930   :  { %v4166_v48 = vmul.f32 0.03125, %v4162_v35  ;;  %v4159_v36 = vpop.xlane.xlu0 %4158 }
0x2931   :  { %v4165_v31 = vmul.f32 0.03125, %v4159_v36 }
0x2932   :  { %v4170_v19 = vsub.f32 %v4148_v26, %v4166_v48 }
0x2933   :  { %v4169_v42 = vsub.f32 %v4147_v58, %v4165_v31 }
0x2934   :  { %v4174_v50 = vmul.f32 %v4170_v19, %v4170_v19 }
0x2935   :  { %v4173_v47 = vmul.f32 %v4169_v42, %v4169_v42 }
0x2936   :  { %v4184_v51 = vsel %vm245_vm4, %v4174_v50, 0.0 }
0x2937   :  { %v4181_v10 = vsel %vm245_vm4, %v4173_v47, 0.0 }
0x2938   :  { %4182 = vadd.xlane.f32.xlu0 %v4181_v10 }
0x293c   :  { %4185 = vadd.xlane.f32.xlu0 %v4184_v51  ;;  %v7312_v51 = vld [vmem:[%s10686_s5 + $0x20] sm:$0xff] }
0x2953   :  { %v8045_v53 = vpop.f32.mrb[44].mxu0 }
0x2954   :  { %v4312_v41 = vadd.f32 %v8045_v53, %v7300_v52  ;;  %v4306_v37 = vpop.f32.mrb[45].mxu0 }
0x2955   :  { %v4307_v5 = vadd.f32 %v7300_v52, %v4306_v37  ;;  %v7315_v37 = vld [vmem:[%s10686_s5 + $0x38] sm:$0xff] }
0x2956   :  { %v4331_v54 = vmul.f32 0.70710677, %v4312_v41  ;;  %v4326_v49 = vmul.f32 0.5, %v4312_v41  ;;  %v7314_v41 = vld [vmem:[%s10686_s5 + $0x30] sm:$0xff] }
0x2957   :  { %v4330_v17 = vmul.f32 0.70710677, %v4307_v5  ;;  %v4325_v28 = vmul.f32 0.5, %v4307_v5  ;;  %v8543_v5 = vpack.c.bf16 %v7315_v37, %v7314_v41 }
0x2958   :  { %9120 = verf.f32 %v4331_v54 }
0x2959   :  { %9122 = verf.f32 %v4330_v17 }
0x2962   :  { %v9121_v15 = vpop.eup %9120 }
0x2963   :  { %v9123_v12 = vpop.eup %9122  ;;  %v4339_v40 = vadd.f32 1.0, %v9121_v15 }
0x2964   :  { %v4338_v3 = vadd.f32 1.0, %v9123_v12 }
0x2965   :  { %v4343_v27 = vmul.f32 %v4339_v40, %v4326_v49  ;;  %v10184_v49 = vld [vmem:[%s10694_s13 + $0xf] ss:$0 sm:$0xff] }
0x2966   :  { %v4342_v21 = vmul.f32 %v4338_v3, %v4325_v28 }
0x2968   :  { %8065 = vmatprep.mubr.msk.f32.mxu1 %vm4359_vm9, %v4342_v21 }
0x2969   :  { %8066 = vmatmul.mubr.msk.f32.vlgmr.msra.gmra.mrb[40].mxu1 %vm4359_vm9, %v4343_v27  ;;  %v10189_v27 = vld [vmem:[%s10694_s13 + $0x10] ss:$0 sm:$0xff] }
0x29c5   :  { %v4183_v60 = vpop.xlane.xlu0 %4182 }
0x29c6   :  { %v4189_v13 = vmul.f32 0.03125, %v4183_v60 }
0x29c8   :  { %v4193_v24 = vadd.f32 1e-12, %v4189_v13 }
0x29c9   :  { %v4186_v62 = vpop.xlane.xlu0 %4185 }
0x29ca   :  { %9124 = vrsqrt.f32 %v4193_v24  ;;  %v4190_v43 = vmul.f32 0.03125, %v4186_v62 }
0x29cc   :  { %v4194_v7 = vadd.f32 1e-12, %v4190_v43 }
0x29ce   :  { %9126 = vrsqrt.f32 %v4194_v7 }
0x29d4   :  { %v9125_v25 = vpop.eup %9124 }
0x29d5   :  { %v4201_v4 = vmul.f32 %v9125_v25, %v4169_v42 }
0x29d7   :  { %v4209_v59 = vmul.f32 %v10086_v38, %v4201_v4 }
0x29d8   :  { %v9127_v63 = vpop.eup %9126 }
0x29d9   :  { %v10144_v14 = vadd.f32 %v10091_v45, %v4209_v59  ;;  %v4202_v1 = vmul.f32 %v9127_v63, %v4170_v19 }
0x29db   :  { %8046 = vmatprep.mubr.msk.f32.mxu0 %vm245_vm4, %v10144_v14  ;;  %v4210_v11 = vmul.f32 %v10086_v38, %v4202_v1 }
0x29dd   :  { %v10150_v30 = vadd.f32 %v10091_v45, %v4210_v11 }
0x29df   :  { %8047 = vmatmul.mubr.msk.f32.gmra.mrb[46].mxu0 %vm245_vm4, %v10150_v30 }
0x2a3c   :  { %v8067_v8 = vpop.f32.mrb[40].mxu1 }
0x2a3d   :  { %v4438_v9 = vpop.f32.mrb[41].mxu1  ;;  %v4444_v18 = vadd.f32 %v8067_v8, %v10157_v2 }
0x2a3e   :  { %v4439_v26 = vadd.f32 %v10157_v2, %v4438_v9 }
0x2a3f   :  { %v4458_v38 = vadd.f32 %v4444_v18, %v10101_v57 }
0x2a40   :  { %v4457_v58 = vadd.f32 %v4439_v26, %v10095_v0 }
0x2a41   :  { %v4466_v61 = vsel %vm245_vm4, %v4458_v38, 0.0 }
0x2a42   :  { %v4463_v45 = vsel %vm245_vm4, %v4457_v58, 0.0 }
0x2a43   :  { %4464 = vadd.xlane.f32.xlu0 %v4463_v45 }
0x2a47   :  { %4467 = vadd.xlane.f32.xlu0 %v4466_v61 }
0x2ab2   :  { %v8048_v6 = vpop.f32.mrb[46].mxu0 }
0x2ab3   :  { %v4322_v29 = vadd.f32 %v8048_v6, %v7300_v52  ;;  %v4316_v33 = vpop.f32.mrb[47].mxu0 }
0x2ab4   :  { %v4317_v22 = vadd.f32 %v7300_v52, %v4316_v33  ;;  %v7313_v52 = vld [vmem:[%s10686_s5 + $0x28] sm:$0xff] }
0x2ab5   :  { %v4333_v46 = vmul.f32 0.70710677, %v4322_v29  ;;  %v4328_v57 = vmul.f32 0.5, %v4322_v29  ;;  %v8539_v53 = vpack.c.bf16 %v7313_v52, %v7312_v51 }
0x2ab6   :  { %v4332_v16 = vmul.f32 0.70710677, %v4317_v22  ;;  %v4327_v0 = vmul.f32 0.5, %v4317_v22 }
0x2ab7   :  { %9128 = verf.f32 %v4333_v46  ;;  %8540 = vmatprep.subr.bf16.mxu0 %v8539_v53 }
0x2ab8   :  { %9130 = verf.f32 %v4332_v16  ;;  %8542 = vmatpush3.bf16.msra.mxu0 %v8539_v53 }
0x2ab9   :  { %8544 = vmatprep.subr.bf16.mxu0 %v8543_v5 }
0x2abc   :  { %8546 = vmatpush3.bf16.msra.mxu0 %v8543_v5 }
0x2ac1   :  { %v9129_v20 = vpop.eup %9128 }
0x2ac2   :  { %v9131_v55 = vpop.eup %9130  ;;  %v4341_v23 = vadd.f32 1.0, %v9129_v20 }
0x2ac3   :  { %v4340_v44 = vadd.f32 1.0, %v9131_v55 }
0x2ac4   :  { %v4345_v34 = vmul.f32 %v4341_v23, %v4328_v57 }
0x2ac5   :  { %v4344_v39 = vmul.f32 %v4340_v44, %v4327_v0 }
0x2ac7   :  { %8068 = vmatprep.mubr.msk.f32.mxu1 %vm4359_vm9, %v4344_v39 }
0x2ac8   :  { %8069 = vmatmul.mubr.msk.f32.gmra.mrb[42].mxu1 %vm4359_vm9, %v4345_v34 }
0x2ad0   :  { %v4465_v56 = vpop.xlane.xlu0 %4464 }
0x2ad1   :  { %v4475_v35 = vmul.f32 0.03125, %v4465_v56 }
0x2ad3   :  { %v4479_v48 = vsub.f32 %v4457_v58, %v4475_v35 }
0x2ad4   :  { %v4468_v36 = vpop.xlane.xlu0 %4467 }
0x2ad5   :  { %v4476_v31 = vmul.f32 0.03125, %v4468_v36  ;;  %v4483_v19 = vmul.f32 %v4479_v48, %v4479_v48 }
0x2ad7   :  { %v4480_v42 = vsub.f32 %v4458_v38, %v4476_v31  ;;  %v4487_v47 = vsel %vm245_vm4, %v4483_v19, 0.0 }
0x2ad8   :  { %4488 = vadd.xlane.f32.xlu0 %v4487_v47 }
0x2ad9   :  { %v4484_v10 = vmul.f32 %v4480_v42, %v4480_v42 }
0x2adb   :  { %v4490_v50 = vsel %vm245_vm4, %v4484_v10, 0.0 }
0x2adc   :  { %4491 = vadd.xlane.f32.xlu0 %v4490_v50 }
0x2b65   :  { %v4489_v54 = vpop.xlane.xlu0 %4488 }
0x2b66   :  { %v4499_v17 = vmul.f32 0.03125, %v4489_v54 }
0x2b68   :  { %v4503_v15 = vadd.f32 1e-12, %v4499_v17 }
0x2b69   :  { %v4492_v12 = vpop.xlane.xlu0 %4491 }
0x2b6a   :  { %9132 = vrsqrt.f32 %v4503_v15  ;;  %v4500_v40 = vmul.f32 0.03125, %v4492_v12 }
0x2b6c   :  { %v4504_v28 = vadd.f32 1e-12, %v4500_v40 }
0x2b6e   :  { %9134 = vrsqrt.f32 %v4504_v28 }
0x2b74   :  { %v9133_v3 = vpop.eup %9132 }
0x2b75   :  { %v4511_v21 = vmul.f32 %v9133_v3, %v4479_v48 }
0x2b77   :  { %v4519_v60 = vmul.f32 %v10184_v49, %v4511_v21 }
0x2b78   :  { %v9135_v13 = vpop.eup %9134 }
0x2b79   :  { %v4512_v24 = vmul.f32 %v9135_v13, %v4480_v42  ;;  %v10193_v62 = vadd.f32 %v10189_v27, %v4519_v60 }
0x2b7b   :  { %v4520_v43 = vmul.f32 %v10184_v49, %v4512_v24  ;;  %8079 = vmatprep.mubr.msk.f32.mxu0 %vm245_vm4, %v10193_v62 }
0x2b7d   :  { %v10199_v7 = vadd.f32 %v10189_v27, %v4520_v43 }
0x2b7f   :  { %8080 = vmatmul.mubr.msk.f32.vlgmr.msra.gmra.mrb[48].mxu0 %vm245_vm4, %v10199_v7 }
0x2b9b   :  { %v8070_v25 = vpop.f32.mrb[42].mxu1 }
0x2b9c   :  { %v4448_v4 = vpop.f32.mrb[43].mxu1  ;;  %v4454_v59 = vadd.f32 %v8070_v25, %v10157_v2 }
0x2b9d   :  { %v4449_v63 = vadd.f32 %v10157_v2, %v4448_v4 }
0x2b9e   :  { %v4460_v11 = vadd.f32 %v4454_v59, %v10150_v30  ;;  %v10214_v30 = vld [vmem:[%s10694_s13 + $0x11] ss:$0 sm:$0xff] }
0x2b9f   :  { %v4459_v1 = vadd.f32 %v4449_v63, %v10144_v14 }
0x2ba0   :  { %v4472_v9 = vsel %vm245_vm4, %v4460_v11, 0.0 }
0x2ba1   :  { %v4469_v8 = vsel %vm245_vm4, %v4459_v1, 0.0 }
0x2ba2   :  { %4470 = vadd.xlane.f32.xlu0 %v4469_v8 }
0x2ba6   :  { %4473 = vadd.xlane.f32.xlu0 %v4472_v9 }
0x2c2f   :  { %v4471_v18 = vpop.xlane.xlu0 %4470 }
0x2c30   :  { %v4477_v26 = vmul.f32 0.03125, %v4471_v18 }
0x2c32   :  { %v4481_v58 = vsub.f32 %v4459_v1, %v4477_v26 }
0x2c33   :  { %v4474_v38 = vpop.xlane.xlu0 %4473 }
0x2c34   :  { %v4478_v45 = vmul.f32 0.03125, %v4474_v38  ;;  %v4485_v61 = vmul.f32 %v4481_v58, %v4481_v58 }
0x2c36   :  { %v4482_v6 = vsub.f32 %v4460_v11, %v4478_v45  ;;  %v4493_v29 = vsel %vm245_vm4, %v4485_v61, 0.0 }
0x2c37   :  { %4494 = vadd.xlane.f32.xlu0 %v4493_v29 }
0x2c38   :  { %v4486_v2 = vmul.f32 %v4482_v6, %v4482_v6 }
0x2c3a   :  { %v4496_v14 = vsel %vm245_vm4, %v4486_v2, 0.0 }
0x2c3b   :  { %4497 = vadd.xlane.f32.xlu1 %v4496_v14 }
0x2c52   :  { %v8081_v33 = vpop.f32.mrb[48].mxu0 }
0x2c53   :  { %v4625_v22 = vadd.f32 %v8081_v33, %v10214_v30  ;;  %v4619_v46 = vpop.f32.mrb[49].mxu0 }
0x2c54   :  { %v4620_v16 = vadd.f32 %v10214_v30, %v4619_v46 }
0x2c55   :  { %v10230_v23 = vmul.f32 0.35355338, %v4625_v22 }
0x2c56   :  { %v10218_v20 = vpack.i.bf16 %v4625_v22, %v4620_v16  ;;  %v10224_v55 = vmul.f32 0.35355338, %v4620_v16 }
0x2c58   :  { %8885 = vrot.lane.b32.xlu0 %v10218_v20, %s9262_s30  ;;  %8890 = vrot.lane.b32.xlu1 %v10218_v20, %s9261_s29 }
0x2c5c   :  { %8895 = vrot.lane.b32.xlu0 %v10218_v20, %s9266_s17  ;;  %4840 = vrot.lane.b32.xlu1 %v10224_v55, %s9263_s15 }
0x2c60   :  { %5040 = vrot.lane.b32.xlu0 %v10224_v55, %s9267_s18  ;;  %4842 = vrot.lane.b32.xlu1 %v10230_v23, %s9263_s15 }
0x2c64   :  { %5042 = vrot.lane.b32.xlu1 %v10230_v23, %s9267_s18 }
0x2cc4   :  { %v4495_v0 = vpop.xlane.xlu0 %4494 }
0x2cc5   :  { %v4501_v44 = vmul.f32 0.03125, %v4495_v0 }
0x2cc7   :  { %v4505_v57 = vadd.f32 1e-12, %v4501_v44 }
0x2cc8   :  { %v4498_v39 = vpop.xlane.xlu1 %4497 }
0x2cc9   :  { %9136 = vrsqrt.f32 %v4505_v57  ;;  %v4502_v34 = vmul.f32 0.03125, %v4498_v39 }
0x2cca   :  { %v8886_v56 = vpop.permute.xlu0 %8885 }
0x2ccb   :  { %v4506_v35 = vadd.f32 1e-12, %v4502_v34  ;;  %v8888_v48 = vunpack.i.h.bf16 %v8886_v56  ;;  %v8887_v36 = vunpack.i.l.bf16 %v8886_v56 }
0x2ccc   :  { %v8891_v31 = vpop.permute.xlu1 %8890 }
0x2ccd   :  { %9138 = vrsqrt.f32 %v4506_v35  ;;  %v8547_v19 = vpack.c.bf16 %v8888_v48, %v8887_v36  ;;  %v8893_v42 = vunpack.i.h.bf16 %v8891_v31  ;;  %v8892_v47 = vunpack.i.l.bf16 %v8891_v31 }
0x2cce   :  { %v8896_v10 = vpop.permute.xlu0 %8895 }
0x2ccf   :  { %v8557_v50 = vpack.c.bf16 %v8893_v42, %v8892_v47  ;;  %v8898_v51 = vunpack.i.h.bf16 %v8896_v10  ;;  %v8897_v52 = vunpack.i.l.bf16 %v8896_v10  ;;  %8549 = vmatprep.subr.msk.bf16.mxu0 %vm9452_vm6, %v8547_v19 }
0x2cd0   :  { %v4841_v53 = vpop.permute.xlu1 %4840  ;;  %8552 = vmatpush3.bf16.xpose.msk.msra.mxu0 %vm9452_vm6, %v8547_v19 }
0x2cd1   :  { %v8567_v41 = vpack.c.bf16 %v8898_v51, %v8897_v52  ;;  %8559 = vmatprep.subr.msk.bf16.mxu1 %vm9452_vm6, %v8557_v50  ;;  %8103 = vmatprep.mubr.msk.f32.mxu1 %vm351_vm5, %v4841_v53 }
0x2cd2   :  { %8562 = vmatpush3.bf16.xpose.msk.msra.mxu1 %vm9452_vm6, %v8557_v50  ;;  %v5041_v28 = vpop.permute.xlu0 %5040 }
0x2cd3   :  { %v9137_v37 = vpop.eup %9136  ;;  %8569 = vmatprep.subr.msk.bf16.mxu1 %vm9452_vm6, %v8567_v41 }
0x2cd4   :  { %v4513_v5 = vmul.f32 %v9137_v37, %v4481_v58  ;;  %v4843_v15 = vpop.permute.xlu1 %4842 }
0x2cd6   :  { %v4521_v54 = vmul.f32 %v10184_v49, %v4513_v5 }
0x2cd7   :  { %v9139_v17 = vpop.eup %9138 }
0x2cd8   :  { %v10251_v12 = vadd.f32 %v10189_v27, %v4521_v54  ;;  %v4514_v40 = vmul.f32 %v9139_v17, %v4482_v6  ;;  %v5043_v60 = vpop.permute.xlu1 %5042 }
0x2cd9   :  { %8104 = vmatmul.mubr.msk.f32.vlgmr.msra.gmra.mrb[44].mxu1 %vm351_vm5, %v4843_v15 }
0x2cda   :  { %8082 = vmatprep.mubr.msk.f32.mxu0 %vm245_vm4, %v10251_v12  ;;  %8572 = vmatpush3.bf16.xpose.msk.msra.mxu1 %vm9452_vm6, %v8567_v41  ;;  %v4522_v3 = vmul.f32 %v10184_v49, %v4514_v40 }
0x2cdb   :  { %8117 = vmatprep.mubr.msk.f32.mxu1 %vm351_vm5, %v5041_v28 }
0x2cdc   :  { %v10261_v21 = vadd.f32 %v10189_v27, %v4522_v3 }
0x2cde   :  { %8083 = vmatmul.mubr.msk.f32.gmra.mrb[50].mxu0 %vm245_vm4, %v10261_v21 }
0x2cdf   :  { %8089 = vmatprep.mubr.msk.f32.mxu0 %vm351_vm5, %v10224_v55 }
0x2ce1   :  { %8118 = vmatmul.mubr.msk.f32.vlgmr.msra.gmra.mrb[46].mxu1 %vm351_vm5, %v5043_v60 }
0x2ce2   :  { %8090 = vmatmul.mubr.msk.f32.vlgmr.msra.gmra.mrb[52].mxu0 %vm351_vm5, %v10230_v23 }
0x2dac   :  { %v8105_v13 = vpop.f32.mrb[44].mxu1 }
0x2dad   :  { %v4922_v24 = vpop.f32.mrb[45].mxu1  ;;  %v4934_v58 = vsel %vm437_vm7, %v8105_v13, -inf }
0x2dae   :  { %v4931_v26 = vsel %vm437_vm7, %v4922_v24, -inf }
0x2db1   :  { %v8084_v49 = vpop.f32.mrb[50].mxu0 }
0x2db2   :  { %v10271_v43 = vadd.f32 %v8084_v49, %v10214_v30  ;;  %v4629_v27 = vpop.f32.mrb[51].mxu0 }
0x2db3   :  { %v10274_v25 = vadd.f32 %v10214_v30, %v4629_v27 }
0x2db4   :  { %v8119_v4 = vpop.f32.mrb[46].mxu1 }
0x2db5   :  { %v8091_v59 = vpop.f32.mrb[52].mxu0  ;;  %v10276_v63 = vpop.f32.mrb[47].mxu1  ;;  %v10280_v1 = vpack.i.bf16 %v10271_v43, %v10274_v25  ;;  %v5134_v38 = vsel %vm437_vm7, %v8119_v4, -inf }
0x2db6   :  { %v4722_v11 = vpop.f32.mrb[53].mxu0  ;;  %v4734_v8 = vsel %vm437_vm7, %v8091_v59, -inf  ;;  %v5131_v18 = vsel %vm437_vm7, %v10276_v63, -inf }
0x2db7   :  { %4735 = vmax.xlane.f32.xlu1 %v4734_v8  ;;  %v4731_v9 = vsel %vm437_vm7, %v4722_v11, -inf }
0x2db8   :  { %4732 = vmax.xlane.f32.xlu0 %v4731_v9 }
0x2dbb   :  { %5132 = vmax.xlane.f32.xlu1 %v5131_v18 }
0x2dbc   :  { %4932 = vmax.xlane.f32.xlu0 %v4931_v26 }
0x2dc0   :  { %4935 = vmax.xlane.f32.xlu0 %v4934_v58 }
0x2dc4   :  { %5135 = vmax.xlane.f32.xlu0 %v5134_v38 }
0x2dcc   :  { %8900 = vrot.lane.b32.xlu1 %v10218_v20, %s9265_s16 }
0x2e44   :  { %v4736_v45 = vpop.xlane.xlu1 %4735 }
0x2e45   :  { %v4738_v61 = vsub.f32 %v8091_v59, %v4736_v45  ;;  %v4733_v6 = vpop.xlane.xlu0 %4732 }
0x2e46   :  { %v4737_v29 = vsub.f32 %v4722_v11, %v4733_v6 }
0x2e47   :  { %v4741_v2 = vmul.f32 1.442695, %v4738_v61 }
0x2e48   :  { %v4739_v14 = vmul.f32 1.442695, %v4737_v29  ;;  %v5133_v30 = vpop.xlane.xlu1 %5132 }
0x2e49   :  { %9140 = vpow2.f32 %v4741_v2  ;;  %v4933_v33 = vpop.xlane.xlu0 %4932  ;;  %v5137_v37 = vsub.f32 %v10276_v63, %v5133_v30 }
0x2e4a   :  { %9142 = vpow2.f32 %v4739_v14  ;;  %v4937_v22 = vsub.f32 %v4922_v24, %v4933_v33 }
0x2e4b   :  { %v5139_v5 = vmul.f32 1.442695, %v5137_v37 }
0x2e4c   :  { %v4939_v46 = vmul.f32 1.442695, %v4937_v22  ;;  %v8901_v16 = vpop.permute.xlu1 %8900 }
0x2e4d   :  { %v8903_v0 = vunpack.i.h.bf16 %v8901_v16  ;;  %v8902_v44 = vunpack.i.l.bf16 %v8901_v16  ;;  %v4936_v57 = vpop.xlane.xlu0 %4935 }
0x2e4e   :  { %9144 = vpow2.f32 %v4939_v46  ;;  %v4938_v39 = vsub.f32 %v8105_v13, %v4936_v57 }
0x2e4f   :  { %v8553_v34 = vpack.c.bf16 %v8903_v0, %v8902_v44 }
0x2e50   :  { %v4941_v56 = vmul.f32 1.442695, %v4938_v39 }
0x2e51   :  { %8554 = vmatprep.subr.bf16.mxu0 %v8553_v34  ;;  %v5136_v35 = vpop.xlane.xlu0 %5135 }
0x2e52   :  { %9146 = vpow2.f32 %v4941_v56  ;;  %v5138_v48 = vsub.f32 %v8119_v4, %v5136_v35  ;;  %8556 = vmatpush3.bf16.msra.mxu0 %v8553_v34 }
0x2e53   :  { %v9141_v36 = vpop.eup %9140 }
0x2e54   :  { %v9143_v31 = vpop.eup %9142  ;;  %v5141_v19 = vmul.f32 1.442695, %v5138_v48  ;;  %v4746_v42 = vsel %vm437_vm7, %v9141_v36, 0.0 }
0x2e55   :  { %4747 = vadd.xlane.f32.xlu0 %v4746_v42  ;;  %v4743_v47 = vsel %vm437_vm7, %v9143_v31, 0.0 }
0x2e56   :  { %9148 = vpow2.f32 %v5141_v19  ;;  %4744 = vadd.xlane.f32.xlu1 %v4743_v47 }
0x2e57   :  { %9150 = vpow2.f32 %v5139_v5 }
0x2e58   :  { %v9145_v10 = vpop.eup %9144 }
0x2e59   :  { %v4943_v50 = vsel %vm437_vm7, %v9145_v10, 0.0 }
0x2e5a   :  { %4944 = vadd.xlane.f32.xlu1 %v4943_v50 }
0x2e5c   :  { %v9147_v51 = vpop.eup %9146 }
0x2e5d   :  { %v4946_v52 = vsel %vm437_vm7, %v9147_v51, 0.0 }
0x2e5e   :  { %4947 = vadd.xlane.f32.xlu0 %v4946_v52 }
0x2e60   :  { %v9149_v53 = vpop.eup %9148 }
0x2e61   :  { %v5146_v41 = vsel %vm437_vm7, %v9149_v53, 0.0  ;;  %v9151_v54 = vpop.eup %9150 }
0x2e62   :  { %5147 = vadd.xlane.f32.xlu0 %v5146_v41  ;;  %v5143_v17 = vsel %vm437_vm7, %v9151_v54, 0.0 }
0x2e6b   :  { %8910 = vrot.lane.b32.xlu1 %v10218_v20, %s9268_s19 }
0x2e6f   :  { %8915 = vrot.lane.b32.xlu1 %v10218_v20, %s9270_s21 }
0x2e78   :  { %8905 = vrot.lane.b32.xlu0 %v10218_v20, %s9264_s1 }
0x2e7c   :  { %5240 = vrot.lane.b32.xlu0 %v10224_v55, %s9269_s20 }
0x2e93   :  { %5144 = vadd.xlane.f32.xlu1 %v5143_v17 }
0x2ea4   :  { %5242 = vrot.lane.b32.xlu1 %v10230_v23, %s9269_s20 }
0x2ee2   :  { %v4748_v15 = vpop.xlane.xlu0 %4747 }
0x2ee3   :  { %9152 = vrcp.f32 %v4748_v15  ;;  %v4745_v40 = vpop.xlane.xlu1 %4744 }
0x2ee4   :  { %9154 = vrcp.f32 %v4745_v40 }
0x2ee7   :  { %v4945_v28 = vpop.xlane.xlu1 %4944 }
0x2ee8   :  { %9156 = vrcp.f32 %v4945_v28 }
0x2eeb   :  { %v4948_v3 = vpop.xlane.xlu0 %4947  ;;  %v8911_v13 = vpop.permute.xlu1 %8910 }
0x2eec   :  { %9158 = vrcp.f32 %v4948_v3  ;;  %v8913_v63 = vunpack.i.h.bf16 %v8911_v13  ;;  %v8912_v11 = vunpack.i.l.bf16 %v8911_v13 }
0x2eed   :  { %v9153_v60 = vpop.eup %9152 }
0x2eee   :  { %v9155_v55 = vpop.eup %9154  ;;  %v4752_v27 = vmul.f32 %v9153_v60, %v9141_v36  ;;  %v8573_v38 = vpack.c.bf16 %v8913_v63, %v8912_v11 }
0x2eef   :  { %v5148_v24 = vpop.xlane.xlu0 %5147  ;;  %v4751_v49 = vmul.f32 %v9155_v55, %v9143_v31  ;;  %v8916_v18 = vpop.permute.xlu1 %8915 }
0x2ef0   :  { %v8918_v45 = vunpack.i.h.bf16 %v8916_v18  ;;  %v8917_v61 = vunpack.i.l.bf16 %v8916_v18  ;;  %9160 = vrcp.f32 %v5148_v24 }
0x2ef1   :  { %8096 = vmatprep.mubr.msk.f32.mxu0 %vm437_vm7, %v4751_v49 }
0x2ef2   :  { %v9157_v4 = vpop.eup %9156  ;;  %8097 = vmatmul.mubr.msk.f32.vlgmr.msra.gmra.mrb[54].mxu0 %vm437_vm7, %v4752_v27  ;;  %v8577_v29 = vpack.c.bf16 %v8918_v45, %v8917_v61 }
0x2ef3   :  { %v8906_v23 = vpop.permute.xlu0 %8905  ;;  %v4951_v59 = vmul.f32 %v9157_v4, %v9145_v10  ;;  %v10344_v4 = vmul.f32 0.35355338, %v10274_v25 }
0x2ef4   :  { %v8908_v8 = vunpack.i.h.bf16 %v8906_v23  ;;  %v8907_v9 = vunpack.i.l.bf16 %v8906_v23  ;;  %v10352_v23 = vmul.f32 0.35355338, %v10271_v43 }
0x2ef5   :  { %8110 = vmatprep.mubr.msk.f32.mxu0 %vm437_vm7, %v4951_v59 }
0x2ef6   :  { %v8563_v26 = vpack.c.bf16 %v8908_v8, %v8907_v9  ;;  %v9159_v58 = vpop.eup %9158 }
0x2ef7   :  { %v4952_v6 = vmul.f32 %v9159_v58, %v9147_v51  ;;  %v5241_v46 = vpop.permute.xlu0 %5240 }
0x2ef8   :  { %8564 = vmatprep.subr.bf16.mxu0 %v8563_v26 }
0x2ef9   :  { %8566 = vmatpush3.bf16.msra.mxu0 %v8563_v26 }
0x2efa   :  { %8574 = vmatprep.subr.bf16.mxu0 %v8573_v38  ;;  %v9161_v14 = vpop.eup %9160 }
0x2efb   :  { %v5152_v22 = vmul.f32 %v9161_v14, %v9149_v53 }
0x2efc   :  { %8111 = vmatmul.mubr.msk.f32.vlgmr.msra.gmra.mrb[56].mxu0 %vm437_vm7, %v4952_v6 }
0x2efd   :  { %8576 = vmatpush3.bf16.msra.mxu0 %v8573_v38 }
0x2efe   :  { %8579 = vmatprep.subr.msk.bf16.mxu0 %vm9452_vm6, %v8577_v29 }
0x2f20   :  { %v5145_v2 = vpop.xlane.xlu1 %5144 }
0x2f21   :  { %9162 = vrcp.f32 %v5145_v2 }
0x2f24   :  { %v5243_v16 = vpop.permute.xlu1 %5242 }
0x2f2b   :  { %v9163_v30 = vpop.eup %9162 }
0x2f2c   :  { %v5151_v33 = vmul.f32 %v9163_v30, %v9151_v54 }
0x2f2e   :  { %8124 = vmatprep.mubr.msk.f32.mxu0 %vm437_vm7, %v5151_v33 }
0x2f2f   :  { %8125 = vmatmul.mubr.msk.f32.vlgmr.msra.gmra.mrb[58].mxu0 %vm437_vm7, %v5152_v22 }
0x2f30   :  { %8582 = vmatpush3.bf16.xpose.msk.msra.mxu0 %vm9452_vm6, %v8577_v29  ;;  %8131 = vmatprep.mubr.msk.f32.mxu0 %vm351_vm5, %v5241_v46 }
0x2f37   :  { %8132 = vmatmul.mubr.msk.f32.vlgmr.msra.gmra.mrb[60].mxu0 %vm351_vm5, %v5243_v16 }
0x2fc5   :  { %v10320_v0 = vpop.f32.mrb[54].mxu0 }
0x2fc6   :  { %v10322_v44 = vpop.f32.mrb[55].mxu0 }
0x2fcf   :  { %v10324_v57 = vpop.f32.mrb[56].mxu0 }
0x2fd0   :  { %v10326_v39 = vpop.f32.mrb[57].mxu0 }
0x3002   :  { %v10328_v34 = vpop.f32.mrb[58].mxu0 }
0x3003   :  { %v10330_v56 = vpop.f32.mrb[59].mxu0 }
0x300a   :  { %v8133_v35 = vpop.f32.mrb[60].mxu0 }
0x300b   :  { %v5322_v48 = vpop.f32.mrb[61].mxu0  ;;  %v5334_v36 = vsel %vm437_vm7, %v8133_v35, -inf }
0x300c   :  { %5335 = vmax.xlane.f32.xlu1 %v5334_v36  ;;  %v5331_v31 = vsel %vm437_vm7, %v5322_v48, -inf }
0x300d   :  { %5332 = vmax.xlane.f32.xlu0 %v5331_v31 }
0x301d   :  { %8920 = vrot.lane.b32.xlu1 %v10218_v20, %s9271_s22 }
0x3099   :  { %v5336_v19 = vpop.xlane.xlu1 %5335 }
0x309a   :  { %v5338_v42 = vsub.f32 %v8133_v35, %v5336_v19  ;;  %v5333_v47 = vpop.xlane.xlu0 %5332 }
0x309b   :  { %v5337_v10 = vsub.f32 %v5322_v48, %v5333_v47 }
0x309c   :  { %v5341_v50 = vmul.f32 1.442695, %v5338_v42 }
0x309d   :  { %v5339_v51 = vmul.f32 1.442695, %v5337_v10  ;;  %v8921_v52 = vpop.permute.xlu1 %8920 }
0x309e   :  { %9164 = vpow2.f32 %v5341_v50  ;;  %v8923_v53 = vunpack.i.h.bf16 %v8921_v52  ;;  %v8922_v41 = vunpack.i.l.bf16 %v8921_v52 }
0x309f   :  { %9166 = vpow2.f32 %v5339_v51 }
0x30a0   :  { %v8583_v37 = vpack.c.bf16 %v8923_v53, %v8922_v41 }
0x30a2   :  { %8584 = vmatprep.subr.bf16.mxu1 %v8583_v37 }
0x30a3   :  { %8586 = vmatpush3.bf16.msra.mxu1 %v8583_v37 }
0x30a8   :  { %v9165_v5 = vpop.eup %9164 }
0x30a9   :  { %v5346_v54 = vsel %vm437_vm7, %v9165_v5, 0.0  ;;  %v9167_v17 = vpop.eup %9166 }
0x30aa   :  { %5347 = vadd.xlane.f32.xlu0 %v5346_v54  ;;  %v5343_v20 = vsel %vm437_vm7, %v9167_v17, 0.0 }
0x30ae   :  { %5344 = vadd.xlane.f32.xlu0 %v5343_v20 }
0x30c4   :  { %8925 = vrot.lane.b32.xlu0 %v10280_v1, %s9262_s30  ;;  %s9275_s30 = smov [#allocation2]  }
0x3137   :  { %v5348_v15 = vpop.xlane.xlu0 %5347 }
0x3138   :  { %9168 = vrcp.f32 %v5348_v15 }
0x313b   :  { %v5345_v40 = vpop.xlane.xlu0 %5344 }
0x313c   :  { %9170 = vrcp.f32 %v5345_v40 }
0x313f   :  { %v8926_v28 = vpop.permute.xlu0 %8925 }
0x3140   :  { %v8928_v3 = vunpack.i.h.bf16 %v8926_v28  ;;  %v8927_v60 = vunpack.i.l.bf16 %v8926_v28 }
0x3142   :  { %v8587_v55 = vpack.c.bf16 %v8928_v3, %v8927_v60  ;;  %v9169_v13 = vpop.eup %9168 }
0x3143   :  { %v5352_v27 = vmul.f32 %v9169_v13, %v9165_v5 }
0x3144   :  { %8589 = vmatprep.subr.msk.bf16.mxu1 %vm9452_vm6, %v8587_v55 }
0x3146   :  { %v9171_v24 = vpop.eup %9170 }
0x3147   :  { %v5351_v49 = vmul.f32 %v9171_v24, %v9167_v17 }
0x3149   :  { %8138 = vmatprep.mubr.msk.f32.mxu1 %vm437_vm7, %v5351_v49 }
0x314a   :  { %8139 = vmatmul.mubr.msk.f32.vlgmr.msra.gmra.mrb[48].mxu1 %vm437_vm7, %v5352_v27 }
0x314b   :  { %8592 = vmatpush3.bf16.xpose.msk.msra.mxu1 %vm9452_vm6, %v8587_v55  ;;  %8145 = vmatprep.mubr.msk.f32.mxu1 %vm351_vm5, %v10344_v4 }
0x3152   :  { %8146 = vmatmul.mubr.msk.f32.vlgmr.msra.gmra.mrb[50].mxu1 %vm351_vm5, %v10352_v23 }
0x321d   :  { %v10356_v59 = vpop.f32.mrb[48].mxu1 }
0x321e   :  { %v10358_v63 = vpop.f32.mrb[49].mxu1 }
0x3225   :  { %v8147_v25 = vpop.f32.mrb[50].mxu1 }
0x3226   :  { %v5554_v11 = vpop.f32.mrb[51].mxu1  ;;  %v5566_v8 = vsel %vm437_vm7, %v8147_v25, -inf }
0x3227   :  { %5567 = vmax.xlane.f32.xlu0 %v5566_v8  ;;  %v5563_v9 = vsel %vm437_vm7, %v5554_v11, -inf }
0x3228   :  { %5564 = vmax.xlane.f32.xlu1 %v5563_v9 }
0x3239   :  { %8930 = vrot.lane.b32.xlu1 %v10280_v1, %s9265_s16 }
0x323d   :  { %5672 = vrot.lane.b32.xlu1 %v10344_v4, %s9263_s15 }
0x32b4   :  { %v5568_v43 = vpop.xlane.xlu0 %5567 }
0x32b5   :  { %v5570_v18 = vsub.f32 %v8147_v25, %v5568_v43  ;;  %v5565_v26 = vpop.xlane.xlu1 %5564 }
0x32b6   :  { %v5569_v58 = vsub.f32 %v5554_v11, %v5565_v26 }
0x32b7   :  { %v5573_v38 = vmul.f32 1.442695, %v5570_v18 }
0x32b8   :  { %v5571_v45 = vmul.f32 1.442695, %v5569_v58 }
0x32b9   :  { %9172 = vpow2.f32 %v5573_v38  ;;  %v8931_v61 = vpop.permute.xlu1 %8930 }
0x32ba   :  { %9174 = vpow2.f32 %v5571_v45  ;;  %v8933_v6 = vunpack.i.h.bf16 %v8931_v61  ;;  %v8932_v29 = vunpack.i.l.bf16 %v8931_v61 }
0x32bc   :  { %v8593_v2 = vpack.c.bf16 %v8933_v6, %v8932_v29 }
0x32bd   :  { %v5673_v46 = vpop.permute.xlu1 %5672 }
0x32be   :  { %8594 = vmatprep.subr.bf16.mxu0 %v8593_v2 }
0x32bf   :  { %8596 = vmatpush3.bf16.msra.mxu0 %v8593_v2 }
0x32c3   :  { %v9173_v14 = vpop.eup %9172 }
0x32c4   :  { %v9175_v30 = vpop.eup %9174  ;;  %v5578_v33 = vsel %vm437_vm7, %v9173_v14, 0.0 }
0x32c5   :  { %5579 = vadd.xlane.f32.xlu0 %v5578_v33  ;;  %v5575_v22 = vsel %vm437_vm7, %v9175_v30, 0.0 }
0x32c6   :  { %5576 = vadd.xlane.f32.xlu1 %v5575_v22 }
0x32d7   :  { %5674 = vrot.lane.b32.xlu1 %v10352_v23, %s9263_s15  ;;  %s7159_s15 = sshll.u32 %s9275_s30, 4  ;;  %s7160_s15 = int_to_ptr.vmem [resolvable:$true] %s7159_s15 }
0x32d8   :  { %p9241_p1 = scmp.lt.s32.totalorder %s7160_s15, %s7160_s15 }
0x32db   :  { %8935 = vrot.lane.b32.xlu0 %v10280_v1, %s9261_s29  ;;  %s10706_s29 = smov 8  }
0x3352   :  { %v5580_v16 = vpop.xlane.xlu0 %5579 }
0x3353   :  { %9176 = vrcp.f32 %v5580_v16  ;;  %v5577_v35 = vpop.xlane.xlu1 %5576 }
0x3354   :  { %9178 = vrcp.f32 %v5577_v35 }
0x3356   :  { %v8936_v48 = vpop.permute.xlu0 %8935 }
0x3357   :  { %v8938_v36 = vunpack.i.h.bf16 %v8936_v48  ;;  %v8937_v31 = vunpack.i.l.bf16 %v8936_v48  ;;  %v5675_v51 = vpop.permute.xlu1 %5674 }
0x3359   :  { %v8597_v19 = vpack.c.bf16 %v8938_v36, %v8937_v31 }
0x335b   :  { %8599 = vmatprep.subr.msk.bf16.mxu0 %vm9452_vm6, %v8597_v19 }
0x335d   :  { %v9177_v42 = vpop.eup %9176 }
0x335e   :  { %v9179_v47 = vpop.eup %9178  ;;  %v5584_v50 = vmul.f32 %v9177_v42, %v9173_v14 }
0x335f   :  { %v5583_v10 = vmul.f32 %v9179_v47, %v9175_v30 }
0x3361   :  { %8152 = vmatprep.mubr.msk.f32.mxu0 %vm437_vm7, %v5583_v10 }
0x3362   :  { %8153 = vmatmul.mubr.msk.f32.vlgmr.msra.gmra.mrb[62].mxu0 %vm437_vm7, %v5584_v50 }
0x3363   :  { %8602 = vmatpush3.bf16.xpose.msk.msra.mxu0 %vm9452_vm6, %v8597_v19  ;;  %8159 = vmatprep.mubr.msk.f32.mxu0 %vm351_vm5, %v5673_v46 }
0x336a   :  { %8160 = vmatmul.mubr.msk.f32.vlgmr.msra.gmra.mrb[64].mxu0 %vm351_vm5, %v5675_v51 }
0x3435   :  { %v10380_v52 = vpop.f32.mrb[62].mxu0 }
0x3436   :  { %v10382_v53 = vpop.f32.mrb[63].mxu0 }
0x343d   :  { %v8161_v41 = vpop.f32.mrb[64].mxu0 }
0x343e   :  { %v5754_v37 = vpop.f32.mrb[65].mxu0  ;;  %v5766_v5 = vsel %vm437_vm7, %v8161_v41, -inf }
0x343f   :  { %5767 = vmax.xlane.f32.xlu1 %v5766_v5  ;;  %v5763_v54 = vsel %vm437_vm7, %v5754_v37, -inf }
0x3440   :  { %5764 = vmax.xlane.f32.xlu0 %v5763_v54 }
0x3450   :  { %8940 = vrot.lane.b32.xlu1 %v10280_v1, %s9264_s1  ;;  %s9236_s1 = scalar_lea.vmem %s7160_s15, 256 }
0x3451   :  { %p9237_p0 = scmp.ne.s32.totalorder %s7160_s15, %s9236_s1  ;;  %p9242_p2 = scmp.lt.s32.totalorder %s9236_s1, %s9236_s1 }
0x3453   :  { %p9243_p3 = por %p9242_p2, %p9241_p1 }
0x3454   :  { %5872 = vrot.lane.b32.xlu1 %v10344_v4, %s9267_s18 }
0x3455   :  { %p9244_p4 = pnand %p9243_p3, %p9237_p0 }
0x3458   :  { %5874 = vrot.lane.b32.xlu1 %v10352_v23, %s9267_s18 }
0x34cc   :  { %v5768_v17 = vpop.xlane.xlu1 %5767 }
0x34cd   :  { %v5770_v20 = vsub.f32 %v8161_v41, %v5768_v17  ;;  %v5765_v15 = vpop.xlane.xlu0 %5764 }
0x34ce   :  { %v5769_v40 = vsub.f32 %v5754_v37, %v5765_v15 }
0x34cf   :  { %v5773_v28 = vmul.f32 1.442695, %v5770_v20 }
0x34d0   :  { %v5771_v3 = vmul.f32 1.442695, %v5769_v40  ;;  %v8941_v60 = vpop.permute.xlu1 %8940 }
0x34d1   :  { %9180 = vpow2.f32 %v5773_v28  ;;  %v8943_v55 = vunpack.i.h.bf16 %v8941_v60  ;;  %v8942_v13 = vunpack.i.l.bf16 %v8941_v60 }
0x34d2   :  { %9182 = vpow2.f32 %v5771_v3 }
0x34d3   :  { %v8603_v24 = vpack.c.bf16 %v8943_v55, %v8942_v13 }
0x34d4   :  { %v5873_v29 = vpop.permute.xlu1 %5872 }
0x34d5   :  { %8604 = vmatprep.subr.bf16.mxu1 %v8603_v24 }
0x34d6   :  { %8606 = vmatpush3.bf16.msra.mxu1 %v8603_v24 }
0x34d8   :  { %v5875_v2 = vpop.permute.xlu1 %5874 }
0x34db   :  { %v9181_v49 = vpop.eup %9180 }
0x34dc   :  { %v5778_v27 = vsel %vm437_vm7, %v9181_v49, 0.0  ;;  %v9183_v25 = vpop.eup %9182 }
0x34dd   :  { %5779 = vadd.xlane.f32.xlu0 %v5778_v27  ;;  %v5775_v11 = vsel %vm437_vm7, %v9183_v25, 0.0 }
0x34e1   :  { %5776 = vadd.xlane.f32.xlu0 %v5775_v11 }
0x34f7   :  { %8945 = vrot.lane.b32.xlu0 %v10280_v1, %s9266_s17 }
0x356a   :  { %v5780_v8 = vpop.xlane.xlu0 %5779 }
0x356b   :  { %9184 = vrcp.f32 %v5780_v8 }
0x356e   :  { %v5777_v9 = vpop.xlane.xlu0 %5776 }
0x356f   :  { %9186 = vrcp.f32 %v5777_v9 }
0x3572   :  { %v8946_v43 = vpop.permute.xlu0 %8945 }
0x3573   :  { %v8948_v18 = vunpack.i.h.bf16 %v8946_v43  ;;  %v8947_v26 = vunpack.i.l.bf16 %v8946_v43 }
0x3575   :  { %v8607_v58 = vpack.c.bf16 %v8948_v18, %v8947_v26  ;;  %v9185_v38 = vpop.eup %9184 }
0x3576   :  { %v5784_v6 = vmul.f32 %v9185_v38, %v9181_v49 }
0x3577   :  { %8609 = vmatprep.subr.msk.bf16.mxu1 %vm9452_vm6, %v8607_v58 }
0x3579   :  { %v9187_v45 = vpop.eup %9186 }
0x357a   :  { %v5783_v61 = vmul.f32 %v9187_v45, %v9183_v25 }
0x357c   :  { %8166 = vmatprep.mubr.msk.f32.mxu1 %vm437_vm7, %v5783_v61 }
0x357d   :  { %8167 = vmatmul.mubr.msk.f32.vlgmr.msra.gmra.mrb[52].mxu1 %vm437_vm7, %v5784_v6 }
0x357e   :  { %8612 = vmatpush3.bf16.xpose.msk.msra.mxu1 %vm9452_vm6, %v8607_v58  ;;  %8173 = vmatprep.mubr.msk.f32.mxu1 %vm351_vm5, %v5873_v29 }
0x3585   :  { %8174 = vmatmul.mubr.msk.f32.vlgmr.msra.gmra.mrb[54].mxu1 %vm351_vm5, %v5875_v2  ;;  %v7369_v2 = vld [vmem:[%s10687_s6 + $0x20] sm:$0xff] }
0x3650   :  { %v10404_v14 = vpop.f32.mrb[52].mxu1 }
0x3651   :  { %v5863_v30 = vpop.f32.mrb[53].mxu1 }
0x3658   :  { %v8175_v33 = vpop.f32.mrb[54].mxu1 }
0x3659   :  { %v5954_v22 = vpop.f32.mrb[55].mxu1  ;;  %v5966_v46 = vsel %vm437_vm7, %v8175_v33, -inf }
0x365a   :  { %5967 = vmax.xlane.f32.xlu1 %v5966_v46  ;;  %v5963_v16 = vsel %vm437_vm7, %v5954_v22, -inf }
0x365b   :  { %5964 = vmax.xlane.f32.xlu0 %v5963_v16 }
0x366b   :  { %8950 = vrot.lane.b32.xlu1 %v10280_v1, %s9268_s19 }
0x366f   :  { %6072 = vrot.lane.b32.xlu1 %v10344_v4, %s9269_s20 }
0x3673   :  { %6074 = vrot.lane.b32.xlu1 %v10352_v23, %s9269_s20 }
0x36e7   :  { %v5968_v35 = vpop.xlane.xlu1 %5967 }
0x36e8   :  { %v5970_v48 = vsub.f32 %v8175_v33, %v5968_v35  ;;  %v5965_v36 = vpop.xlane.xlu0 %5964 }
0x36e9   :  { %v5969_v31 = vsub.f32 %v5954_v22, %v5965_v36 }
0x36ea   :  { %v5973_v19 = vmul.f32 1.442695, %v5970_v48 }
0x36eb   :  { %v5971_v42 = vmul.f32 1.442695, %v5969_v31  ;;  %v8951_v47 = vpop.permute.xlu1 %8950 }
0x36ec   :  { %9188 = vpow2.f32 %v5973_v19  ;;  %v8953_v10 = vunpack.i.h.bf16 %v8951_v47  ;;  %v8952_v50 = vunpack.i.l.bf16 %v8951_v47 }
0x36ed   :  { %9190 = vpow2.f32 %v5971_v42 }
0x36ee   :  { %v8613_v51 = vpack.c.bf16 %v8953_v10, %v8952_v50 }
0x36ef   :  { %v6073_v13 = vpop.permute.xlu1 %6072 }
0x36f0   :  { %8614 = vmatprep.subr.bf16.mxu0 %v8613_v51 }
0x36f1   :  { %8616 = vmatpush3.bf16.msra.mxu0 %v8613_v51 }
0x36f3   :  { %v6075_v24 = vpop.permute.xlu1 %6074 }
0x36f6   :  { %v9189_v41 = vpop.eup %9188 }
0x36f7   :  { %v5978_v4 = vsel %vm437_vm7, %v9189_v41, 0.0  ;;  %v9191_v37 = vpop.eup %9190 }
0x36f8   :  { %5979 = vadd.xlane.f32.xlu0 %v5978_v4  ;;  %v5975_v23 = vsel %vm437_vm7, %v9191_v37, 0.0 }
0x36fc   :  { %5976 = vadd.xlane.f32.xlu0 %v5975_v23 }
0x3712   :  { %8955 = vrot.lane.b32.xlu0 %v10280_v1, %s9270_s21 }
0x3785   :  { %v5980_v5 = vpop.xlane.xlu0 %5979 }
0x3786   :  { %9192 = vrcp.f32 %v5980_v5 }
0x3789   :  { %v5977_v54 = vpop.xlane.xlu0 %5976 }
0x378a   :  { %9194 = vrcp.f32 %v5977_v54 }
0x378d   :  { %v8956_v17 = vpop.permute.xlu0 %8955 }
0x378e   :  { %v8958_v20 = vunpack.i.h.bf16 %v8956_v17  ;;  %v8957_v15 = vunpack.i.l.bf16 %v8956_v17 }
0x3790   :  { %v8617_v40 = vpack.c.bf16 %v8958_v20, %v8957_v15  ;;  %v9193_v28 = vpop.eup %9192  ;;  %v7373_v20 = vld [vmem:[%s10694_s13 + $0x12] ss:$0 sm:$0xff] }
0x3791   :  { %v5984_v55 = vmul.f32 %v9193_v28, %v9189_v41 }
0x3792   :  { %8619 = vmatprep.subr.msk.bf16.mxu0 %vm9452_vm6, %v8617_v40 }
0x3794   :  { %v9195_v3 = vpop.eup %9194 }
0x3795   :  { %v5983_v60 = vmul.f32 %v9195_v3, %v9191_v37 }
0x3797   :  { %8180 = vmatprep.mubr.msk.f32.mxu0 %vm437_vm7, %v5983_v60 }
0x3798   :  { %8181 = vmatmul.mubr.msk.f32.vlgmr.msra.gmra.mrb[66].mxu0 %vm437_vm7, %v5984_v55 }
0x3799   :  { %8622 = vmatpush3.bf16.xpose.msk.msra.mxu0 %vm9452_vm6, %v8617_v40  ;;  %8187 = vmatprep.mubr.msk.f32.mxu0 %vm351_vm5, %v6073_v13 }
0x37a0   :  { %8188 = vmatmul.mubr.msk.f32.vlgmr.msra.gmra.mrb[68].mxu0 %vm351_vm5, %v6075_v24 }
0x386b   :  { %v8182_v49 = vpop.f32.mrb[66].mxu0 }
0x386c   :  { %v6063_v27 = vpop.f32.mrb[67].mxu0 }
0x3873   :  { %v8189_v25 = vpop.f32.mrb[68].mxu0 }
0x3874   :  { %v6154_v11 = vpop.f32.mrb[69].mxu0  ;;  %v6166_v8 = vsel %vm437_vm7, %v8189_v25, -inf }
0x3875   :  { %6167 = vmax.xlane.f32.xlu1 %v6166_v8  ;;  %v6163_v9 = vsel %vm437_vm7, %v6154_v11, -inf }
0x3876   :  { %6164 = vmax.xlane.f32.xlu0 %v6163_v9 }
0x3886   :  { %8960 = vrot.lane.b32.xlu1 %v10280_v1, %s9271_s22 }
0x388a   :  { %5444 = vrot.lane.b32.xlu1 %v10324_v57, %s10706_s29 }
0x388e   :  { %5450 = vrot.lane.b32.xlu1 %v10330_v56, %s10704_s4 }
0x3892   :  { %5458 = vrot.lane.b32.xlu1 %v10358_v63, %s10705_s3 }
0x3896   :  { %6274 = vrot.lane.b32.xlu1 %v5863_v30, %s10706_s29  ;;  %v7370_v30 = vld [vmem:[%s10687_s6 + $0x28] sm:$0xff] }
0x3897   :  { %v8627_v33 = vpack.c.bf16 %v7370_v30, %v7369_v2 }
0x389a   :  { %6282 = vrot.lane.b32.xlu1 %v6063_v27, %s10704_s4 }
0x3902   :  { %v6168_v32 = vpop.xlane.xlu1 %6167 }
0x3903   :  { %v6170_v43 = vsub.f32 %v8189_v25, %v6168_v32  ;;  %v6165_v18 = vpop.xlane.xlu0 %6164 }
0x3904   :  { %v6169_v26 = vsub.f32 %v6154_v11, %v6165_v18 }
0x3905   :  { %v6173_v58 = vmul.f32 1.442695, %v6170_v43 }
0x3906   :  { %v6171_v38 = vmul.f32 1.442695, %v6169_v26  ;;  %v8961_v1 = vpop.permute.xlu1 %8960 }
0x3907   :  { %v8963_v45 = vunpack.i.h.bf16 %v8961_v1  ;;  %v8962_v61 = vunpack.i.l.bf16 %v8961_v1 }
0x3908   :  { %9196 = vpow2.f32 %v6171_v38 }
0x3909   :  { %v8623_v57 = vpack.c.bf16 %v8963_v45, %v8962_v61  ;;  %9198 = vpow2.f32 %v6173_v58 }
0x390a   :  { %v5445_v46 = vpop.permute.xlu1 %5444 }
0x390b   :  { %8624 = vmatprep.subr.bf16.mxu1 %v8623_v57  ;;  %v5465_v41 = vsel %vm351_vm5, %v10320_v0, %v5445_v46  ;;  %v7383_v46 = vld [vmem:[%s10688_s7 + $0x38] sm:$0xff] }
0x390c   :  { %8626 = vmatpush3.bf16.msra.mxu1 %v8623_v57 }
0x390d   :  { %8628 = vmatprep.subr.bf16.mxu1 %v8627_v33 }
0x390e   :  { %v5451_v48 = vpop.permute.xlu1 %5450 }
0x3912   :  { %v9197_v56 = vpop.eup %9196  ;;  %v5459_v50 = vpop.permute.xlu1 %5458 }
0x3913   :  { %v6175_v63 = vsel %vm437_vm7, %v9197_v56, 0.0  ;;  %v9199_v6 = vpop.eup %9198 }
0x3914   :  { %6176 = vadd.xlane.f32.xlu0 %v6175_v63  ;;  %v6178_v29 = vsel %vm437_vm7, %v9199_v6, 0.0 }
0x3916   :  { %v6275_v13 = vpop.permute.xlu1 %6274 }
0x3917   :  { %v6296_v27 = vsel %vm351_vm5, %v10382_v53, %v6275_v13  ;;  %v7391_v13 = vld [vmem:[%s10689_s8 + $0x50] sm:$0xff] }
0x3918   :  { %6179 = vadd.xlane.f32.xlu0 %v6178_v29 }
0x392e   :  { %5442 = vrot.lane.b32.xlu0 %v10326_v39, %s10706_s29 }
0x3932   :  { %5452 = vrot.lane.b32.xlu0 %v10328_v34, %s10704_s4 }
0x3936   :  { %5460 = vrot.lane.b32.xlu0 %v10356_v59, %s10705_s3  ;;  %v7371_v59 = vld [vmem:[%s10687_s6 + $0x30] sm:$0xff] }
0x393a   :  { %6276 = vrot.lane.b32.xlu0 %v10404_v14, %s10706_s29  ;;  %v7372_v14 = vld [vmem:[%s10687_s6 + $0x38] sm:$0xff] }
0x393b   :  { %v8631_v10 = vpack.c.bf16 %v7372_v14, %v7371_v59 }
0x393e   :  { %6284 = vrot.lane.b32.xlu0 %v8182_v49, %s10704_s4  ;;  %v6283_v49 = vpop.permute.xlu1 %6282 }
0x393f   :  { %v6298_v11 = vsel %vm437_vm7, %v6296_v27, %v6283_v49  ;;  %v7393_v27 = vld [vmem:[%s10689_s8 + $0x60] sm:$0xff] }
0x39a1   :  { %v6177_v39 = vpop.xlane.xlu0 %6176 }
0x39a2   :  { %9200 = vrcp.f32 %v6177_v39 }
0x39a5   :  { %v6180_v22 = vpop.xlane.xlu0 %6179 }
0x39a6   :  { %9202 = vrcp.f32 %v6180_v22  ;;  %v7382_v22 = vld [vmem:[%s10688_s7 + $0x30] sm:$0xff] }
0x39a9   :  { %v5443_v16 = vpop.permute.xlu0 %5442 }
0x39aa   :  { %v5464_v34 = vsel %vm351_vm5, %v10322_v44, %v5443_v16  ;;  %v8639_v16 = vpack.c.bf16 %v7383_v46, %v7382_v22 }
0x39ab   :  { %v5466_v19 = vsel %vm437_vm7, %v5464_v34, %v5451_v48 }
0x39ac   :  { %v9201_v35 = vpop.eup %9200  ;;  %v5468_v44 = vsel %vm1175_vm8, %v5466_v19, %v5459_v50 }
0x39ad   :  { %v6183_v36 = vmul.f32 %v9201_v35, %v9197_v56  ;;  %v5453_v47 = vpop.permute.xlu0 %5452 }
0x39ae   :  { %v5467_v4 = vsel %vm437_vm7, %v5465_v41, %v5453_v47 }
0x39af   :  { %8194 = vmatprep.mubr.msk.f32.mxu1 %vm437_vm7, %v6183_v36 }
0x39b0   :  { %v9203_v31 = vpop.eup %9202 }
0x39b1   :  { %v6184_v42 = vmul.f32 %v9203_v31, %v9199_v6  ;;  %v5461_v51 = vpop.permute.xlu0 %5460 }
0x39b2   :  { %v5469_v37 = vsel %vm1175_vm8, %v5467_v4, %v5461_v51 }
0x39b3   :  { %8195 = vmatmul.mubr.msk.f32.vlgmr.msra.gmra.mrb[56].mxu1 %vm437_vm7, %v6184_v42 }
0x39b4   :  { %8630 = vmatpush3.bf16.msra.mxu1 %v8627_v33  ;;  %8205 = vmatprep.mubr.msk.f32.mxu1 %vm245_vm4, %v5468_v44 }
0x39b5   :  { %8632 = vmatprep.subr.bf16.mxu1 %v8631_v10  ;;  %v6277_v55 = vpop.permute.xlu0 %6276 }
0x39b8   :  { %8634 = vmatpush3.bf16.msra.mxu1 %v8631_v10 }
0x39b9   :  { %v6285_v24 = vpop.permute.xlu0 %6284 }
0x39bb   :  { %8206 = vmatmul.mubr.msk.f32.vlgmr.msra.gmra.mrb[58].mxu1 %vm245_vm4, %v5469_v37 }
0x3a86   :  { %v8196_v23 = vpop.f32.mrb[56].mxu1 }
0x3a87   :  { %6292 = vrot.lane.b32.xlu0 %v8196_v23, %s10705_s3  ;;  %v6263_v5 = vpop.f32.mrb[57].mxu1  ;;  %v7378_v23 = vld [vmem:[%s10694_s13 + $0x13] ss:$0 sm:$0xff] }
0x3a88   :  { %6290 = vrot.lane.b32.xlu1 %v6263_v5, %s10705_s3 }
0x3a8e   :  { %v8207_v54 = vpop.f32.mrb[58].mxu1 }
0x3a8f   :  { %v6390_v17 = vpop.f32.mrb[59].mxu1  ;;  %v6396_v0 = vadd.f32 %v8207_v54, %v7373_v20 }
0x3a90   :  { %v6391_v40 = vadd.f32 %v7373_v20, %v6390_v17 }
0x3a91   :  { %v6410_v15 = vadd.f32 %v6396_v0, %v10199_v7  ;;  %v6297_v7 = vsel %vm351_vm5, %v10380_v52, %v6277_v55 }
0x3a92   :  { %v6409_v3 = vadd.f32 %v6391_v40, %v10193_v62  ;;  %v6299_v9 = vsel %vm437_vm7, %v6297_v7, %v6285_v24  ;;  %v7392_v24 = vld [vmem:[%s10689_s8 + $0x58] sm:$0xff]  ;;  %v7395_v7 = vld [vmem:[%s10689_s8 + $0x70] sm:$0xff] }
0x3a93   :  { %v6418_v28 = vsel %vm245_vm4, %v6410_v15, 0.0  ;;  %v8647_v49 = vpack.c.bf16 %v7392_v24, %v7391_v13 }
0x3a94   :  { %v6415_v60 = vsel %vm245_vm4, %v6409_v3, 0.0 }
0x3aa6   :  { %6419 = vadd.xlane.f32.xlu0 %v6418_v28 }
0x3aac   :  { %6416 = vadd.xlane.f32.xlu1 %v6415_v60  ;;  %v7390_v60 = vld [vmem:[%s10689_s8 + $0x48] sm:$0xff] }
0x3af9   :  { %v6293_v25 = vpop.permute.xlu0 %6292 }
0x3afa   :  { %v6291_v8 = vpop.permute.xlu1 %6290  ;;  %v6301_v32 = vsel %vm1175_vm8, %v6299_v9, %v6293_v25  ;;  %v7394_v25 = vld [vmem:[%s10689_s8 + $0x68] sm:$0xff] }
0x3afb   :  { %v6300_v62 = vsel %vm1175_vm8, %v6298_v11, %v6291_v8  ;;  %v8651_v11 = vpack.c.bf16 %v7394_v25, %v7393_v27  ;;  %v7396_v8 = vld [vmem:[%s10689_s8 + $0x78] sm:$0xff] }
0x3afc   :  { %8208 = vmatprep.mubr.msk.f32.mxu1 %vm245_vm4, %v6300_v62  ;;  %v8655_v9 = vpack.c.bf16 %v7396_v8, %v7395_v7 }
0x3afd   :  { %8209 = vmatmul.mubr.msk.f32.gmra.mrb[60].mxu1 %vm245_vm4, %v6301_v32 }
0x3b33   :  { %v6420_v43 = vpop.xlane.xlu0 %6419 }
0x3b34   :  { %v6428_v53 = vmul.f32 0.03125, %v6420_v43 }
0x3b36   :  { %v6432_v38 = vsub.f32 %v6410_v15, %v6428_v53 }
0x3b38   :  { %v6436_v6 = vmul.f32 %v6432_v38, %v6432_v38 }
0x3b39   :  { %v6417_v18 = vpop.xlane.xlu1 %6416 }
0x3b3a   :  { %v6427_v26 = vmul.f32 0.03125, %v6417_v18  ;;  %v6442_v30 = vsel %vm245_vm4, %v6436_v6, 0.0 }
0x3b3c   :  { %v6431_v52 = vsub.f32 %v6409_v3, %v6427_v26  ;;  %v7389_v3 = vld [vmem:[%s10689_s8 + $0x40] sm:$0xff] }
0x3b3d   :  { %v8643_v55 = vpack.c.bf16 %v7390_v60, %v7389_v3 }
0x3b3e   :  { %v6435_v2 = vmul.f32 %v6431_v52, %v6431_v52 }
0x3b3f   :  { %8644 = vmatprep.subr.bf16.mxu1 %v8643_v55 }
0x3b40   :  { %v6439_v33 = vsel %vm245_vm4, %v6435_v2, 0.0  ;;  %8646 = vmatpush3.bf16.msra.mxu1 %v8643_v55 }
0x3b41   :  { %8648 = vmatprep.subr.bf16.mxu1 %v8647_v49 }
0x3b44   :  { %8650 = vmatpush3.bf16.msra.mxu1 %v8647_v49 }
0x3b45   :  { %8652 = vmatprep.subr.bf16.mxu1 %v8651_v11 }
0x3b48   :  { %8654 = vmatpush3.bf16.msra.mxu1 %v8651_v11 }
0x3b49   :  { %8656 = vmatprep.subr.bf16.mxu1 %v8655_v9 }
0x3b4c   :  { %8658 = vmatpush3.bf16.msra.mxu1 %v8655_v9 }
0x3bd0   :  { %v8210_v58 = vpop.f32.mrb[60].mxu1 }
0x3bd1   :  { %v6406_v1 = vadd.f32 %v8210_v58, %v7373_v20  ;;  %v6400_v45 = vpop.f32.mrb[61].mxu1 }
0x3bd2   :  { %v6401_v61 = vadd.f32 %v7373_v20, %v6400_v45  ;;  %v7379_v20 = vld [vmem:[%s10694_s13 + $0x14] ss:$0 sm:$0xff] }
0x3bd3   :  { %v6412_v57 = vadd.f32 %v6406_v1, %v10261_v21  ;;  %v7380_v21 = vld [vmem:[%s10688_s7 + $0x20] sm:$0xff] }
0x3bd4   :  { %v6411_v56 = vadd.f32 %v6401_v61, %v10251_v12  ;;  %v7381_v12 = vld [vmem:[%s10688_s7 + $0x28] sm:$0xff] }
0x3bd5   :  { %v6424_v63 = vsel %vm245_vm4, %v6412_v57, 0.0  ;;  %v8635_v39 = vpack.c.bf16 %v7381_v12, %v7380_v21 }
0x3bd6   :  { %6425 = vadd.xlane.f32.xlu1 %v6424_v63  ;;  %v6421_v29 = vsel %vm245_vm4, %v6411_v56, 0.0  ;;  %v7384_v63 = vld [vmem:[%s10694_s13 + $0x15] ss:$0 sm:$0xff] }
0x3bd7   :  { %6422 = vadd.xlane.f32.xlu0 %v6421_v29  ;;  %8636 = vmatprep.subr.bf16.mxu0 %v8635_v39 }
0x3bd8   :  { %8638 = vmatpush3.bf16.msra.mxu0 %v8635_v39 }
0x3bd9   :  { %8640 = vmatprep.subr.bf16.mxu0 %v8639_v16 }
0x3bda   :  { %6443 = vadd.xlane.f32.xlu1 %v6442_v30 }
0x3bdb   :  { %6440 = vadd.xlane.f32.xlu0 %v6439_v33 }
0x3bdc   :  { %8642 = vmatpush3.bf16.msra.mxu0 %v8639_v16 }
0x3c63   :  { %v6426_v35 = vpop.xlane.xlu1 %6425 }
0x3c64   :  { %v6430_v48 = vmul.f32 0.03125, %v6426_v35  ;;  %v6423_v34 = vpop.xlane.xlu0 %6422 }
0x3c65   :  { %v6429_v36 = vmul.f32 0.03125, %v6423_v34 }
0x3c66   :  { %v6434_v59 = vsub.f32 %v6412_v57, %v6430_v48 }
0x3c67   :  { %v6433_v14 = vsub.f32 %v6411_v56, %v6429_v36  ;;  %v6444_v31 = vpop.xlane.xlu1 %6443 }
0x3c68   :  { %v6452_v19 = vmul.f32 0.03125, %v6444_v31  ;;  %v6441_v42 = vpop.xlane.xlu0 %6440  ;;  %v6438_v47 = vmul.f32 %v6434_v59, %v6434_v59 }
0x3c69   :  { %v6451_v10 = vmul.f32 0.03125, %v6441_v42  ;;  %v6437_v50 = vmul.f32 %v6433_v14, %v6433_v14 }
0x3c6a   :  { %v6456_v44 = vadd.f32 1e-12, %v6452_v19  ;;  %v6448_v51 = vsel %vm245_vm4, %v6438_v47, 0.0 }
0x3c6b   :  { %v6455_v41 = vadd.f32 1e-12, %v6451_v10  ;;  %6449 = vadd.xlane.f32.xlu1 %v6448_v51  ;;  %v6445_v4 = vsel %vm245_vm4, %v6437_v50, 0.0 }
0x3c6c   :  { %9204 = vrsqrt.f32 %v6456_v44  ;;  %6446 = vadd.xlane.f32.xlu0 %v6445_v4 }
0x3c6d   :  { %9206 = vrsqrt.f32 %v6455_v41 }
0x3c76   :  { %v9205_v37 = vpop.eup %9204 }
0x3c77   :  { %v9207_v5 = vpop.eup %9206  ;;  %v6464_v54 = vmul.f32 %v9205_v37, %v6432_v38 }
0x3c78   :  { %v6463_v17 = vmul.f32 %v9207_v5, %v6431_v52 }
0x3c79   :  { %v6472_v0 = vmul.f32 %v7378_v23, %v6464_v54 }
0x3c7a   :  { %v6471_v15 = vmul.f32 %v7378_v23, %v6463_v17 }
0x3c7b   :  { %v10518_v28 = vadd.f32 %v7379_v20, %v6472_v0 }
0x3c7c   :  { %v6479_v40 = vadd.f32 %v7379_v20, %v6471_v15 }
0x3c7e   :  { %8219 = vmatprep.mubr.msk.f32.mxu0 %vm245_vm4, %v6479_v40 }
0x3c7f   :  { %8220 = vmatmul.mubr.msk.f32.vlgmr.msra.gmra.mrb[70].mxu0 %vm245_vm4, %v10518_v28 }
0x3cf8   :  { %v6450_v62 = vpop.xlane.xlu1 %6449 }
0x3cf9   :  { %v6454_v32 = vmul.f32 0.03125, %v6450_v62  ;;  %v6447_v43 = vpop.xlane.xlu0 %6446 }
0x3cfa   :  { %v6453_v18 = vmul.f32 0.03125, %v6447_v43 }
0x3cfb   :  { %v6458_v53 = vadd.f32 1e-12, %v6454_v32 }
0x3cfc   :  { %v6457_v26 = vadd.f32 1e-12, %v6453_v18 }
0x3cfd   :  { %9208 = vrsqrt.f32 %v6458_v53  ;;  %v7402_v53 = vld [vmem:[%s10694_s13 + $0x17] ss:$0 sm:$0xff] }
0x3cfe   :  { %9210 = vrsqrt.f32 %v6457_v26 }
0x3d07   :  { %v9209_v58 = vpop.eup %9208 }
0x3d08   :  { %v9211_v38 = vpop.eup %9210  ;;  %v6466_v1 = vmul.f32 %v9209_v58, %v6434_v59  ;;  %v7403_v58 = vld [vmem:[%s10694_s13 + $0x18] ss:$0 sm:$0xff] }
0x3d09   :  { %v6465_v45 = vmul.f32 %v9211_v38, %v6433_v14 }
0x3d0a   :  { %v6474_v52 = vmul.f32 %v7378_v23, %v6466_v1 }
0x3d0b   :  { %v6473_v61 = vmul.f32 %v7378_v23, %v6465_v45  ;;  %v7397_v23 = vld [vmem:[%s10694_s13 + $0x16] ss:$0 sm:$0xff]  ;;  %v6761_v45 = vld [vmem:[%s10691_s10] sm:$0xff] }
0x3d0c   :  { %v6482_v56 = vadd.f32 %v7379_v20, %v6474_v52  ;;  %v6762_v52 = vld [vmem:[%s10691_s10 + $0x8] sm:$0xff] }
0x3d0d   :  { %v6481_v57 = vadd.f32 %v7379_v20, %v6473_v61  ;;  %v8659_v61 = vpack.c.bf16 %v6762_v52, %v6761_v45  ;;  %v7070_v45 = vld [vmem:[%s10693_s12 + $0x70] sm:$0xff]  ;;  %v7071_v52 = vld [vmem:[%s10693_s12 + $0x78] sm:$0xff] }
0x3d0f   :  { %8222 = vmatprep.mubr.msk.f32.mxu0 %vm245_vm4, %v6481_v57  ;;  %8660 = vmatprep.subr.bf16.mxu0 %v8659_v61  ;;  %v6763_v57 = vld [vmem:[%s10691_s10 + $0x10] sm:$0xff] }
0x3d10   :  { %8223 = vmatmul.mubr.msk.f32.gmra.mrb[72].mxu0 %vm245_vm4, %v6482_v56 }
0x3d11   :  { %8662 = vmatpush3.bf16.msra.mxu0 %v8659_v61  ;;  %v8703_v61 = vpack.c.bf16 %v7071_v52, %v7070_v45 }
0x3d52   :  { %v8221_v6 = vpop.f32.mrb[70].mxu0 }
0x3d53   :  { %v6577_v29 = vadd.f32 %v8221_v6, %v7384_v63  ;;  %v6571_v2 = vpop.f32.mrb[71].mxu0 }
0x3d54   :  { %v6572_v30 = vadd.f32 %v7384_v63, %v6571_v2 }
0x3d55   :  { %v6595_v33 = vmul.f32 0.70710677, %v6577_v29  ;;  %v6591_v35 = vmul.f32 0.5, %v6577_v29 }
0x3d56   :  { %v6594_v21 = vmul.f32 0.70710677, %v6572_v30  ;;  %v6590_v46 = vmul.f32 0.5, %v6572_v30 }
0x3d57   :  { %9212 = verf.f32 %v6595_v33 }
0x3d58   :  { %9214 = verf.f32 %v6594_v21 }
0x3d61   :  { %v9213_v12 = vpop.eup %9212 }
0x3d62   :  { %v9215_v39 = vpop.eup %9214  ;;  %v6603_v22 = vadd.f32 1.0, %v9213_v12 }
0x3d63   :  { %v6602_v16 = vadd.f32 1.0, %v9215_v39  ;;  %v7404_v39 = vld [vmem:[%s10694_s13 + $0x1a] ss:$0 sm:$0xff] }
0x3d64   :  { %v6607_v34 = vmul.f32 %v6603_v22, %v6591_v35 }
0x3d65   :  { %v6606_v48 = vmul.f32 %v6602_v16, %v6590_v46 }
0x3d67   :  { %8241 = vmatprep.mubr.msk.f32.mxu1 %vm4359_vm9, %v6606_v48 }
0x3d68   :  { %8242 = vmatmul.mubr.msk.f32.vlgmr.msra.gmra.mrb[62].mxu1 %vm4359_vm9, %v6607_v34 }
0x3de3   :  { %v8224_v36 = vpop.f32.mrb[72].mxu0 }
0x3de4   :  { %v6587_v59 = vadd.f32 %v8224_v36, %v7384_v63  ;;  %v6581_v14 = vpop.f32.mrb[73].mxu0 }
0x3de5   :  { %v6582_v31 = vadd.f32 %v7384_v63, %v6581_v14 }
0x3de6   :  { %v6597_v19 = vmul.f32 0.70710677, %v6587_v59  ;;  %v6593_v41 = vmul.f32 0.5, %v6587_v59 }
0x3de7   :  { %v6596_v42 = vmul.f32 0.70710677, %v6582_v31  ;;  %v6592_v44 = vmul.f32 0.5, %v6582_v31 }
0x3de8   :  { %9216 = verf.f32 %v6597_v19 }
0x3de9   :  { %9218 = verf.f32 %v6596_v42 }
0x3df2   :  { %v9217_v47 = vpop.eup %9216 }
0x3df3   :  { %v9219_v10 = vpop.eup %9218  ;;  %v6605_v50 = vadd.f32 1.0, %v9217_v47 }
0x3df4   :  { %v6604_v51 = vadd.f32 1.0, %v9219_v10 }
0x3df5   :  { %v6609_v37 = vmul.f32 %v6605_v50, %v6593_v41  ;;  %v6960_v41 = vld [vmem:[%s10690_s9] sm:$0xff] }
0x3df6   :  { %v6608_v4 = vmul.f32 %v6604_v51, %v6592_v44  ;;  %v6874_v51 = vld [vmem:[%s10692_s11] sm:$0xf] }
0x3df8   :  { %8244 = vmatprep.mubr.msk.f32.mxu1 %vm4359_vm9, %v6608_v4  ;;  %v6961_v4 = vld [vmem:[%s10690_s9 + $0x8] sm:$0xff] }
0x3df9   :  { %8245 = vmatmul.mubr.msk.f32.gmra.mrb[64].mxu1 %vm4359_vm9, %v6609_v37  ;;  %v8667_v37 = vpack.c.bf16 %v6961_v4, %v6960_v41 }
0x3e3b   :  { %v8243_v5 = vpop.f32.mrb[62].mxu1 }
0x3e3c   :  { %v6707_v54 = vadd.f32 %v8243_v5, %v7397_v23  ;;  %v6702_v17 = vpop.f32.mrb[63].mxu1  ;;  %v7057_v5 = vld [vmem:[%s10693_s12 + $0x8] sm:$0xff] }
0x3e3e   :  { %v6719_v20 = vadd.f32 %v6707_v54, %v10518_v28 }
0x3e40   :  { %v6723_v0 = vsel %vm245_vm4, %v6719_v20, 0.0 }
0x3e41   :  { %6724 = vadd.xlane.f32.xlu0 %v6723_v0 }
0x3ecc   :  { %v8246_v15 = vpop.f32.mrb[64].mxu1 }
0x3ecd   :  { %v6716_v40 = vadd.f32 %v8246_v15, %v7397_v23  ;;  %v6711_v3 = vpop.f32.mrb[65].mxu1  ;;  %v7056_v23 = vld [vmem:[%s10693_s12] sm:$0xff]  ;;  %v6962_v15 = vld [vmem:[%s10690_s9 + $0x10] sm:$0xff] }
0x3ece   :  { %v6725_v60 = vpop.xlane.xlu0 %6724  ;;  %v8675_v54 = vpack.c.bf16 %v7057_v5, %v7056_v23 }
0x3ecf   :  { %v6720_v55 = vadd.f32 %v6716_v40, %v6482_v56  ;;  %v6729_v13 = vmul.f32 0.03125, %v6725_v60  ;;  %v6764_v56 = vld [vmem:[%s10691_s10 + $0x18] sm:$0xff] }
0x3ed0   :  { %v8663_v63 = vpack.c.bf16 %v6764_v56, %v6763_v57  ;;  %8676 = vmatprep.subr.bf16.mxu1 %v8675_v54  ;;  %v6963_v40 = vld [vmem:[%s10690_s9 + $0x18] sm:$0xff] }
0x3ed1   :  { %v6731_v24 = vsub.f32 %v6719_v20, %v6729_v13  ;;  %v6726_v49 = vsel %vm245_vm4, %v6720_v55, 0.0  ;;  %8678 = vmatpush3.bf16.msra.mxu1 %v8675_v54  ;;  %v8671_v13 = vpack.c.bf16 %v6963_v40, %v6962_v15 }
0x3ed2   :  { %6727 = vadd.xlane.f32.xlu1 %v6726_v49  ;;  %8664 = vmatprep.subr.bf16.mxu0 %v8663_v63  ;;  %v7059_v49 = vld [vmem:[%s10693_s12 + $0x18] sm:$0xff] }
0x3ed3   :  { %v6733_v27 = vmul.f32 %v6731_v24, %v6731_v24  ;;  %8666 = vmatpush3.bf16.msra.mxu0 %v8663_v63  ;;  %v7410_v63 = vld [vmem:[%s10694_s13 + $0x19] ss:$0 sm:$0xff] }
0x3ed4   :  { %8258 = vmatprep.subr.msk.mxu0 %vm6881_vm11, %v6874_v51 }
0x3ed5   :  { %v6735_v25 = vsel %vm245_vm4, %v6733_v27, 0.0 }
0x3ed6   :  { %6736 = vadd.xlane.f32.xlu0 %v6735_v25  ;;  %v7060_v25 = vld [vmem:[%s10693_s12 + $0x20] sm:$0xff] }
0x3f5f   :  { %v6728_v11 = vpop.xlane.xlu1 %6727 }
0x3f60   :  { %v6730_v7 = vmul.f32 0.03125, %v6728_v11  ;;  %v7061_v11 = vld [vmem:[%s10693_s12 + $0x28] sm:$0xff] }
0x3f62   :  { %v6732_v28 = vsub.f32 %v6720_v55, %v6730_v7  ;;  %v8683_v7 = vpack.c.bf16 %v7061_v11, %v7060_v25 }
0x3f63   :  { %v6737_v8 = vpop.xlane.xlu0 %6736 }
0x3f64   :  { %v6741_v9 = vmul.f32 0.03125, %v6737_v8  ;;  %v6734_v62 = vmul.f32 %v6732_v28, %v6732_v28  ;;  %v7063_v8 = vld [vmem:[%s10693_s12 + $0x38] sm:$0xff] }
0x3f66   :  { %v6743_v32 = vadd.f32 1e-12, %v6741_v9  ;;  %v6738_v43 = vsel %vm245_vm4, %v6734_v62, 0.0  ;;  %v7064_v62 = vld [vmem:[%s10693_s12 + $0x40] sm:$0xff] }
0x3f67   :  { %6739 = vadd.xlane.f32.xlu1 %v6738_v43 }
0x3f68   :  { %9220 = vrsqrt.f32 %v6743_v32  ;;  %v7065_v32 = vld [vmem:[%s10693_s12 + $0x48] sm:$0xff] }
0x3f69   :  { %v8691_v43 = vpack.c.bf16 %v7065_v32, %v7064_v62 }
0x3f72   :  { %v9221_v18 = vpop.eup %9220 }
0x3f73   :  { %v6747_v26 = vmul.f32 %v9221_v18, %v6731_v24  ;;  %v7058_v24 = vld [vmem:[%s10693_s12 + $0x10] sm:$0xff] }
0x3f74   :  { %v8679_v27 = vpack.c.bf16 %v7059_v49, %v7058_v24  ;;  %v7066_v18 = vld [vmem:[%s10693_s12 + $0x50] sm:$0xff] }
0x3f75   :  { %v6753_v38 = vmul.f32 %v7402_v53, %v6747_v26 }
0x3f76   :  { %8680 = vmatprep.subr.bf16.mxu1 %v8679_v27 }
0x3f77   :  { %v10570_v1 = vadd.f32 %v7403_v58, %v6753_v38  ;;  %8682 = vmatpush3.bf16.msra.mxu1 %v8679_v27  ;;  %v7069_v38 = vld [vmem:[%s10693_s12 + $0x68] sm:$0xff] }
0x3f78   :  { %8684 = vmatprep.subr.bf16.mxu1 %v8683_v7 }
0x3f79   :  { %8255 = vmatprep.mubr.msk.f32.mxu0 %vm245_vm4, %v10570_v1 }
0x3f7b   :  { %8686 = vmatpush3.bf16.msra.mxu1 %v8683_v7 }
0x3ff4   :  { %v6740_v6 = vpop.xlane.xlu1 %6739 }
0x3ff5   :  { %v6742_v29 = vmul.f32 0.03125, %v6740_v6 }
0x3ff7   :  { %v6744_v2 = vadd.f32 1e-12, %v6742_v29 }
0x3ff9   :  { %9222 = vrsqrt.f32 %v6744_v2 }
0x4003   :  { %v9223_v30 = vpop.eup %9222 }
0x4004   :  { %v6748_v33 = vmul.f32 %v9223_v30, %v6732_v28  ;;  %v7062_v28 = vld [vmem:[%s10693_s12 + $0x30] sm:$0xff] }
0x4005   :  { %v8687_v9 = vpack.c.bf16 %v7063_v8, %v7062_v28 }
0x4006   :  { %v6754_v21 = vmul.f32 %v7402_v53, %v6748_v33  ;;  %v7067_v53 = vld [vmem:[%s10693_s12 + $0x58] sm:$0xff] }
0x4007   :  { %8688 = vmatprep.subr.bf16.mxu1 %v8687_v9  ;;  %v8695_v26 = vpack.c.bf16 %v7067_v53, %v7066_v18 }
0x4008   :  { %v6760_v12 = vadd.f32 %v7403_v58, %v6754_v21  ;;  %8690 = vmatpush3.bf16.msra.mxu1 %v8687_v9  ;;  %v7068_v58 = vld [vmem:[%s10693_s12 + $0x60] sm:$0xff] }
0x4009   :  { %8692 = vmatprep.subr.bf16.mxu1 %v8691_v43 }
0x400a   :  { %8256 = vmatmul.mubr.msk.f32.vlgmr.msra.gmra.mrb[74].mxu0 %vm245_vm4, %v6760_v12 }
0x400b   :  { %8259 = vmatpush3.msk.msra.mxu0 %vm6881_vm11, %v6874_v51 }
0x400c   :  { %8668 = vmatprep.subr.bf16.mxu0 %v8667_v37  ;;  %8694 = vmatpush3.bf16.msra.mxu1 %v8691_v43 }
0x400d   :  { %8696 = vmatprep.subr.bf16.mxu1 %v8695_v26 }
0x4010   :  { %8698 = vmatpush3.bf16.msra.mxu1 %v8695_v26 }
0x40dd   :  { %v8257_v22 = vpop.f32.mrb[74].mxu0 }
0x40de   :  { %v6848_v46 = vadd.f32 %v8257_v22, %v7404_v39  ;;  %v6842_v16 = vpop.f32.mrb[75].mxu0 }
0x40df   :  { %v6843_v35 = vadd.f32 %v7404_v39, %v6842_v16 }
0x40e0   :  { %v6855_v48 = vsel %vm6851_vm10, %v6848_v46, -inf }
0x40e1   :  { %6856 = vmax.xlane.f32.xlu1 %v6855_v48  ;;  %v6852_v34 = vsel %vm6851_vm10, %v6843_v35, -inf }
0x40e2   :  { %6853 = vmax.xlane.f32.xlu0 %v6852_v34 }
0x416e   :  { %v6857_v36 = vpop.xlane.xlu1 %6856 }
0x416f   :  { %v6859_v59 = vsub.f32 %v6848_v46, %v6857_v36  ;;  %v6854_v14 = vpop.xlane.xlu0 %6853 }
0x4170   :  { %v6858_v31 = vsub.f32 %v6843_v35, %v6854_v14  ;;  %v7413_v14 = vld [vmem:[%s10694_s13 + $0x1b] ss:$0 sm:$0xff] }
0x4171   :  { %v6862_v19 = vmul.f32 1.442695, %v6859_v59 }
0x4172   :  { %v6860_v42 = vmul.f32 1.442695, %v6858_v31 }
0x4173   :  { %9224 = vpow2.f32 %v6862_v19 }
0x4174   :  { %9226 = vpow2.f32 %v6860_v42 }
0x417d   :  { %v9225_v47 = vpop.eup %9224 }
0x417e   :  { %v9227_v10 = vpop.eup %9226  ;;  %v6867_v50 = vsel %vm6851_vm10, %v9225_v47, 0.0 }
0x417f   :  { %6868 = vadd.xlane.f32.xlu1 %v6867_v50  ;;  %v6864_v44 = vsel %vm6851_vm10, %v9227_v10, 0.0 }
0x4180   :  { %6865 = vadd.xlane.f32.xlu0 %v6864_v44 }
0x420c   :  { %v6869_v17 = vpop.xlane.xlu1 %6868 }
0x420d   :  { %9228 = vrcp.f32 %v6869_v17  ;;  %v6866_v20 = vpop.xlane.xlu0 %6865 }
0x420e   :  { %9230 = vrcp.f32 %v6866_v20 }
0x4217   :  { %v9229_v0 = vpop.eup %9228 }
0x4218   :  { %v9231_v3 = vpop.eup %9230  ;;  %v6873_v55 = vmul.f32 %v9229_v0, %v9225_v47 }
0x4219   :  { %v6871_v60 = vmul.f32 %v9231_v3, %v9227_v10 }
0x421b   :  { %8260 = vmatprep.mubr.msk.f32.mxu0 %vm6851_vm10, %v6871_v60 }
0x421c   :  { %8261 = vmatmul.mubr.msk.f32.vlgmr.msra.gmra.mrb[76].mxu0 %vm6851_vm10, %v6873_v55 }
0x421d   :  { %8670 = vmatpush3.bf16.msra.mxu0 %v8667_v37  ;;  %8271 = vmatprep.mubr.msk.f32.mxu0 %vm245_vm4, %v10570_v1  ;;  %v8699_v1 = vpack.c.bf16 %v7069_v38, %v7068_v58 }
0x421e   :  { %8672 = vmatprep.subr.bf16.mxu0 %v8671_v13 }
0x421f   :  { %8700 = vmatprep.subr.bf16.mxu1 %v8699_v1 }
0x4220   :  { %8702 = vmatpush3.bf16.msra.mxu1 %v8699_v1 }
0x4221   :  { %8674 = vmatpush3.bf16.msra.mxu0 %v8671_v13  ;;  %8704 = vmatprep.subr.bf16.mxu1 %v8703_v61 }
0x4224   :  { %8272 = vmatmul.mubr.msk.f32.vlgmr.msra.gmra.mrb[78].mxu0 %vm245_vm4, %v6760_v12  ;;  %8706 = vmatpush3.bf16.msra.mxu1 %v8703_v61 }
0x42ef   :  { %v8262_v57 = vpop.f32.mrb[76].mxu0 }
0x42f0   :  { %v6951_v56 = vpop.f32.mrb[77].mxu0 }
0x42f7   :  { %v8273_v6 = vpop.f32.mrb[78].mxu0 }
0x42f8   :  { %v7041_v29 = vadd.f32 %v8273_v6, %v7410_v63  ;;  %v7035_v2 = vpop.f32.mrb[79].mxu0 }
0x42f9   :  { %v7036_v30 = vadd.f32 %v7410_v63, %v7035_v2 }
0x42fa   :  { %v7047_v33 = vmul.f32 0.70710677, %v7041_v29  ;;  %v7045_v22 = vmul.f32 0.5, %v7041_v29 }
0x42fb   :  { %v7046_v21 = vmul.f32 0.70710677, %v7036_v30  ;;  %v7044_v16 = vmul.f32 0.5, %v7036_v30 }
0x42fc   :  { %9232 = verf.f32 %v7047_v33 }
0x42fd   :  { %9234 = verf.f32 %v7046_v21 }
0x4306   :  { %v9233_v12 = vpop.eup %9232 }
0x4307   :  { %v9235_v39 = vpop.eup %9234  ;;  %v7051_v46 = vadd.f32 1.0, %v9233_v12 }
0x4308   :  { %v7050_v35 = vadd.f32 1.0, %v9235_v39 }
0x4309   :  { %v7053_v48 = vmul.f32 %v7051_v46, %v7045_v22 }
0x430a   :  { %v7052_v34 = vmul.f32 %v7050_v35, %v7044_v16 }
0x430b   :  { %v7055_v36 = vmul.f32 %v8262_v57, %v7053_v48 }
0x430c   :  { %v7054_v59 = vmul.f32 %v7052_v34, %v6951_v56 }
0x430e   :  { %8306 = vmatprep.mubr.f32.mxu1 %v7054_v59 }
0x430f   :  { %8307 = vmatmul.mubr.f32.vlgmr.msra.gmra.mrb[66].mxu1 %v7055_v36 }
0x43e2   :  { %v8308_v31 = vpop.f32.mrb[66].mxu1 }
0x43e3   :  { %v7149_v19 = vadd.f32 %v8308_v31, %v7413_v14  ;;  %v7143_v42 = vpop.f32.mrb[67].mxu1 }
0x43e4   :  { %v7144_v47 = vadd.f32 %v7413_v14, %v7143_v42 }
0x43e5   :  { %7153 = vst [vmem:[#allocation2 + $0x8] sm:$0xff] %v7149_v19 }
0x43e6   :  { %7152 = vst [vmem:[#allocation2] sm:$0xff] %v7144_v47 }
0x43e7   :  { %9247 = shalt.err (!%p9244_p4)
}
0x43e8   :  { %s9248_s13 = scalar_lea.hbm %s10695_s14, 256 }
0x43e9   :  { %p9249_p5 = scmp.ne.s32.totalorder %s10695_s14, %s9248_s13  ;;  %p9252_p6 = scmp.lt.u32.totalorder %s9248_s13, %s10695_s14 }
0x43eb   :  { %p9254_p7 = pnand %p9252_p6, %p9249_p5 }
0x43ed   :  { %9257 = shalt.err (!%p9254_p7)
}
0x43ee   :  { %s9276_s10 = smov 128  }
0x43ef   :  { %7165 = dma.vmem_to_hbm [thread:$0]  %s7160_s15, 256, %s10695_s14, [#allocation3], %s9276_s10, %s9276_s10, %s10706_s29  }
0x43f0   :  { %9258 = dma.done.wait [#allocation3], 256  }
0x43f1   :  { %9259 = vsyncadd [#allocation3], 4294967040 }
0x43f2   :  { %7169 = vsyncpa [#allocation3], 1 }

</bundles_post_ra>
